<compile_context>
chip_gen: v7x
topology: tpu7x:2x2x1
jax: 0.10.0
libtpu: 0.0.40
codegen_flags: <defaults>
</compile_context>

<pallas_src>
import jax
import jax.numpy as jnp
from jax.experimental import pallas as pl
from jax.experimental.pallas import tpu as pltpu


LAYER_DIMS = [32, 16, 8, 4, 2, 1]   # output dims of layer1..layer6
LANE_PACK = 128                     # batch rows packed into the 128-lane dim


# ----------------------------------------------------------------------------
# Kernel
# ----------------------------------------------------------------------------
def _folded_matvec_kernel(x_ref, w_ref, b_ref, o_ref):
    # x_ref: (block_rows, 128*F)  f32, lane-dense (unmasked loads)
    # w_ref: (128*F, 128)         block-diagonal folded weight (f32 or bf16)
    # b_ref: (1, 128)             f32 folded-bias row
    # o_ref: (block_rows, 128)    f32, lane-dense (unmasked stores)
    x = x_ref[...]
    if x.dtype != w_ref.dtype:
        # In-kernel LHS cast (e.g. bf16 MXU path on v5e); accumulation is f32.
        x = x.astype(w_ref.dtype)
    acc = jnp.dot(x, w_ref[...], preferred_element_type=jnp.float32)
    o_ref[...] = (acc + b_ref[...]).astype(o_ref.dtype)


# ----------------------------------------------------------------------------
# Parameter prep (hoisted out of the per-call path)
# ----------------------------------------------------------------------------
def init_params(features, key):
    """Per-layer params mirroring the PyTorch module (W stored (in, out))."""
    params = []
    in_dim = features
    for out_dim in LAYER_DIMS:
        key, sub = jax.random.split(key)
        limit = jnp.sqrt(6.0 / (in_dim + out_dim))
        w = jax.random.uniform(sub, (in_dim, out_dim),
                               minval=-limit, maxval=limit, dtype=jnp.float32)
        b = jnp.full((1, out_dim), 0.01, dtype=jnp.float32)
        params.append((w, b))
        in_dim = out_dim
    return params


def fold_params(params):
    """Collapse the activation-free 6-layer MLP into one affine map."""
    w_eff, b_eff = params[0]
    for w, b in params[1:]:
        b_eff = b_eff @ w + b
        w_eff = w_eff @ w
    return w_eff, b_eff        # (F, 1), (1, 1)


def prepare_folded_params(params, *, mxu_dtype=jnp.float32):
    """Fold + kron-expand ONCE (call at parameter-prep time, not per forward).

    Returns:
      w_pack: (128*F, 128) block-diagonal folded weight (resident in VMEM).
      b_row : (1, 128)     f32 folded-bias row broadcast across lanes.
    """
    w_eff, b_eff = fold_params(params)
    f = w_eff.shape[0]
    # Resident-weight budget guard (f32 kron weight is 64*F KiB).
    assert LANE_PACK * f * LANE_PACK * jnp.dtype(mxu_dtype).itemsize <= 8 << 20, \
        "folded kron weight too large to keep VMEM-resident; use a plain matvec"
    w_pack = jnp.kron(jnp.eye(LANE_PACK, dtype=mxu_dtype),
                      w_eff.astype(mxu_dtype))                 # (128*F, 128)
    b_row = jnp.broadcast_to(b_eff.astype(jnp.float32), (1, LANE_PACK))
    return w_pack, b_row


# ----------------------------------------------------------------------------
# Forward
# ----------------------------------------------------------------------------
def _choose_block_rows(n_packed, row_bytes, *, max_x_buf_bytes, min_grid_steps=4):
    """Packed rows per grid step: >=4 grid steps when possible, VMEM-capped."""
    if n_packed <= 8:
        return n_packed                                   # single tiny block
    cap = max(8, (max_x_buf_bytes // row_bytes) // 8 * 8)  # VMEM cap
    target = -(-n_packed // min_grid_steps)               # ceil(n/4)
    target = -(-target // 8) * 8                          # round up to x8
    return max(8, min(cap, target))


def _pallas_matvec(x_packed, w_pack, b_row, *, block_rows, n_packed, feat,
                   vmem_limit_bytes, cost, single_buffer_const):
    const_kw = {"pipeline_mode": pl.Buffered(1)} if single_buffer_const else {}
    return pl.pallas_call(
        _folded_matvec_kernel,
        out_shape=jax.ShapeDtypeStruct((n_packed, LANE_PACK), jnp.float32),
        grid=(pl.cdiv(n_packed, block_rows),),
        in_specs=[
            # x: tiled over packed batch rows (double-buffered by default).
            pl.BlockSpec((block_rows, LANE_PACK * feat), lambda i: (i, 0)),
            # folded weight / bias: constant index_map -> DMA'd once, resident;
            # single-buffered to halve their VMEM footprint.
            pl.BlockSpec((LANE_PACK * feat, LANE_PACK), lambda i: (0, 0),
                         **const_kw),
            pl.BlockSpec((1, LANE_PACK), lambda i: (0, 0), **const_kw),
        ],
        out_specs=pl.BlockSpec((block_rows, LANE_PACK), lambda i: (i, 0)),
        compiler_params=pltpu.CompilerParams(
            # Batch axis is embarrassingly parallel -> megacore split on v7x.
            dimension_semantics=("parallel",),
            vmem_limit_bytes=vmem_limit_bytes,
        ),
        cost_estimate=cost,
    )(x_packed, w_pack, b_row)


def regression_dqn_forward(x, w_pack, b_row, *, block_rows=None,
                           max_x_buf_bytes=12 * 1024 * 1024,
                           vmem_limit_bytes=40 * 1024 * 1024):
    """Forward pass of Regression_DQN as one Pallas lane-packed matvec.

    x:      (B, F) f32 inputs (left in f32 in HBM; any bf16 cast is in-kernel).
    w_pack: (128*F, 128) prepared by prepare_folded_params (f32 or bf16).
    b_row:  (1, 128) prepared folded bias.

    Per-generation tuning: on v5e/v6e (128 MiB VMEM) raise max_x_buf_bytes /
    vmem_limit_bytes for even fatter tiles; defaults are sized to fit v7x.
    """
    B, F = x.shape
    assert w_pack.shape == (LANE_PACK * F, LANE_PACK)

    # Pad only to the next multiple of 128 (<=127 dummy rows) so the
    # lane-dense reshape is a free row-major bitcast. No padding to block
    # multiples: Pallas clips the last grid block (block-diagonal weight makes
    # rows independent, so clipped garbage rows never pollute valid rows).
    # TODO(synk): for very large ragged batches, handle the <128-row tail out
    # of band to avoid this full-array pad copy.
    pad = (-B) % LANE_PACK
    if pad:
        x = jnp.pad(x, ((0, pad), (0, 0)))
    n_packed = (B + pad) // LANE_PACK

    # (B_pad, F) -> (B_pad/128, 128*F): every vector load fills all 128 lanes.
    x_packed = x.reshape(n_packed, LANE_PACK * F)

    row_bytes = LANE_PACK * F * x.dtype.itemsize
    if block_rows is None:
        block_rows = _choose_block_rows(n_packed, row_bytes,
                                        max_x_buf_bytes=max_x_buf_bytes)
    block_rows = min(block_rows, n_packed)

    # Real cost (not the 128x kron-inflated FLOPs).
    cost = pl.CostEstimate(
        flops=2 * B * F,
        transcendentals=0,
        bytes_accessed=int(B * F * x.dtype.itemsize + B * 4
                           + w_pack.size * w_pack.dtype.itemsize),
    )

    kwargs = dict(block_rows=block_rows, n_packed=n_packed, feat=F,
                  vmem_limit_bytes=vmem_limit_bytes, cost=cost)
    try:
        out_packed = _pallas_matvec(x_packed, w_pack, b_row,
                                    single_buffer_const=True, **kwargs)
    except Exception:
        # Fallback for JAX builds that reject pl.Buffered(1) on a BlockSpec.
        out_packed = _pallas_matvec(x_packed, w_pack, b_row,
                                    single_buffer_const=False, **kwargs)

    # (n_packed, 128) -> (B_pad, 1) is again a free row-major reshape.
    return out_packed.reshape(n_packed * LANE_PACK, 1)[:B]


def _reference_forward(x, params):
    # Per-layer reference mirroring the PyTorch forward (no activations,
    # dropout never applied in forward()).
    h = x
    for w, b in params:
        h = h @ w + b
    return h


if __name__ == "__main__":
    key = jax.random.PRNGKey(0)
    k_x, k_p, k_r, k_t = jax.random.split(key, 4)

    features = 32
    params = init_params(features, k_p)

    # Hoisted parameter prep: fold + kron done once, reused by every call.
    w_pack_f32, b_row = prepare_folded_params(params)
    w_pack_bf16, _ = prepare_folded_params(params, mxu_dtype=jnp.bfloat16)

    # Main case: 4096 rows -> n_packed = 32 -> block_rows = 8 -> grid = (4,):
    # pipelining active and >= 2 steps per TensorCore on v7x megacore.
    batch = 4096
    x = jax.random.normal(k_x, (batch, features), dtype=jnp.float32)
    ref = _reference_forward(x, params)

    out = jax.block_until_ready(regression_dqn_forward(x, w_pack_f32, b_row))
    assert out.shape == (batch, 1)
    assert jnp.allclose(out, ref, atol=1e-4, rtol=1e-4), "f32 mismatch"

    # bf16 MXU path (v5e headroom): x stays f32 in HBM, cast to bf16 in-kernel,
    # f32 accumulation. Checked against the per-layer f32 reference.
    out_bf = jax.block_until_ready(regression_dqn_forward(x, w_pack_bf16, b_row))
    assert out_bf.shape == (batch, 1)
    assert jnp.allclose(out_bf, ref, atol=3e-2, rtol=3e-2), "bf16 mismatch"

    # Ragged batch: 1200 rows -> pad 48 rows (to 1280 = 10 packed rows),
    # block_rows = 8 -> grid = (2,) with a clipped final block.
    batch_r = 1200
    x_r = jax.random.normal(k_r, (batch_r, features), dtype=jnp.float32)
    out_r = jax.block_until_ready(regression_dqn_forward(x_r, w_pack_f32, b_row))
    ref_r = _reference_forward(x_r, params)
    assert out_r.shape == (batch_r, 1)
    assert jnp.allclose(out_r, ref_r, atol=1e-4, rtol=1e-4), "ragged mismatch"

    # Tiny batch: single full-extent block.
    batch_t = 37
    x_t = jax.random.normal(k_t, (batch_t, features), dtype=jnp.float32)
    out_t = jax.block_until_ready(regression_dqn_forward(x_t, w_pack_f32, b_row))
    ref_t = _reference_forward(x_t, params)
    assert out_t.shape == (batch_t, 1)
    assert jnp.allclose(out_t, ref_t, atol=1e-4, rtol=1e-4), "tiny mismatch"

    print("KERNEL_OK")
</pallas_src>

<mosaic_0001>
module attributes {stable_mosaic.version = 11 : i64} {
  func.func @_folded_matvec_kernel(%arg0: i32, %arg1: memref<8x4096xf32, #tpu.memory_space<vmem>>, %arg2: memref<4096x128xf32, #tpu.memory_space<vmem>>, %arg3: memref<1x128xf32, #tpu.memory_space<vmem>>, %arg4: memref<8x128xf32, #tpu.memory_space<vmem>>) attributes {dimension_semantics = [#tpu.dimension_semantics<parallel>], iteration_bounds = array<i64: 4>, scalar_prefetch = 0 : i64, scratch_operands = 0 : i64, tpu.core_type = #tpu.core_type<tc>, window_params = [{transform_indices = @transform_0, window_bounds = array<i64: 8, 4096>}, {pipeline_mode = #tpu.pipeline_mode<synchronous>, transform_indices = @transform_1, window_bounds = array<i64: 4096, 128>}, {pipeline_mode = #tpu.pipeline_mode<synchronous>, transform_indices = @transform_2, window_bounds = array<i64: 1, 128>}, {transform_indices = @transform_3, window_bounds = array<i64: 8, 128>}]} {
    %c0 = arith.constant 0 : index
    %c0_0 = arith.constant 0 : index
    %0 = vector.load %arg1[%c0, %c0_0] : memref<8x4096xf32, #tpu.memory_space<vmem>>, vector<8x4096xf32>
    %c0_1 = arith.constant 0 : index
    %c0_2 = arith.constant 0 : index
    %1 = vector.load %arg2[%c0_1, %c0_2] : memref<4096x128xf32, #tpu.memory_space<vmem>>, vector<4096x128xf32>
    %cst = arith.constant dense<0.000000e+00> : vector<8x128xf32>
    %2 = tpu.matmul %0, %1, %cst {dimension_numbers = #tpu.dot_dimension_numbers<[1], [0], [0], [1], [0, 0, 1, 1], [], []>} : vector<8x4096xf32>, vector<4096x128xf32>, vector<8x128xf32> -> vector<8x128xf32>
    %c0_3 = arith.constant 0 : index
    %c0_4 = arith.constant 0 : index
    %3 = vector.load %arg3[%c0_3, %c0_4] : memref<1x128xf32, #tpu.memory_space<vmem>>, vector<1x128xf32>
    %4 = vector.broadcast %3 : vector<1x128xf32> to vector<8x128xf32>
    %5 = arith.addf %2, %4 : vector<8x128xf32>
    %c0_5 = arith.constant 0 : index
    %c0_6 = arith.constant 0 : index
    %6 = vector.load %arg4[%c0_5, %c0_6] : memref<8x128xf32, #tpu.memory_space<vmem>>, vector<8x128xf32>
    tpu.vector_store %arg4[%c0_5, %c0_6], %5 {strides = array<i32>} : memref<8x128xf32, #tpu.memory_space<vmem>>, vector<8x128xf32>,
    return
  }
  func.func @transform_0(%arg0: i32) -> (i32, i32) {
    %c0_i32 = arith.constant 0 : i32
    %c0_i32_0 = arith.constant 0 : i32
    return %arg0, %c0_i32 : i32, i32
  }
  func.func @transform_1(%arg0: i32) -> (i32, i32) {
    %c0_i32 = arith.constant 0 : i32
    %c0_i32_0 = arith.constant 0 : i32
    %c0_i32_1 = arith.constant 0 : i32
    return %c0_i32, %c0_i32_0 : i32, i32
  }
  func.func @transform_2(%arg0: i32) -> (i32, i32) {
    %c0_i32 = arith.constant 0 : i32
    %c0_i32_0 = arith.constant 0 : i32
    %c0_i32_1 = arith.constant 0 : i32
    return %c0_i32, %c0_i32_0 : i32, i32
  }
  func.func @transform_3(%arg0: i32) -> (i32, i32) {
    %c0_i32 = arith.constant 0 : i32
    %c0_i32_0 = arith.constant 0 : i32
    return %arg0, %c0_i32 : i32, i32
  }
}

module attributes {stable_mosaic.version = 11 : i64} {
  func.func @_folded_matvec_kernel(%arg0: i32, %arg1: memref<8x4096xf32, #tpu.memory_space<vmem>>, %arg2: memref<4096x128xf32, #tpu.memory_space<vmem>>, %arg3: memref<1x128xf32, #tpu.memory_space<vmem>>, %arg4: memref<8x128xf32, #tpu.memory_space<vmem>>) attributes {dimension_semantics = [#tpu.dimension_semantics<parallel>], iteration_bounds = array<i64: 4>, scalar_prefetch = 0 : i64, scratch_operands = 0 : i64, tpu.core_type = #tpu.core_type<tc>, window_params = [{transform_indices = @transform_0, window_bounds = array<i64: 8, 4096>}, {pipeline_mode = #tpu.pipeline_mode<synchronous>, transform_indices = @transform_1, window_bounds = array<i64: 4096, 128>}, {pipeline_mode = #tpu.pipeline_mode<synchronous>, transform_indices = @transform_2, window_bounds = array<i64: 1, 128>}, {transform_indices = @transform_3, window_bounds = array<i64: 8, 128>}]} {
    %c0 = arith.constant 0 : index
    %c0_0 = arith.constant 0 : index
    %0 = vector.load %arg1[%c0, %c0_0] : memref<8x4096xf32, #tpu.memory_space<vmem>>, vector<8x4096xf32>
    %c0_1 = arith.constant 0 : index
    %c0_2 = arith.constant 0 : index
    %1 = vector.load %arg2[%c0_1, %c0_2] : memref<4096x128xf32, #tpu.memory_space<vmem>>, vector<4096x128xf32>
    %cst = arith.constant dense<0.000000e+00> : vector<8x128xf32>
    %2 = tpu.matmul %0, %1, %cst {dimension_numbers = #tpu.dot_dimension_numbers<[1], [0], [0], [1], [0, 0, 1, 1], [], []>} : vector<8x4096xf32>, vector<4096x128xf32>, vector<8x128xf32> -> vector<8x128xf32>
    %c0_3 = arith.constant 0 : index
    %c0_4 = arith.constant 0 : index
    %3 = vector.load %arg3[%c0_3, %c0_4] : memref<1x128xf32, #tpu.memory_space<vmem>>, vector<1x128xf32>
    %4 = vector.broadcast %3 : vector<1x128xf32> to vector<8x128xf32>
    %5 = arith.addf %2, %4 : vector<8x128xf32>
    %c0_5 = arith.constant 0 : index
    %c0_6 = arith.constant 0 : index
    %6 = vector.load %arg4[%c0_5, %c0_6] : memref<8x128xf32, #tpu.memory_space<vmem>>, vector<8x128xf32>
    tpu.vector_store %arg4[%c0_5, %c0_6], %5 {strides = array<i32>} : memref<8x128xf32, #tpu.memory_space<vmem>>, vector<8x128xf32>,
    return
  }
  func.func @transform_0(%arg0: i32) -> (i32, i32) {
    %c0_i32 = arith.constant 0 : i32
    %c0_i32_0 = arith.constant 0 : i32
    return %arg0, %c0_i32 : i32, i32
  }
  func.func @transform_1(%arg0: i32) -> (i32, i32) {
    %c0_i32 = arith.constant 0 : i32
    %c0_i32_0 = arith.constant 0 : i32
    %c0_i32_1 = arith.constant 0 : i32
    return %c0_i32, %c0_i32_0 : i32, i32
  }
  func.func @transform_2(%arg0: i32) -> (i32, i32) {
    %c0_i32 = arith.constant 0 : i32
    %c0_i32_0 = arith.constant 0 : i32
    %c0_i32_1 = arith.constant 0 : i32
    return %c0_i32, %c0_i32_0 : i32, i32
  }
  func.func @transform_3(%arg0: i32) -> (i32, i32) {
    %c0_i32 = arith.constant 0 : i32
    %c0_i32_0 = arith.constant 0 : i32
    return %arg0, %c0_i32 : i32, i32
  }
}

</mosaic_0001>

<bundles_post_ra>
// kernel: tpu_custom_call.1
= control target key start
LH: loop header
LB: loop body
LE: loop exit
PB: predicated region body
PF: predicated region fallthrough
CT: control target
= control target key end

     0   :  { %8 = vsyncpa [#allocation3], 0  ;;  %s3589_s0 = inlined_call_operand.hbm [shape: f32[32,4096], index: 0, kind: input, shape index: {}]   ;;  %s3590_s1 = inlined_call_operand.hbm [shape: f32[4096,128], index: 1, kind: input, shape index: {}]   ;;  %s3591_s2 = inlined_call_operand.hbm [shape: f32[1,128], index: 2, kind: input, shape index: {}]   ;;  %s3592_s3 = inlined_call_operand.hbm [shape: f32[32,128], index: 3, kind: output, shape index: {}]  }
   0x1   :  { %10 = vsyncpa [#allocation3 + $0x1], 0 }
   0x2   :  { %11 = vsyncpa [#allocation6], 0 }
   0x3   :  { %12 = vsyncpa [#allocation4], 0 }
   0x4   :  { %14 = vsyncpa [#allocation4 + $0x1], 0  ;;  %s3333_s12 = smov 0   ;;  %s3335_s13 = smov 0  }
   0x5   :  { %s3337_s14 = smov 0   ;;  %s3339_s15 = smov 0  }
   0x6 LB: > { %s3354_s16 = sadd.s32 4294967295, %s3305_s15   ;;  %s1989_s17 = sadd.s32 4294967294, %s3305_s15   ;;  %s3305_s15 = sphi %s3339_s15, %s3611_s15   ;;  %s3301_s14 = sphi %s3337_s14, %s3610_s14   ;;  %s3297_s13 = sphi %s3335_s13, %s3609_s13   ;;  %s3293_s12 = sphi %s3333_s12, %s3608_s12  }
   0x7   : > { %p40_p0 = scmp.ne.s32.totalorder %s3297_s13, %s3293_s12  ;;  %p3593_p1 = scmp.eq.s32.totalorder %s3354_s16, 0 }
   0x8   : > { %p112_p3 = scmp.eq.s32.totalorder %s1989_s17, 3  ;;  %p1990_p5 = scmp.ge.s32.totalorder %s3305_s15, 1 }
   0x9   : > { %p3363_p4 = por %p3593_p1, %p40_p0  ;;  %p119_p7 = scmp.lt.s32.totalorder %s3305_s15, 5 }
   0xa   : > { %p3368_p6 = por %p112_p3, %p40_p0  ;;  %s3307_s21 = smov [#allocation5]  }
   0xb   : > { %s3596_s18 = scalar_select %p3363_p4, 1, 0 }
   0xc   : > { %s3597_s19 = scalar_select %p3368_p6, 1, 0 }
   0xd   : > { %p3373_p8 = pnand %p1990_p5, %p119_p7  ;;  %s131_s22 = sshll.u32 %s3307_s21, 4  ;;  %s132_s22 = int_to_ptr.vmem [resolvable:$true] %s131_s22 }
   0xe   : > { %s3308_s24 = smov [#allocation7]   ;;  %s3149_s28 = scalar_lea.hbm %s3590_s1, 65536 }
   0xf   : > { %s3598_s20 = scalar_select %p3373_p8, 1, 0 }
  0x10   : > { %p3092_p9 = pneg %p3373_p8  ;;  %s145_s25 = sshll.u32 %s3308_s24, 4  ;;  %s3385_s25 = int_to_ptr.vmem [resolvable:$true] %s145_s25 }
  0x11   : > { %p3150_p11 = scmp.ne.s32.totalorder %s3590_s1, %s3149_s28  ;;  %p3156_p3 = scmp.lt.u32.totalorder %s3149_s28, %s3590_s1 }
  0x12   : > { %p3381_p10 = pnand %p3092_p9, %p3593_p1 }
  0x14   : > { %p3151_p12 = pneg %p3381_p10 }
  0x16   : > { %p3152_p13 = pnand %p3151_p12, %p3150_p11 }
  0x18   : > { %p3153_p0 = pneg %p3152_p13 }
  0x1a   : > { %p3158_p5 = pnand %p3156_p3, %p3153_p0 }
  0x1c   : > { %3161 = shalt.err (!%p3158_p5)
}
  0x1d   : > { %s3162_s6 = scalar_lea.vmem %s132_s22, 65536  ;;  %p3170_p2 = scmp.lt.s32.totalorder %s132_s22, %s132_s22 }
  0x1e   : > { %p3163_p7 = scmp.ne.s32.totalorder %s132_s22, %s3162_s6  ;;  %p3171_p6 = scmp.lt.s32.totalorder %s3162_s6, %s3162_s6 }
  0x20   : > { %p3165_p9 = pnand %p3163_p7, %p3151_p12  ;;  %p3172_p4 = por %p3171_p6, %p3170_p2 }
  0x22   : > { %p3166_p1 = pneg %p3165_p9 }
  0x24   : > { %p3173_p8 = pnand %p3172_p4, %p3166_p1 }
  0x26   : > { %3176 = shalt.err (!%p3173_p8)
}
  0x27   : > { %s3309_s7 = smov 128   ;;  %s3310_s8 = smov 8  }
  0x28   : > { %3095 = dma.hbm_to_vmem [thread:$0]  (!%p3381_p10), %s3590_s1, 65536, %s132_s22, [#allocation6], %s3309_s7, %s3309_s7, %s3310_s8  }
  0x29   : > { %s3177_s21 = scalar_lea.hbm %s3591_s2, 16 }
  0x2a   : > { %p3178_p11 = scmp.ne.s32.totalorder %s3591_s2, %s3177_s21  ;;  %p3184_p4 = scmp.lt.u32.totalorder %s3177_s21, %s3591_s2 }
  0x2c   : > { %p3180_p1 = pnand %p3178_p11, %p3151_p12 }
  0x2e   : > { %p3181_p2 = pneg %p3180_p1 }
  0x30   : > { %p3186_p6 = pnand %p3184_p4, %p3181_p2 }
  0x32   : > { %3189 = shalt.err (!%p3186_p6)
}
  0x33   : > { %s3190_s22 = scalar_lea.vmem %s3385_s25, 16  ;;  %s3197_s29 = scalar_lea.vmem %s3385_s25, 32 }
  0x34   : > { %p3191_p8 = scmp.ne.s32.totalorder %s3385_s25, %s3190_s22  ;;  %p3198_p3 = scmp.lt.s32.totalorder %s3385_s25, %s3385_s25 }
  0x35   : > { %p3199_p5 = scmp.lt.s32.totalorder %s3197_s29, %s3190_s22 }
  0x36   : > { %p3193_p13 = pnand %p3191_p8, %p3151_p12 }
  0x37   : > { %p3200_p7 = por %p3199_p5, %p3198_p3 }
  0x38   : > { %p3194_p0 = pneg %p3193_p13 }
  0x3a   : > { %p3201_p9 = pnand %p3200_p7, %p3194_p0 }
  0x3c   : > { %3204 = shalt.err (!%p3201_p9)
}
  0x3d   : > { %3098 = dma.hbm_to_vmem [thread:$0]  (!%p3381_p10), %s3591_s2, 16, %s3385_s25, [#allocation6]  }
  0x3e   : > { %s3436_s5 = sadd.s32 1, %s3305_s15   ;;  %s27_s23 = sadd.s32 1, %s3301_s14 }
  0x3f   : > { %s24_s6 = ssub.s32 %s3305_s15, %s3436_s5  ;;  %p34_p12 = scmp.ne.s32.totalorder %s3301_s14, %s3297_s13 }
  0x40   : > { %p25_p11 = scmp.eq.s32.totalorder %s24_s6, 0  ;;  %p35_p1 = scmp.eq.s32.totalorder %s3305_s15, 0 }
  0x41   : > { %p3600_p2 = scmp.eq.s32.totalorder %s3354_s16, 3  ;;  %p3109_p6 = scmp.lt.s32.totalorder %s3305_s15, 4 }
  0x42   : > { %s3452_s8 = scalar_select %p25_p11, %s3301_s14, %s27_s23  }
  0x43   : > { %p3446_p4 = por %p3600_p2, %p34_p12  ;;  %p36_p8 = por %p35_p1, %p34_p12 }
  0x44   : > { %s156_s9 = sand.u32 1, %s3301_s14   ;;  %s2007_s25 = sshll.u32 %s3305_s15, 12 }
  0x45   : > { %s1994_s10 = sshll.u32 %s156_s9, 8  ;;  %s3459_s21 = scalar_lea.hbm %s3589_s0, %s2007_s25 }
  0x46   : > { %s160_s24 = scalar_lea.vmem [#allocation2], %s1994_s10  ;;  %p3463_p10 = pnand %p3109_p6, %p36_p8 }
  0x47   : > { %s168_s26 = sshll.u32 %s160_s24, 4  ;;  %s157_s28 = scalar_lea.sflag [#allocation3], %s156_s9  ;;  %s3461_s26 = int_to_ptr.vmem [resolvable:$true] %s168_s26 }
  0x48   : > { %s3205_s22 = scalar_lea.hbm %s3459_s21, 4096  ;;  %p3207_p0 = pneg %p3463_p10 }
  0x49   : > { %p3206_p13 = scmp.ne.s32.totalorder %s3459_s21, %s3205_s22  ;;  %s3210_s4 = scalar_lea.hbm %s3589_s0, 16384 }
  0x4a   : > { %p3211_p7 = scmp.lt.u32.totalorder %s3459_s21, %s3589_s0  ;;  %p3212_p9 = scmp.lt.u32.totalorder %s3210_s4, %s3205_s22 }
  0x4b   : > { %p3208_p3 = pnand %p3207_p0, %p3206_p13  ;;  %p3214_p11 = scmp.lt.u32.totalorder %s3205_s22, %s3459_s21 }
  0x4c   : > { %p3213_p12 = por %p3212_p9, %p3211_p7 }
  0x4d   : > { %p3209_p5 = pneg %p3208_p3 }
  0x4e   : > { %p3215_p1 = por %p3214_p11, %p3213_p12 }
  0x50   : > { %p3216_p2 = pnand %p3215_p1, %p3209_p5 }
  0x52   : > { %3219 = shalt.err (!%p3216_p2)
}
  0x53   : > { %s3220_s9 = scalar_lea.vmem %s3461_s26, 4096  ;;  %s3311_s10 = smov [#allocation2]  }
  0x54   : > { %p3221_p6 = scmp.ne.s32.totalorder %s3461_s26, %s3220_s9  ;;  %s3225_s25 = sshll.u32 %s3311_s10, 4  ;;  %s3226_s25 = int_to_ptr.vmem [resolvable:$false] %s3225_s25 }
  0x55   : > { %s3227_s11 = scalar_lea.vmem %s3226_s25, 8192  ;;  %p3228_p3 = scmp.lt.s32.totalorder %s3461_s26, %s3226_s25 }
  0x56   : > { %p3223_p8 = pnand %p3221_p6, %p3207_p0  ;;  %p3229_p7 = scmp.lt.s32.totalorder %s3227_s11, %s3220_s9 }
  0x58   : > { %p3224_p13 = pneg %p3223_p8  ;;  %p3230_p9 = por %p3229_p7, %p3228_p3 }
  0x5a   : > { %p3231_p12 = pnand %p3230_p9, %p3224_p13 }
  0x5c   : > { %3234 = shalt.err (!%p3231_p12)
}
  0x5d   : > { %3102 = dma.hbm_to_vmem [thread:$0]  (!%p3463_p10), %s3459_s21, 4096, %s3461_s26, %s157_s28  }
  0x5e   : > { %p3603_p5 = scmp.ne.s32.totalorder %s3598_s20, 0 }
  0x5f   : > { %s3495_s17 = sand.u32 (!%p3603_p5), 1, %s3297_s13   ;;  %p3604_p0 = scmp.ne.s32.totalorder (!%p3603_p5), %s3596_s18, 0 }
  0x60   : > { %177 = sbr.rel (%p3603_p5) target bundleno = 599 (0x257), region = 32  ;;  %s1998_s24 = sshll.u32 (!%p3603_p5), %s3495_s17, 8 }
  0x61   : > { %s180_s22 = scalar_lea.sflag (!%p3603_p5), [#allocation3], %s3495_s17  ;;  %s3499_s29 = scalar_lea.vmem (!%p3603_p5), [#allocation2], %s1998_s24 }
  0x67   : > { %3280 = dma.done.wait (%p3604_p0), %s180_s22, 4096  }
  0x68   : > { %3282 = vsyncadd (%p3604_p0), %s180_s22, 4294963200  ;;  %p3605_p10 = scmp.eq.s32.totalorder %s3354_s16, 0 }
  0x6a   : > { %3284 = dma.done.wait (%p3605_p10), [#allocation6], 65552   ;;  %p3606_p11 = pmov %p3605_p10 }
  0x6b   : > { %v262_v0 = vld [vmem:[#allocation5 + $0x80] sm:$0xff]  ;;  %v263_v1 = vld [vmem:[#allocation5 + $0x88] sm:$0xff]  ;;  %v264_v11 = vld [vmem:[#allocation5 + $0x90] sm:$0xff]  ;;  %s2001_s18 = sshll.u32 %s3495_s17, 3  ;;  %s2004_s20 = sshll.u32 %s3354_s16, 7 }
  0x6c   : > { %3286 = vsyncadd (%p3606_p11), [#allocation6], 4294901744  ;;  %v246_v2 = vld [vmem:[#allocation5] sm:$0xff]  ;;  %v2568_v3 = vpack.c.bf16 %v263_v1, %v262_v0  ;;  %v247_v4 = vld [vmem:[#allocation5 + $0x8] sm:$0xff]  ;;  %s213_s21 = scalar_lea.vmem [#allocation8], %s2001_s18  ;;  %s3546_s30 = scalar_lea.hbm %s3592_s3, %s2004_s20 }
  0x6d   : > { %v294_v5 = vld [vmem:[#allocation5 + $0x180] sm:$0xff]  ;;  %v295_v6 = vld [vmem:[#allocation5 + $0x188] sm:$0xff]  ;;  %v2570_v7 = vpack.c.bf16 %v247_v4, %v246_v2  ;;  %v265_v13 = vld [vmem:[#allocation5 + $0x98] sm:$0xff]  ;;  %s1900_s26 = sshll.u32 %s213_s21, 4  ;;  %s1887_s4 = scalar_lea.sflag [#allocation4], %s3495_s17  ;;  %s3548_s26 = int_to_ptr.vmem [resolvable:$true] %s1900_s26 }
  0x6e   : > { %v2600_v8 = vpack.c.bf16 %v295_v6, %v294_v5  ;;  %v278_v9 = vld [vmem:[#allocation5 + $0x100] sm:$0xff]  ;;  %v279_v10 = vld [vmem:[#allocation5 + $0x108] sm:$0xff]  ;;  %2569 = vmatprep.subr.bf16.mxu0 %v2568_v3  ;;  %v248_v14 = vld [vmem:[#allocation5 + $0x10] sm:$0xff]  ;;  %v2572_v16 = vpack.c.bf16 %v265_v13, %v264_v11  ;;  %s3235_s23 = scalar_lea.vmem %s3548_s26, 128  ;;  %s3312_s16 = smov [#allocation8]  }
  0x6f   : > { %v2602_v12 = vpack.c.bf16 %v279_v10, %v278_v9  ;;  %v249_v15 = vld [vmem:[#allocation5 + $0x18] sm:$0xff]  ;;  %2571 = vmatpush3.bf16.msra.mxu0 %v2570_v7  ;;  %v296_v18 = vld [vmem:[#allocation5 + $0x190] sm:$0xff]  ;;  %v266_v23 = vld [vmem:[#allocation5 + $0xa0] sm:$0xff]  ;;  %p3236_p1 = scmp.ne.s32.totalorder %s3548_s26, %s3235_s23  ;;  %s3239_s6 = sshll.u32 %s3312_s16, 4  ;;  %s3240_s6 = int_to_ptr.vmem [resolvable:$false] %s3239_s6 }
  0x70   : > { %2601 = vmatprep.subr.bf16.mxu1 %v2600_v8  ;;  %v2574_v17 = vpack.c.bf16 %v249_v15, %v248_v14  ;;  %v297_v19 = vld [vmem:[#allocation5 + $0x198] sm:$0xff]  ;;  %v280_v20 = vld [vmem:[#allocation5 + $0x110] sm:$0xff]  ;;  %v267_v24 = vld [vmem:[#allocation5 + $0xa8] sm:$0xff]  ;;  %2573 = vmatprep.subr.bf16.mxu0 %v2572_v16  ;;  %s3241_s9 = scalar_lea.vmem %s3240_s6, 256  ;;  %p3242_p8 = scmp.lt.s32.totalorder %s3548_s26, %s3240_s6 }
  0x71   : > { %2603 = vmatpush3.bf16.msra.mxu1 %v2602_v12  ;;  %v2604_v21 = vpack.c.bf16 %v297_v19, %v296_v18  ;;  %v281_v22 = vld [vmem:[#allocation5 + $0x118] sm:$0xff]  ;;  %v2576_v26 = vpack.c.bf16 %v267_v24, %v266_v23  ;;  %v250_v27 = vld [vmem:[#allocation5 + $0x20] sm:$0xff]  ;;  %v251_v28 = vld [vmem:[#allocation5 + $0x28] sm:$0xff]  ;;  %p3237_p2 = pnand %p3236_p1, %p3446_p4  ;;  %p3243_p13 = scmp.lt.s32.totalorder %s3241_s9, %s3235_s23 }
  0x72   : > { %v2606_v25 = vpack.c.bf16 %v281_v22, %v280_v20  ;;  %v298_v29 = vld [vmem:[#allocation5 + $0x1a0] sm:$0xff]  ;;  %v299_v30 = vld [vmem:[#allocation5 + $0x1a8] sm:$0xff]  ;;  %v2578_v33 = vpack.c.bf16 %v251_v28, %v250_v27  ;;  %v268_v35 = vld [vmem:[#allocation5 + $0xb0] sm:$0xff] }
  0x73   : > { %2605 = vmatprep.subr.bf16.mxu1 %v2604_v21  ;;  %v282_v31 = vld [vmem:[#allocation5 + $0x120] sm:$0xff]  ;;  %v283_v32 = vld [vmem:[#allocation5 + $0x128] sm:$0xff]  ;;  %2575 = vmatpush3.bf16.msra.mxu0 %v2574_v17  ;;  %v2608_v34 = vpack.c.bf16 %v299_v30, %v298_v29  ;;  %v269_v36 = vld [vmem:[#allocation5 + $0xb8] sm:$0xff]  ;;  %p3238_p6 = pneg %p3237_p2  ;;  %p3244_p3 = por %p3243_p13, %p3242_p8 }
  0x74   : > { %v252_v37 = vld [vmem:[#allocation5 + $0x30] sm:$0xff]  ;;  %2577 = vmatprep.subr.bf16.mxu0 %v2576_v26  ;;  %v2610_v38 = vpack.c.bf16 %v283_v32, %v282_v31  ;;  %v2580_v39 = vpack.c.bf16 %v269_v36, %v268_v35  ;;  %v253_v40 = vld [vmem:[#allocation5 + $0x38] sm:$0xff]  ;;  %v270_v46 = vld [vmem:[#allocation5 + $0xc0] sm:$0xff] }
  0x75   : > { %2607 = vmatpush3.bf16.msra.mxu1 %v2606_v25  ;;  %v300_v41 = vld [vmem:[#allocation5 + $0x1b0] sm:$0xff]  ;;  %v301_v42 = vld [vmem:[#allocation5 + $0x1b8] sm:$0xff]  ;;  %v271_v47 = vld [vmem:[#allocation5 + $0xc8] sm:$0xff]  ;;  %v2582_v48 = vpack.c.bf16 %v253_v40, %v252_v37  ;;  %p3245_p7 = pnand %p3244_p3, %p3238_p6 }
  0x76   : > { %2609 = vmatprep.subr.bf16.mxu1 %v2608_v34  ;;  %v2612_v43 = vpack.c.bf16 %v301_v42, %v300_v41  ;;  %v284_v44 = vld [vmem:[#allocation5 + $0x130] sm:$0xff]  ;;  %v285_v45 = vld [vmem:[#allocation5 + $0x138] sm:$0xff]  ;;  %v302_v49 = vld [vmem:[#allocation5 + $0x1c0] sm:$0xff]  ;;  %v2584_v52 = vpack.c.bf16 %v271_v47, %v270_v46 }
  0x77   : > { %2579 = vmatpush3.bf16.msra.mxu0 %v2578_v33  ;;  %v303_v50 = vld [vmem:[#allocation5 + $0x1c8] sm:$0xff]  ;;  %v2614_v51 = vpack.c.bf16 %v285_v45, %v284_v44  ;;  %v254_v53 = vld [vmem:[#allocation5 + $0x40] sm:$0xff]  ;;  %v272_v58 = vld [vmem:[#allocation5 + $0xd0] sm:$0xff] }
  0x78   : > { %2581 = vmatprep.subr.bf16.mxu0 %v2580_v39  ;;  %v255_v54 = vld [vmem:[#allocation5 + $0x48] sm:$0xff]  ;;  %v286_v55 = vld [vmem:[#allocation5 + $0x140] sm:$0xff]  ;;  %v2616_v56 = vpack.c.bf16 %v303_v50, %v302_v49  ;;  %v273_v59 = vld [vmem:[#allocation5 + $0xd8] sm:$0xff] }
  0x79   : > { %2611 = vmatpush3.bf16.msra.mxu1 %v2610_v38  ;;  %v287_v57 = vld [vmem:[#allocation5 + $0x148] sm:$0xff]  ;;  %v304_v60 = vld [vmem:[#allocation5 + $0x1d0] sm:$0xff]  ;;  %v305_v61 = vld [vmem:[#allocation5 + $0x1d8] sm:$0xff]  ;;  %v2586_v62 = vpack.c.bf16 %v255_v54, %v254_v53  ;;  %v2588_v0 = vpack.c.bf16 %v273_v59, %v272_v58 }
  0x7a   : > { %2613 = vmatprep.subr.bf16.mxu1 %v2612_v43  ;;  %v2618_v63 = vpack.c.bf16 %v287_v57, %v286_v55  ;;  %v256_v1 = vld [vmem:[#allocation5 + $0x50] sm:$0xff]  ;;  %v257_v2 = vld [vmem:[#allocation5 + $0x58] sm:$0xff]  ;;  %v2620_v4 = vpack.c.bf16 %v305_v61, %v304_v60  ;;  %v274_v6 = vld [vmem:[#allocation5 + $0xe0] sm:$0xff] }
  0x7b   : > { %2583 = vmatpush3.bf16.msra.mxu0 %v2582_v48  ;;  %v288_v3 = vld [vmem:[#allocation5 + $0x150] sm:$0xff]  ;;  %v289_v5 = vld [vmem:[#allocation5 + $0x158] sm:$0xff]  ;;  %v275_v7 = vld [vmem:[#allocation5 + $0xe8] sm:$0xff]  ;;  %v2590_v10 = vpack.c.bf16 %v257_v2, %v256_v1 }
  0x7c   : > { %2585 = vmatprep.subr.bf16.mxu0 %v2584_v52  ;;  %v306_v8 = vld [vmem:[#allocation5 + $0x1e0] sm:$0xff]  ;;  %v307_v9 = vld [vmem:[#allocation5 + $0x1e8] sm:$0xff]  ;;  %v2622_v13 = vpack.c.bf16 %v289_v5, %v288_v3  ;;  %v2592_v14 = vpack.c.bf16 %v275_v7, %v274_v6  ;;  %v276_v19 = vld [vmem:[#allocation5 + $0xf0] sm:$0xff] }
  0x7d   : > { %2615 = vmatpush3.bf16.msra.mxu1 %v2614_v51  ;;  %v258_v11 = vld [vmem:[#allocation5 + $0x60] sm:$0xff]  ;;  %v259_v12 = vld [vmem:[#allocation5 + $0x68] sm:$0xff]  ;;  %v2624_v18 = vpack.c.bf16 %v307_v9, %v306_v8  ;;  %v277_v20 = vld [vmem:[#allocation5 + $0xf8] sm:$0xff] }
  0x7e   : > { %2617 = vmatprep.subr.bf16.mxu1 %v2616_v56  ;;  %v290_v15 = vld [vmem:[#allocation5 + $0x160] sm:$0xff]  ;;  %v291_v16 = vld [vmem:[#allocation5 + $0x168] sm:$0xff]  ;;  %v217_v21 = vld [vmem:[%s3499_s29 + $0x18] sm:$0xff]  ;;  %v2594_v24 = vpack.c.bf16 %v259_v12, %v258_v11  ;;  %v2596_v26 = vpack.c.bf16 %v277_v20, %v276_v19 }
  0x7f   : > { %2587 = vmatpush3.bf16.msra.mxu0 %v2586_v62  ;;  %v215_v17 = vld [vmem:[%s3499_s29 + $0x8] sm:$0xff]  ;;  %v308_v22 = vld [vmem:[#allocation5 + $0x1f0] sm:$0xff]  ;;  %v309_v23 = vld [vmem:[#allocation5 + $0x1f8] sm:$0xff]  ;;  %899 = vmatprep.mubr.f32.mxu1 %v217_v21  ;;  %v2626_v25 = vpack.c.bf16 %v291_v16, %v290_v15 }
  0x80   : > { %2589 = vmatprep.subr.bf16.mxu0 %v2588_v0  ;;  %829 = vmatprep.mubr.f32.mxu0 %v215_v17  ;;  %v260_v27 = vld [vmem:[#allocation5 + $0x70] sm:$0xff]  ;;  %v261_v28 = vld [vmem:[#allocation5 + $0x78] sm:$0xff]  ;;  %v2628_v30 = vpack.c.bf16 %v309_v23, %v308_v22  ;;  %v326_v32 = vld [vmem:[#allocation5 + $0x280] sm:$0xff] }
  0x81   : > { %2619 = vmatpush3.bf16.msra.mxu1 %v2618_v63  ;;  %v292_v29 = vld [vmem:[#allocation5 + $0x170] sm:$0xff]  ;;  %v293_v31 = vld [vmem:[#allocation5 + $0x178] sm:$0xff]  ;;  %v327_v33 = vld [vmem:[#allocation5 + $0x288] sm:$0xff]  ;;  %v2598_v36 = vpack.c.bf16 %v261_v28, %v260_v27 }
  0x82   : > { %2621 = vmatprep.subr.bf16.mxu1 %v2620_v4  ;;  %v358_v34 = vld [vmem:[#allocation5 + $0x380] sm:$0xff]  ;;  %v359_v35 = vld [vmem:[#allocation5 + $0x388] sm:$0xff]  ;;  %v2630_v37 = vpack.c.bf16 %v293_v31, %v292_v29  ;;  %v2632_v38 = vpack.c.bf16 %v327_v33, %v326_v32  ;;  %v328_v44 = vld [vmem:[#allocation5 + $0x290] sm:$0xff] }
  0x83   : > { %2591 = vmatpush3.bf16.msra.mxu0 %v2590_v10  ;;  %v310_v39 = vld [vmem:[#allocation5 + $0x200] sm:$0xff]  ;;  %v311_v40 = vld [vmem:[#allocation5 + $0x208] sm:$0xff]  ;;  %v2664_v42 = vpack.c.bf16 %v359_v35, %v358_v34  ;;  %v329_v45 = vld [vmem:[#allocation5 + $0x298] sm:$0xff] }
  0x84   : > { %2593 = vmatprep.subr.bf16.mxu0 %v2592_v14  ;;  %v342_v41 = vld [vmem:[#allocation5 + $0x300] sm:$0xff]  ;;  %v343_v43 = vld [vmem:[#allocation5 + $0x308] sm:$0xff]  ;;  %v360_v46 = vld [vmem:[#allocation5 + $0x390] sm:$0xff]  ;;  %v2634_v49 = vpack.c.bf16 %v311_v40, %v310_v39  ;;  %v2636_v52 = vpack.c.bf16 %v329_v45, %v328_v44 }
  0x85   : > { %2623 = vmatpush3.bf16.msra.mxu1 %v2622_v13  ;;  %v361_v47 = vld [vmem:[#allocation5 + $0x398] sm:$0xff]  ;;  %v214_v48 = vld [vmem:[%s3499_s29] sm:$0xff]  ;;  %v216_v50 = vld [vmem:[%s3499_s29 + $0x10] sm:$0xff]  ;;  %v2666_v51 = vpack.c.bf16 %v343_v43, %v342_v41 }
  0x86   : > { %2625 = vmatprep.subr.bf16.mxu1 %v2624_v18  ;;  %v312_v53 = vld [vmem:[#allocation5 + $0x210] sm:$0xff]  ;;  %v313_v54 = vld [vmem:[#allocation5 + $0x218] sm:$0xff]  ;;  %v2668_v56 = vpack.c.bf16 %v361_v47, %v360_v46  ;;  %v330_v58 = vld [vmem:[#allocation5 + $0x2a0] sm:$0xff] }
  0x87   : > { %2595 = vmatpush3.bf16.msra.mxu0 %v2594_v24  ;;  %v344_v55 = vld [vmem:[#allocation5 + $0x310] sm:$0xff]  ;;  %v345_v57 = vld [vmem:[#allocation5 + $0x318] sm:$0xff]  ;;  %v331_v59 = vld [vmem:[#allocation5 + $0x2a8] sm:$0xff]  ;;  %v2638_v62 = vpack.c.bf16 %v313_v54, %v312_v53 }
  0x88   : > { %2597 = vmatprep.subr.bf16.mxu0 %v2596_v26  ;;  %v362_v60 = vld [vmem:[#allocation5 + $0x3a0] sm:$0xff]  ;;  %v363_v61 = vld [vmem:[#allocation5 + $0x3a8] sm:$0xff]  ;;  %v2670_v63 = vpack.c.bf16 %v345_v57, %v344_v55  ;;  %v2640_v0 = vpack.c.bf16 %v331_v59, %v330_v58  ;;  %v332_v6 = vld [vmem:[#allocation5 + $0x2b0] sm:$0xff] }
  0x89   : > { %2627 = vmatpush3.bf16.msra.mxu1 %v2626_v25  ;;  %v314_v1 = vld [vmem:[#allocation5 + $0x220] sm:$0xff]  ;;  %v315_v2 = vld [vmem:[#allocation5 + $0x228] sm:$0xff]  ;;  %v2672_v4 = vpack.c.bf16 %v363_v61, %v362_v60  ;;  %v333_v7 = vld [vmem:[#allocation5 + $0x2b8] sm:$0xff] }
  0x8a   : > { %2629 = vmatprep.subr.bf16.mxu1 %v2628_v30  ;;  %v346_v3 = vld [vmem:[#allocation5 + $0x320] sm:$0xff]  ;;  %v347_v5 = vld [vmem:[#allocation5 + $0x328] sm:$0xff]  ;;  %v364_v8 = vld [vmem:[#allocation5 + $0x3b0] sm:$0xff]  ;;  %v2642_v10 = vpack.c.bf16 %v315_v2, %v314_v1  ;;  %v2644_v12 = vpack.c.bf16 %v333_v7, %v332_v6 }
  0x8b   : > { %2599 = vmatpush3.bf16.msra.mxu0 %v2598_v36  ;;  %v365_v9 = vld [vmem:[#allocation5 + $0x3b8] sm:$0xff]  ;;  %v2674_v11 = vpack.c.bf16 %v347_v5, %v346_v3  ;;  %v316_v13 = vld [vmem:[#allocation5 + $0x230] sm:$0xff]  ;;  %v334_v18 = vld [vmem:[#allocation5 + $0x2c0] sm:$0xff] }
  0x8c   : > { %2633 = vmatprep.subr.bf16.mxu0 %v2632_v38  ;;  %v317_v14 = vld [vmem:[#allocation5 + $0x238] sm:$0xff]  ;;  %v348_v15 = vld [vmem:[#allocation5 + $0x330] sm:$0xff]  ;;  %v2676_v16 = vpack.c.bf16 %v365_v9, %v364_v8  ;;  %v335_v19 = vld [vmem:[#allocation5 + $0x2c8] sm:$0xff] }
  0x8d   : > { %2631 = vmatpush3.bf16.msra.mxu1 %v2630_v37  ;;  %v349_v17 = vld [vmem:[#allocation5 + $0x338] sm:$0xff]  ;;  %v366_v20 = vld [vmem:[#allocation5 + $0x3c0] sm:$0xff]  ;;  %v367_v21 = vld [vmem:[#allocation5 + $0x3c8] sm:$0xff]  ;;  %v2646_v22 = vpack.c.bf16 %v317_v14, %v316_v13  ;;  %v2648_v26 = vpack.c.bf16 %v335_v19, %v334_v18 }
  0x8e   : > { %2665 = vmatprep.subr.bf16.mxu1 %v2664_v42  ;;  %830 = vmatmul.mubr.f32.vlgmr.msra.gmra.mrb[0].mxu0 %v214_v48  ;;  %v318_v23 = vld [vmem:[#allocation5 + $0x240] sm:$0xff]  ;;  %v219_v24 = vld [vmem:[%s3499_s29 + $0x28] sm:$0xff]  ;;  %v2678_v25 = vpack.c.bf16 %v349_v17, %v348_v15  ;;  %v221_v29 = vld [vmem:[%s3499_s29 + $0x38] sm:$0xff]  ;;  %v2680_v30 = vpack.c.bf16 %v367_v21, %v366_v20 }
  0x8f   : > { %2635 = vmatpush3.bf16.msra.mxu0 %v2634_v49  ;;  %v319_v27 = vld [vmem:[#allocation5 + $0x248] sm:$0xff]  ;;  %v350_v28 = vld [vmem:[#allocation5 + $0x340] sm:$0xff]  ;;  %v336_v32 = vld [vmem:[#allocation5 + $0x2d0] sm:$0xff]  ;;  %969 = vmatprep.mubr.f32.mxu0 %v219_v24 }
  0x90   : > { %900 = vmatmul.mubr.f32.vlgmr.msra.gmra.mrb[0].mxu1 %v216_v50  ;;  %2637 = vmatprep.subr.bf16.mxu0 %v2636_v52  ;;  %v351_v31 = vld [vmem:[#allocation5 + $0x348] sm:$0xff]  ;;  %v337_v33 = vld [vmem:[#allocation5 + $0x2d8] sm:$0xff]  ;;  %v368_v34 = vld [vmem:[#allocation5 + $0x3d0] sm:$0xff]  ;;  %v2650_v36 = vpack.c.bf16 %v319_v27, %v318_v23 }
  0x91   : > { %2667 = vmatpush3.bf16.msra.mxu1 %v2666_v51  ;;  %v369_v35 = vld [vmem:[#allocation5 + $0x3d8] sm:$0xff]  ;;  %1039 = vmatprep.mubr.f32.mxu1 %v221_v29  ;;  %v2682_v37 = vpack.c.bf16 %v351_v31, %v350_v28  ;;  %v2652_v38 = vpack.c.bf16 %v337_v33, %v336_v32  ;;  %v320_v39 = vld [vmem:[#allocation5 + $0x250] sm:$0xff]  ;;  %v338_v44 = vld [vmem:[#allocation5 + $0x2e0] sm:$0xff] }
  0x92   : > { %2669 = vmatprep.subr.bf16.mxu1 %v2668_v56  ;;  %v321_v40 = vld [vmem:[#allocation5 + $0x258] sm:$0xff]  ;;  %v352_v41 = vld [vmem:[#allocation5 + $0x350] sm:$0xff]  ;;  %v2684_v42 = vpack.c.bf16 %v369_v35, %v368_v34  ;;  %v339_v45 = vld [vmem:[#allocation5 + $0x2e8] sm:$0xff] }
  0x93   : > { %2639 = vmatpush3.bf16.msra.mxu0 %v2638_v62  ;;  %v353_v43 = vld [vmem:[#allocation5 + $0x358] sm:$0xff]  ;;  %v370_v46 = vld [vmem:[#allocation5 + $0x3e0] sm:$0xff]  ;;  %v371_v47 = vld [vmem:[#allocation5 + $0x3e8] sm:$0xff]  ;;  %v2654_v48 = vpack.c.bf16 %v321_v40, %v320_v39  ;;  %v2656_v50 = vpack.c.bf16 %v339_v45, %v338_v44 }
  0x94   : > { %2641 = vmatprep.subr.bf16.mxu0 %v2640_v0  ;;  %v2686_v49 = vpack.c.bf16 %v353_v43, %v352_v41  ;;  %v322_v51 = vld [vmem:[#allocation5 + $0x260] sm:$0xff]  ;;  %v323_v52 = vld [vmem:[#allocation5 + $0x268] sm:$0xff]  ;;  %v2688_v54 = vpack.c.bf16 %v371_v47, %v370_v46  ;;  %v340_v56 = vld [vmem:[#allocation5 + $0x2f0] sm:$0xff] }
  0x95   : > { %2671 = vmatpush3.bf16.msra.mxu1 %v2670_v63  ;;  %v354_v53 = vld [vmem:[#allocation5 + $0x360] sm:$0xff]  ;;  %v355_v55 = vld [vmem:[#allocation5 + $0x368] sm:$0xff]  ;;  %v341_v57 = vld [vmem:[#allocation5 + $0x2f8] sm:$0xff]  ;;  %v2658_v60 = vpack.c.bf16 %v323_v52, %v322_v51 }
  0x96   : > { %2673 = vmatprep.subr.bf16.mxu1 %v2672_v4  ;;  %v372_v58 = vld [vmem:[#allocation5 + $0x3f0] sm:$0xff]  ;;  %v373_v59 = vld [vmem:[#allocation5 + $0x3f8] sm:$0xff]  ;;  %v2690_v61 = vpack.c.bf16 %v355_v55, %v354_v53  ;;  %v2660_v62 = vpack.c.bf16 %v341_v57, %v340_v56  ;;  %v390_v4 = vld [vmem:[#allocation5 + $0x480] sm:$0xff] }
  0x97   : > { %2643 = vmatpush3.bf16.msra.mxu0 %v2642_v10  ;;  %v324_v63 = vld [vmem:[#allocation5 + $0x270] sm:$0xff]  ;;  %v325_v0 = vld [vmem:[#allocation5 + $0x278] sm:$0xff]  ;;  %v2692_v2 = vpack.c.bf16 %v373_v59, %v372_v58  ;;  %v391_v5 = vld [vmem:[#allocation5 + $0x488] sm:$0xff] }
  0x98   : > { %2645 = vmatprep.subr.bf16.mxu0 %v2644_v12  ;;  %v356_v1 = vld [vmem:[#allocation5 + $0x370] sm:$0xff]  ;;  %v357_v3 = vld [vmem:[#allocation5 + $0x378] sm:$0xff]  ;;  %v422_v6 = vld [vmem:[#allocation5 + $0x580] sm:$0xff]  ;;  %v2662_v8 = vpack.c.bf16 %v325_v0, %v324_v63  ;;  %v2696_v10 = vpack.c.bf16 %v391_v5, %v390_v4 }
  0x99   : > { %2675 = vmatpush3.bf16.msra.mxu1 %v2674_v11  ;;  %v423_v7 = vld [vmem:[#allocation5 + $0x588] sm:$0xff]  ;;  %v2694_v9 = vpack.c.bf16 %v357_v3, %v356_v1  ;;  %v374_v11 = vld [vmem:[#allocation5 + $0x400] sm:$0xff]  ;;  %v393_v17 = vld [vmem:[#allocation5 + $0x498] sm:$0xff] }
  0x9a   : > { %2677 = vmatprep.subr.bf16.mxu1 %v2676_v16  ;;  %v375_v12 = vld [vmem:[#allocation5 + $0x408] sm:$0xff]  ;;  %v406_v13 = vld [vmem:[#allocation5 + $0x500] sm:$0xff]  ;;  %v2728_v14 = vpack.c.bf16 %v423_v7, %v422_v6  ;;  %v392_v16 = vld [vmem:[#allocation5 + $0x490] sm:$0xff] }
  0x9b   : > { %2647 = vmatpush3.bf16.msra.mxu0 %v2646_v22  ;;  %v407_v15 = vld [vmem:[#allocation5 + $0x508] sm:$0xff]  ;;  %v424_v18 = vld [vmem:[#allocation5 + $0x590] sm:$0xff]  ;;  %v425_v19 = vld [vmem:[#allocation5 + $0x598] sm:$0xff]  ;;  %v2698_v21 = vpack.c.bf16 %v375_v12, %v374_v11  ;;  %v2700_v24 = vpack.c.bf16 %v393_v17, %v392_v16 }
  0x9c   : > { %2649 = vmatprep.subr.bf16.mxu0 %v2648_v26  ;;  %v218_v20 = vld [vmem:[%s3499_s29 + $0x20] sm:$0xff]  ;;  %v220_v22 = vld [vmem:[%s3499_s29 + $0x30] sm:$0xff]  ;;  %v2730_v23 = vpack.c.bf16 %v407_v15, %v406_v13  ;;  %v377_v26 = vld [vmem:[#allocation5 + $0x418] sm:$0xff]  ;;  %v2732_v28 = vpack.c.bf16 %v425_v19, %v424_v18 }
  0x9d   : > { %2679 = vmatpush3.bf16.msra.mxu1 %v2678_v25  ;;  %v376_v25 = vld [vmem:[#allocation5 + $0x410] sm:$0xff]  ;;  %v409_v29 = vld [vmem:[#allocation5 + $0x518] sm:$0xff]  ;;  %v395_v31 = vld [vmem:[#allocation5 + $0x4a8] sm:$0xff] }
  0x9e   : > { %2681 = vmatprep.subr.bf16.mxu1 %v2680_v30  ;;  %v408_v27 = vld [vmem:[#allocation5 + $0x510] sm:$0xff]  ;;  %v394_v30 = vld [vmem:[#allocation5 + $0x4a0] sm:$0xff]  ;;  %v427_v33 = vld [vmem:[#allocation5 + $0x5a8] sm:$0xff]  ;;  %v2702_v35 = vpack.c.bf16 %v377_v26, %v376_v25 }
  0x9f   : > { %2651 = vmatpush3.bf16.msra.mxu0 %v2650_v36  ;;  %v426_v32 = vld [vmem:[#allocation5 + $0x5a0] sm:$0xff]  ;;  %v223_v34 = vld [vmem:[%s3499_s29 + $0x48] sm:$0xff]  ;;  %v225_v36 = vld [vmem:[%s3499_s29 + $0x58] sm:$0xff] }
  0xa0   : > { %2653 = vmatprep.subr.bf16.mxu0 %v2652_v38  ;;  %v2704_v38 = vpack.c.bf16 %v395_v31, %v394_v30  ;;  %v378_v39 = vld [vmem:[#allocation5 + $0x420] sm:$0xff]  ;;  %v379_v40 = vld [vmem:[#allocation5 + $0x428] sm:$0xff]  ;;  %v396_v44 = vld [vmem:[#allocation5 + $0x4b0] sm:$0xff] }
  0xa1   : > { %2683 = vmatpush3.bf16.msra.mxu1 %v2682_v37  ;;  %v2734_v37 = vpack.c.bf16 %v409_v29, %v408_v27  ;;  %v410_v41 = vld [vmem:[#allocation5 + $0x520] sm:$0xff]  ;;  %v411_v43 = vld [vmem:[#allocation5 + $0x528] sm:$0xff]  ;;  %v397_v45 = vld [vmem:[#allocation5 + $0x4b8] sm:$0xff] }
  0xa2   : > { %2685 = vmatprep.subr.bf16.mxu1 %v2684_v42  ;;  %v2736_v42 = vpack.c.bf16 %v427_v33, %v426_v32  ;;  %v428_v46 = vld [vmem:[#allocation5 + $0x5b0] sm:$0xff]  ;;  %v429_v47 = vld [vmem:[#allocation5 + $0x5b8] sm:$0xff]  ;;  %v398_v56 = vld [vmem:[#allocation5 + $0x4c0] sm:$0xff] }
  0xa3   : > { %2655 = vmatpush3.bf16.msra.mxu0 %v2654_v48  ;;  %v2706_v48 = vpack.c.bf16 %v379_v40, %v378_v39  ;;  %v380_v51 = vld [vmem:[#allocation5 + $0x430] sm:$0xff]  ;;  %v381_v52 = vld [vmem:[#allocation5 + $0x438] sm:$0xff]  ;;  %v399_v57 = vld [vmem:[#allocation5 + $0x4c8] sm:$0xff] }
  0xa4   : > { %2657 = vmatprep.subr.bf16.mxu0 %v2656_v50  ;;  %v2708_v50 = vpack.c.bf16 %v397_v45, %v396_v44  ;;  %v412_v53 = vld [vmem:[#allocation5 + $0x530] sm:$0xff]  ;;  %v413_v55 = vld [vmem:[#allocation5 + $0x538] sm:$0xff]  ;;  %v430_v58 = vld [vmem:[#allocation5 + $0x5c0] sm:$0xff] }
  0xa5   : > { %2687 = vmatpush3.bf16.msra.mxu1 %v2686_v49  ;;  %v2738_v49 = vpack.c.bf16 %v411_v43, %v410_v41  ;;  %v431_v59 = vld [vmem:[#allocation5 + $0x5c8] sm:$0xff]  ;;  %v382_v63 = vld [vmem:[#allocation5 + $0x440] sm:$0xff]  ;;  %v400_v4 = vld [vmem:[#allocation5 + $0x4d0] sm:$0xff] }
  0xa6   : > { %2689 = vmatprep.subr.bf16.mxu1 %v2688_v54  ;;  %v2740_v54 = vpack.c.bf16 %v429_v47, %v428_v46  ;;  %v383_v0 = vld [vmem:[#allocation5 + $0x448] sm:$0xff]  ;;  %v414_v1 = vld [vmem:[#allocation5 + $0x540] sm:$0xff]  ;;  %v401_v5 = vld [vmem:[#allocation5 + $0x4d8] sm:$0xff] }
  0xa7   : > { %2659 = vmatpush3.bf16.msra.mxu0 %v2658_v60  ;;  %v2710_v60 = vpack.c.bf16 %v381_v52, %v380_v51  ;;  %v415_v3 = vld [vmem:[#allocation5 + $0x548] sm:$0xff]  ;;  %v432_v6 = vld [vmem:[#allocation5 + $0x5d0] sm:$0xff]  ;;  %v433_v7 = vld [vmem:[#allocation5 + $0x5d8] sm:$0xff] }
  0xa8   : > { %2661 = vmatprep.subr.bf16.mxu0 %v2660_v62  ;;  %v2712_v62 = vpack.c.bf16 %v399_v57, %v398_v56  ;;  %v384_v11 = vld [vmem:[#allocation5 + $0x450] sm:$0xff]  ;;  %v385_v12 = vld [vmem:[#allocation5 + $0x458] sm:$0xff]  ;;  %v402_v16 = vld [vmem:[#allocation5 + $0x4e0] sm:$0xff] }
  0xa9   : > { %2691 = vmatpush3.bf16.msra.mxu1 %v2690_v61  ;;  %v2742_v61 = vpack.c.bf16 %v413_v55, %v412_v53  ;;  %v416_v13 = vld [vmem:[#allocation5 + $0x550] sm:$0xff]  ;;  %v417_v15 = vld [vmem:[#allocation5 + $0x558] sm:$0xff]  ;;  %v403_v17 = vld [vmem:[#allocation5 + $0x4e8] sm:$0xff] }
  0xaa   : > { %2693 = vmatprep.subr.bf16.mxu1 %v2692_v2  ;;  %v2744_v2 = vpack.c.bf16 %v431_v59, %v430_v58  ;;  %v434_v18 = vld [vmem:[#allocation5 + $0x5e0] sm:$0xff]  ;;  %v435_v19 = vld [vmem:[#allocation5 + $0x5e8] sm:$0xff]  ;;  %v405_v29 = vld [vmem:[#allocation5 + $0x4f8] sm:$0xff] }
  0xab   : > { %2663 = vmatpush3.bf16.msra.mxu0 %v2662_v8  ;;  %v2714_v8 = vpack.c.bf16 %v383_v0, %v382_v63  ;;  %v418_v25 = vld [vmem:[#allocation5 + $0x560] sm:$0xff]  ;;  %v2752_v26 = vpack.c.bf16 %v435_v19, %v434_v18  ;;  %v419_v27 = vld [vmem:[#allocation5 + $0x568] sm:$0xff]  ;;  %v436_v30 = vld [vmem:[#allocation5 + $0x5f0] sm:$0xff] }
  0xac   : > { %2697 = vmatprep.subr.bf16.mxu0 %v2696_v10  ;;  %v2716_v10 = vpack.c.bf16 %v401_v5, %v400_v4  ;;  %v437_v31 = vld [vmem:[#allocation5 + $0x5f8] sm:$0xff]  ;;  %v2754_v33 = vpack.c.bf16 %v419_v27, %v418_v25  ;;  %v454_v40 = vld [vmem:[#allocation5 + $0x680] sm:$0xff]  ;;  %v455_v41 = vld [vmem:[#allocation5 + $0x688] sm:$0xff] }
  0xad   : > { %2695 = vmatpush3.bf16.msra.mxu1 %v2694_v9  ;;  %v2746_v9 = vpack.c.bf16 %v415_v3, %v414_v1  ;;  %v421_v39 = vld [vmem:[#allocation5 + $0x578] sm:$0xff]  ;;  %v487_v43 = vld [vmem:[#allocation5 + $0x788] sm:$0xff]  ;;  %v2760_v46 = vpack.c.bf16 %v455_v41, %v454_v40  ;;  %v438_v47 = vld [vmem:[#allocation5 + $0x600] sm:$0xff] }
  0xae   : > { %2729 = vmatprep.subr.bf16.mxu1 %v2728_v14  ;;  %970 = vmatmul.mubr.f32.vlgmr.msra.gmra.mrb[2].mxu0 %v218_v20  ;;  %v2748_v14 = vpack.c.bf16 %v433_v7, %v432_v6  ;;  %v2718_v20 = vpack.c.bf16 %v385_v12, %v384_v11  ;;  %v471_v51 = vld [vmem:[#allocation5 + $0x708] sm:$0xff]  ;;  %v456_v52 = vld [vmem:[#allocation5 + $0x690] sm:$0xff]  ;;  %v457_v53 = vld [vmem:[#allocation5 + $0x698] sm:$0xff] }
  0xaf   : > { %2699 = vmatpush3.bf16.msra.mxu0 %v2698_v21  ;;  %1109 = vmatprep.mubr.f32.mxu0 %v223_v34  ;;  %v2750_v21 = vpack.c.bf16 %v417_v15, %v416_v13  ;;  %v489_v55 = vld [vmem:[#allocation5 + $0x798] sm:$0xff]  ;;  %v222_v56 = vld [vmem:[%s3499_s29 + $0x40] sm:$0xff]  ;;  %v224_v58 = vld [vmem:[%s3499_s29 + $0x50] sm:$0xff] }
  0xb0   : > { %1040 = vmatmul.mubr.f32.vlgmr.msra.gmra.mrb[2].mxu1 %v220_v22  ;;  %2701 = vmatprep.subr.bf16.mxu0 %v2700_v24  ;;  %v2720_v22 = vpack.c.bf16 %v403_v17, %v402_v16  ;;  %v387_v24 = vld [vmem:[#allocation5 + $0x468] sm:$0xff]  ;;  %v472_v63 = vld [vmem:[#allocation5 + $0x710] sm:$0xff]  ;;  %v473_v1 = vld [vmem:[#allocation5 + $0x718] sm:$0xff] }
  0xb1   : > { %2731 = vmatpush3.bf16.msra.mxu1 %v2730_v23  ;;  %1179 = vmatprep.mubr.f32.mxu1 %v225_v36  ;;  %v386_v23 = vld [vmem:[#allocation5 + $0x460] sm:$0xff]  ;;  %v389_v36 = vld [vmem:[#allocation5 + $0x478] sm:$0xff]  ;;  %v459_v3 = vld [vmem:[#allocation5 + $0x6a8] sm:$0xff] }
  0xb2   : > { %2733 = vmatprep.subr.bf16.mxu1 %v2732_v28  ;;  %v404_v28 = vld [vmem:[#allocation5 + $0x4f0] sm:$0xff]  ;;  %v2722_v32 = vpack.c.bf16 %v387_v24, %v386_v23  ;;  %v490_v4 = vld [vmem:[#allocation5 + $0x7a0] sm:$0xff]  ;;  %v491_v5 = vld [vmem:[#allocation5 + $0x7a8] sm:$0xff] }
  0xb3   : > { %2703 = vmatpush3.bf16.msra.mxu0 %v2702_v35  ;;  %v2724_v34 = vpack.c.bf16 %v405_v29, %v404_v28  ;;  %v388_v35 = vld [vmem:[#allocation5 + $0x470] sm:$0xff]  ;;  %v227_v6 = vld [vmem:[%s3499_s29 + $0x68] sm:$0xff]  ;;  %v442_v11 = vld [vmem:[#allocation5 + $0x620] sm:$0xff] }
  0xb4   : > { %2705 = vmatprep.subr.bf16.mxu0 %v2704_v38  ;;  %v2756_v38 = vpack.c.bf16 %v437_v31, %v436_v30  ;;  %v2726_v44 = vpack.c.bf16 %v389_v36, %v388_v35  ;;  %v443_v12 = vld [vmem:[#allocation5 + $0x628] sm:$0xff]  ;;  %v474_v13 = vld [vmem:[#allocation5 + $0x720] sm:$0xff]  ;;  %v460_v16 = vld [vmem:[#allocation5 + $0x6b0] sm:$0xff] }
  0xb5   : > { %2735 = vmatpush3.bf16.msra.mxu1 %v2734_v37  ;;  %v420_v37 = vld [vmem:[#allocation5 + $0x570] sm:$0xff]  ;;  %v475_v15 = vld [vmem:[#allocation5 + $0x728] sm:$0xff]  ;;  %v461_v17 = vld [vmem:[#allocation5 + $0x6b8] sm:$0xff] }
  0xb6   : > { %2737 = vmatprep.subr.bf16.mxu1 %v2736_v42  ;;  %v486_v42 = vld [vmem:[#allocation5 + $0x780] sm:$0xff]  ;;  %v2758_v45 = vpack.c.bf16 %v421_v39, %v420_v37  ;;  %v492_v18 = vld [vmem:[#allocation5 + $0x7b0] sm:$0xff]  ;;  %v493_v19 = vld [vmem:[#allocation5 + $0x7b8] sm:$0xff] }
  0xb7   : > { %2707 = vmatpush3.bf16.msra.mxu0 %v2706_v48  ;;  %v439_v48 = vld [vmem:[#allocation5 + $0x608] sm:$0xff]  ;;  %v444_v23 = vld [vmem:[#allocation5 + $0x630] sm:$0xff]  ;;  %v445_v24 = vld [vmem:[#allocation5 + $0x638] sm:$0xff] }
  0xb8   : > { %2709 = vmatprep.subr.bf16.mxu0 %v2708_v50  ;;  %v2792_v50 = vpack.c.bf16 %v487_v43, %v486_v42  ;;  %v2762_v57 = vpack.c.bf16 %v439_v48, %v438_v47  ;;  %v476_v25 = vld [vmem:[#allocation5 + $0x730] sm:$0xff]  ;;  %v477_v27 = vld [vmem:[#allocation5 + $0x738] sm:$0xff]  ;;  %v462_v28 = vld [vmem:[#allocation5 + $0x6c0] sm:$0xff] }
  0xb9   : > { %2739 = vmatpush3.bf16.msra.mxu1 %v2738_v49  ;;  %v470_v49 = vld [vmem:[#allocation5 + $0x700] sm:$0xff]  ;;  %v463_v29 = vld [vmem:[#allocation5 + $0x6c8] sm:$0xff]  ;;  %v464_v40 = vld [vmem:[#allocation5 + $0x6d0] sm:$0xff] }
  0xba   : > { %2741 = vmatprep.subr.bf16.mxu1 %v2740_v54  ;;  %v488_v54 = vld [vmem:[#allocation5 + $0x790] sm:$0xff]  ;;  %v2794_v59 = vpack.c.bf16 %v471_v51, %v470_v49  ;;  %v494_v30 = vld [vmem:[#allocation5 + $0x7c0] sm:$0xff]  ;;  %v495_v31 = vld [vmem:[#allocation5 + $0x7c8] sm:$0xff] }
  0xbb   : > { %2711 = vmatpush3.bf16.msra.mxu0 %v2710_v60  ;;  %v2764_v60 = vpack.c.bf16 %v457_v53, %v456_v52  ;;  %v2796_v0 = vpack.c.bf16 %v489_v55, %v488_v54  ;;  %v446_v35 = vld [vmem:[#allocation5 + $0x640] sm:$0xff]  ;;  %v447_v36 = vld [vmem:[#allocation5 + $0x648] sm:$0xff]  ;;  %v465_v41 = vld [vmem:[#allocation5 + $0x6d8] sm:$0xff] }
  0xbc   : > { %2713 = vmatprep.subr.bf16.mxu0 %v2712_v62  ;;  %v441_v62 = vld [vmem:[#allocation5 + $0x618] sm:$0xff]  ;;  %v478_v37 = vld [vmem:[#allocation5 + $0x740] sm:$0xff]  ;;  %v479_v39 = vld [vmem:[#allocation5 + $0x748] sm:$0xff] }
  0xbd   : > { %2743 = vmatpush3.bf16.msra.mxu1 %v2742_v61  ;;  %v440_v61 = vld [vmem:[#allocation5 + $0x610] sm:$0xff]  ;;  %v497_v43 = vld [vmem:[#allocation5 + $0x7d8] sm:$0xff]  ;;  %v466_v52 = vld [vmem:[#allocation5 + $0x6e0] sm:$0xff] }
  0xbe   : > { %2745 = vmatprep.subr.bf16.mxu1 %v2744_v2  ;;  %v458_v2 = vld [vmem:[#allocation5 + $0x6a0] sm:$0xff]  ;;  %v2766_v7 = vpack.c.bf16 %v441_v62, %v440_v61  ;;  %v496_v42 = vld [vmem:[#allocation5 + $0x7d0] sm:$0xff]  ;;  %v449_v48 = vld [vmem:[#allocation5 + $0x658] sm:$0xff] }
  0xbf   : > { %2715 = vmatpush3.bf16.msra.mxu0 %v2714_v8  ;;  %v229_v8 = vld [vmem:[%s3499_s29 + $0x78] sm:$0xff]  ;;  %v448_v47 = vld [vmem:[#allocation5 + $0x650] sm:$0xff]  ;;  %v467_v53 = vld [vmem:[#allocation5 + $0x6e8] sm:$0xff] }
  0xc0   : > { %2717 = vmatprep.subr.bf16.mxu0 %v2716_v10  ;;  %v2768_v10 = vpack.c.bf16 %v459_v3, %v458_v2  ;;  %v480_v49 = vld [vmem:[#allocation5 + $0x750] sm:$0xff]  ;;  %v481_v51 = vld [vmem:[#allocation5 + $0x758] sm:$0xff]  ;;  %v498_v54 = vld [vmem:[#allocation5 + $0x7e0] sm:$0xff] }
  0xc1   : > { %2747 = vmatpush3.bf16.msra.mxu1 %v2746_v9  ;;  %v2798_v9 = vpack.c.bf16 %v473_v1, %v472_v63  ;;  %v499_v55 = vld [vmem:[#allocation5 + $0x7e8] sm:$0xff]  ;;  %v482_v61 = vld [vmem:[#allocation5 + $0x760] sm:$0xff]  ;;  %v469_v1 = vld [vmem:[#allocation5 + $0x6f8] sm:$0xff] }
  0xc2   : > { %2749 = vmatprep.subr.bf16.mxu1 %v2748_v14  ;;  %v2800_v14 = vpack.c.bf16 %v491_v5, %v490_v4  ;;  %v2816_v62 = vpack.c.bf16 %v499_v55, %v498_v54  ;;  %v483_v63 = vld [vmem:[#allocation5 + $0x768] sm:$0xff]  ;;  %v500_v2 = vld [vmem:[#allocation5 + $0x7f0] sm:$0xff]  ;;  %v501_v3 = vld [vmem:[#allocation5 + $0x7f8] sm:$0xff] }
  0xc3   : > { %2719 = vmatpush3.bf16.msra.mxu0 %v2718_v20  ;;  %v2770_v20 = vpack.c.bf16 %v443_v12, %v442_v11  ;;  %v2818_v5 = vpack.c.bf16 %v483_v63, %v482_v61  ;;  %v485_v11 = vld [vmem:[#allocation5 + $0x778] sm:$0xff]  ;;  %v518_v12 = vld [vmem:[#allocation5 + $0x880] sm:$0xff]  ;;  %v556_v54 = vld [vmem:[#allocation5 + $0x9b0] sm:$0xff] }
  0xc4   : > { %2721 = vmatprep.subr.bf16.mxu0 %v2720_v22  ;;  %v2772_v22 = vpack.c.bf16 %v461_v17, %v460_v16  ;;  %v557_v55 = vld [vmem:[#allocation5 + $0x9b8] sm:$0xff]  ;;  %v540_v61 = vld [vmem:[#allocation5 + $0x930] sm:$0xff] }
  0xc5   : > { %2751 = vmatpush3.bf16.msra.mxu1 %v2750_v21  ;;  %v2802_v21 = vpack.c.bf16 %v475_v15, %v474_v13  ;;  %v519_v13 = vld [vmem:[#allocation5 + $0x888] sm:$0xff]  ;;  %v541_v63 = vld [vmem:[#allocation5 + $0x938] sm:$0xff] }
  0xc6   : > { %2753 = vmatprep.subr.bf16.mxu1 %v2752_v26  ;;  %v2804_v26 = vpack.c.bf16 %v493_v19, %v492_v18  ;;  %v551_v15 = vld [vmem:[#allocation5 + $0x988] sm:$0xff]  ;;  %v2824_v18 = vpack.c.bf16 %v519_v13, %v518_v12  ;;  %v502_v19 = vld [vmem:[#allocation5 + $0x800] sm:$0xff]  ;;  %v528_v12 = vld [vmem:[#allocation5 + $0x8d0] sm:$0xff] }
  0xc7   : > { %2723 = vmatpush3.bf16.msra.mxu0 %v2722_v32  ;;  %v2774_v32 = vpack.c.bf16 %v445_v24, %v444_v23  ;;  %v535_v23 = vld [vmem:[#allocation5 + $0x908] sm:$0xff]  ;;  %v520_v24 = vld [vmem:[#allocation5 + $0x890] sm:$0xff]  ;;  %v529_v13 = vld [vmem:[#allocation5 + $0x8d8] sm:$0xff] }
  0xc8   : > { %2725 = vmatprep.subr.bf16.mxu0 %v2724_v34  ;;  %v2776_v34 = vpack.c.bf16 %v463_v29, %v462_v28  ;;  %v226_v28 = vld [vmem:[%s3499_s29 + $0x60] sm:$0xff] }
  0xc9   : > { %2755 = vmatpush3.bf16.msra.mxu1 %v2754_v33  ;;  %v2806_v33 = vpack.c.bf16 %v477_v27, %v476_v25  ;;  %v521_v25 = vld [vmem:[#allocation5 + $0x898] sm:$0xff] }
  0xca   : > { %2757 = vmatprep.subr.bf16.mxu1 %v2756_v38  ;;  %v2808_v38 = vpack.c.bf16 %v495_v31, %v494_v30  ;;  %v553_v27 = vld [vmem:[#allocation5 + $0x998] sm:$0xff]  ;;  %v228_v30 = vld [vmem:[%s3499_s29 + $0x70] sm:$0xff] }
  0xcb   : > { %2727 = vmatpush3.bf16.msra.mxu0 %v2726_v44  ;;  %v2778_v44 = vpack.c.bf16 %v447_v36, %v446_v35  ;;  %v536_v35 = vld [vmem:[#allocation5 + $0x910] sm:$0xff] }
  0xcc   : > { %2761 = vmatprep.subr.bf16.mxu0 %v2760_v46  ;;  %v2780_v46 = vpack.c.bf16 %v465_v41, %v464_v40  ;;  %v554_v40 = vld [vmem:[#allocation5 + $0x9a0] sm:$0xff]  ;;  %v555_v41 = vld [vmem:[#allocation5 + $0x9a8] sm:$0xff] }
  0xcd   : > { %2759 = vmatpush3.bf16.msra.mxu1 %v2758_v45  ;;  %v2810_v45 = vpack.c.bf16 %v479_v39, %v478_v37  ;;  %v537_v37 = vld [vmem:[#allocation5 + $0x918] sm:$0xff]  ;;  %v523_v39 = vld [vmem:[#allocation5 + $0x8a8] sm:$0xff] }
  0xce   : > { %2793 = vmatprep.subr.bf16.mxu1 %v2792_v50  ;;  %1110 = vmatmul.mubr.f32.vlgmr.msra.gmra.mrb[4].mxu0 %v222_v56  ;;  %v2812_v50 = vpack.c.bf16 %v497_v43, %v496_v42  ;;  %v2782_v56 = vpack.c.bf16 %v449_v48, %v448_v47  ;;  %v231_v42 = vld [vmem:[%s3499_s29 + $0x88] sm:$0xff]  ;;  %v506_v47 = vld [vmem:[#allocation5 + $0x820] sm:$0xff] }
  0xcf   : > { %2763 = vmatpush3.bf16.msra.mxu0 %v2762_v57  ;;  %1249 = vmatprep.mubr.f32.mxu0 %v227_v6  ;;  %v2814_v57 = vpack.c.bf16 %v481_v51, %v480_v49  ;;  %v507_v48 = vld [vmem:[#allocation5 + $0x828] sm:$0xff]  ;;  %v538_v49 = vld [vmem:[#allocation5 + $0x920] sm:$0xff] }
  0xd0   : > { %1180 = vmatmul.mubr.f32.vlgmr.msra.gmra.mrb[4].mxu1 %v224_v58  ;;  %2765 = vmatprep.subr.bf16.mxu0 %v2764_v60  ;;  %v2784_v58 = vpack.c.bf16 %v467_v53, %v466_v52  ;;  %v451_v60 = vld [vmem:[#allocation5 + $0x668] sm:$0xff]  ;;  %v524_v52 = vld [vmem:[#allocation5 + $0x8b0] sm:$0xff]  ;;  %v525_v53 = vld [vmem:[#allocation5 + $0x8b8] sm:$0xff] }
  0xd1   : > { %2795 = vmatpush3.bf16.msra.mxu1 %v2794_v59  ;;  %1319 = vmatprep.mubr.f32.mxu1 %v229_v8  ;;  %v450_v59 = vld [vmem:[#allocation5 + $0x660] sm:$0xff]  ;;  %v453_v8 = vld [vmem:[#allocation5 + $0x678] sm:$0xff]  ;;  %v539_v51 = vld [vmem:[#allocation5 + $0x928] sm:$0xff] }
  0xd2   : > { %2797 = vmatprep.subr.bf16.mxu1 %v2796_v0  ;;  %v468_v0 = vld [vmem:[#allocation5 + $0x6f0] sm:$0xff]  ;;  %v2786_v4 = vpack.c.bf16 %v451_v60, %v450_v59  ;;  %v509_v60 = vld [vmem:[#allocation5 + $0x838] sm:$0xff] }
  0xd3   : > { %2767 = vmatpush3.bf16.msra.mxu0 %v2766_v7  ;;  %v2788_v6 = vpack.c.bf16 %v469_v1, %v468_v0  ;;  %v452_v7 = vld [vmem:[#allocation5 + $0x670] sm:$0xff]  ;;  %v526_v0 = vld [vmem:[#allocation5 + $0x8c0] sm:$0xff]  ;;  %v527_v1 = vld [vmem:[#allocation5 + $0x8c8] sm:$0xff] }
  0xd4   : > { %2769 = vmatprep.subr.bf16.mxu0 %v2768_v10  ;;  %v2820_v10 = vpack.c.bf16 %v501_v3, %v500_v2  ;;  %v2790_v16 = vpack.c.bf16 %v453_v8, %v452_v7  ;;  %v508_v59 = vld [vmem:[#allocation5 + $0x830] sm:$0xff]  ;;  %v558_v2 = vld [vmem:[#allocation5 + $0x9c0] sm:$0xff]  ;;  %v559_v3 = vld [vmem:[#allocation5 + $0x9c8] sm:$0xff] }
  0xd5   : > { %2799 = vmatpush3.bf16.msra.mxu1 %v2798_v9  ;;  %v484_v9 = vld [vmem:[#allocation5 + $0x770] sm:$0xff]  ;;  %v510_v7 = vld [vmem:[#allocation5 + $0x840] sm:$0xff]  ;;  %v511_v8 = vld [vmem:[#allocation5 + $0x848] sm:$0xff] }
  0xd6   : > { %2801 = vmatprep.subr.bf16.mxu1 %v2800_v14  ;;  %v550_v14 = vld [vmem:[#allocation5 + $0x980] sm:$0xff]  ;;  %v2822_v17 = vpack.c.bf16 %v485_v11, %v484_v9  ;;  %v543_v11 = vld [vmem:[#allocation5 + $0x948] sm:$0xff] }
  0xd7   : > { %2771 = vmatpush3.bf16.msra.mxu0 %v2770_v20  ;;  %v503_v20 = vld [vmem:[#allocation5 + $0x808] sm:$0xff]  ;;  %v542_v9 = vld [vmem:[#allocation5 + $0x940] sm:$0xff] }
  0xd8   : > { %2773 = vmatprep.subr.bf16.mxu0 %v2772_v22  ;;  %v2856_v22 = vpack.c.bf16 %v551_v15, %v550_v14  ;;  %v2826_v29 = vpack.c.bf16 %v503_v20, %v502_v19  ;;  %v560_v14 = vld [vmem:[#allocation5 + $0x9d0] sm:$0xff]  ;;  %v561_v15 = vld [vmem:[#allocation5 + $0x9d8] sm:$0xff] }
  0xd9   : > { %2803 = vmatpush3.bf16.msra.mxu1 %v2802_v21  ;;  %v534_v21 = vld [vmem:[#allocation5 + $0x900] sm:$0xff]  ;;  %v512_v19 = vld [vmem:[#allocation5 + $0x850] sm:$0xff]  ;;  %v513_v20 = vld [vmem:[#allocation5 + $0x858] sm:$0xff] }
  0xda   : > { %2805 = vmatprep.subr.bf16.mxu1 %v2804_v26  ;;  %v552_v26 = vld [vmem:[#allocation5 + $0x990] sm:$0xff]  ;;  %v2858_v31 = vpack.c.bf16 %v535_v23, %v534_v21  ;;  %v545_v23 = vld [vmem:[#allocation5 + $0x958] sm:$0xff] }
  0xdb   : > { %2775 = vmatpush3.bf16.msra.mxu0 %v2774_v32  ;;  %v2828_v32 = vpack.c.bf16 %v521_v25, %v520_v24  ;;  %v2860_v36 = vpack.c.bf16 %v553_v27, %v552_v26  ;;  %v544_v21 = vld [vmem:[#allocation5 + $0x950] sm:$0xff]  ;;  %v530_v24 = vld [vmem:[#allocation5 + $0x8e0] sm:$0xff]  ;;  %v531_v25 = vld [vmem:[#allocation5 + $0x8e8] sm:$0xff] }
  0xdc   : > { %2777 = vmatprep.subr.bf16.mxu0 %v2776_v34  ;;  %v505_v34 = vld [vmem:[#allocation5 + $0x818] sm:$0xff]  ;;  %v562_v26 = vld [vmem:[#allocation5 + $0x9e0] sm:$0xff]  ;;  %v563_v27 = vld [vmem:[#allocation5 + $0x9e8] sm:$0xff] }
  0xdd   : > { %2807 = vmatpush3.bf16.msra.mxu1 %v2806_v33  ;;  %v504_v33 = vld [vmem:[#allocation5 + $0x810] sm:$0xff] }
  0xde   : > { %2809 = vmatprep.subr.bf16.mxu1 %v2808_v38  ;;  %v522_v38 = vld [vmem:[#allocation5 + $0x8a0] sm:$0xff]  ;;  %v2830_v43 = vpack.c.bf16 %v505_v34, %v504_v33  ;;  %v2880_v34 = vpack.c.bf16 %v563_v27, %v562_v26  ;;  %v620_v26 = vld [vmem:[#allocation5 + $0xbb0] sm:$0xff]  ;;  %v621_v27 = vld [vmem:[#allocation5 + $0xbb8] sm:$0xff] }
  0xdf   : > { %2779 = vmatpush3.bf16.msra.mxu0 %v2778_v44  ;;  %v233_v44 = vld [vmem:[%s3499_s29 + $0x98] sm:$0xff]  ;;  %v546_v33 = vld [vmem:[#allocation5 + $0x960] sm:$0xff] }
  0xe0   : > { %2781 = vmatprep.subr.bf16.mxu0 %v2780_v46  ;;  %v2832_v46 = vpack.c.bf16 %v523_v39, %v522_v38  ;;  %v564_v38 = vld [vmem:[#allocation5 + $0x9f0] sm:$0xff]  ;;  %v565_v39 = vld [vmem:[#allocation5 + $0x9f8] sm:$0xff] }
  0xe1   : > { %2811 = vmatpush3.bf16.msra.mxu1 %v2810_v45  ;;  %v2862_v45 = vpack.c.bf16 %v537_v37, %v536_v35  ;;  %v547_v35 = vld [vmem:[#allocation5 + $0x968] sm:$0xff]  ;;  %v533_v37 = vld [vmem:[#allocation5 + $0x8f8] sm:$0xff] }
  0xe2   : > { %2813 = vmatprep.subr.bf16.mxu1 %v2812_v50  ;;  %v2864_v50 = vpack.c.bf16 %v555_v41, %v554_v40  ;;  %v2882_v41 = vpack.c.bf16 %v547_v35, %v546_v33  ;;  %v604_v33 = vld [vmem:[#allocation5 + $0xb30] sm:$0xff]  ;;  %v605_v35 = vld [vmem:[#allocation5 + $0xb38] sm:$0xff] }
  0xe3   : > { %2783 = vmatpush3.bf16.msra.mxu0 %v2782_v56  ;;  %v2834_v56 = vpack.c.bf16 %v507_v48, %v506_v47  ;;  %v549_v47 = vld [vmem:[#allocation5 + $0x978] sm:$0xff]  ;;  %v582_v48 = vld [vmem:[#allocation5 + $0xa80] sm:$0xff] }
  0xe4   : > { %2785 = vmatprep.subr.bf16.mxu0 %v2784_v58  ;;  %v2836_v58 = vpack.c.bf16 %v525_v53, %v524_v52 }
  0xe5   : > { %2815 = vmatpush3.bf16.msra.mxu1 %v2814_v57  ;;  %v2866_v57 = vpack.c.bf16 %v539_v51, %v538_v49  ;;  %v583_v49 = vld [vmem:[#allocation5 + $0xa88] sm:$0xff] }
  0xe6   : > { %2817 = vmatprep.subr.bf16.mxu1 %v2816_v62  ;;  %v2868_v62 = vpack.c.bf16 %v557_v55, %v556_v54  ;;  %v615_v51 = vld [vmem:[#allocation5 + $0xb88] sm:$0xff]  ;;  %v2888_v54 = vpack.c.bf16 %v583_v49, %v582_v48  ;;  %v566_v55 = vld [vmem:[#allocation5 + $0xa00] sm:$0xff]  ;;  %v592_v48 = vld [vmem:[#allocation5 + $0xad0] sm:$0xff] }
  0xe7   : > { %2787 = vmatpush3.bf16.msra.mxu0 %v2786_v4  ;;  %v2838_v4 = vpack.c.bf16 %v509_v60, %v508_v59  ;;  %v599_v59 = vld [vmem:[#allocation5 + $0xb08] sm:$0xff]  ;;  %v584_v60 = vld [vmem:[#allocation5 + $0xa90] sm:$0xff]  ;;  %v593_v49 = vld [vmem:[#allocation5 + $0xad8] sm:$0xff] }
  0xe8   : > { %2789 = vmatprep.subr.bf16.mxu0 %v2788_v6  ;;  %v2840_v6 = vpack.c.bf16 %v527_v1, %v526_v0  ;;  %v230_v0 = vld [vmem:[%s3499_s29 + $0x80] sm:$0xff] }
  0xe9   : > { %2819 = vmatpush3.bf16.msra.mxu1 %v2818_v5  ;;  %v2870_v5 = vpack.c.bf16 %v541_v63, %v540_v61  ;;  %v585_v61 = vld [vmem:[#allocation5 + $0xa98] sm:$0xff] }
  0xea   : > { %2821 = vmatprep.subr.bf16.mxu1 %v2820_v10  ;;  %v2872_v10 = vpack.c.bf16 %v559_v3, %v558_v2  ;;  %v617_v63 = vld [vmem:[#allocation5 + $0xb98] sm:$0xff]  ;;  %v232_v2 = vld [vmem:[%s3499_s29 + $0x90] sm:$0xff] }
  0xeb   : > { %2791 = vmatpush3.bf16.msra.mxu0 %v2790_v16  ;;  %v2842_v16 = vpack.c.bf16 %v511_v8, %v510_v7  ;;  %v600_v7 = vld [vmem:[#allocation5 + $0xb10] sm:$0xff] }
  0xec   : > { %2825 = vmatprep.subr.bf16.mxu0 %v2824_v18  ;;  %v2844_v18 = vpack.c.bf16 %v529_v13, %v528_v12  ;;  %v618_v12 = vld [vmem:[#allocation5 + $0xba0] sm:$0xff]  ;;  %v619_v13 = vld [vmem:[#allocation5 + $0xba8] sm:$0xff] }
  0xed   : > { %2823 = vmatpush3.bf16.msra.mxu1 %v2822_v17  ;;  %v2874_v17 = vpack.c.bf16 %v543_v11, %v542_v9  ;;  %v601_v9 = vld [vmem:[#allocation5 + $0xb18] sm:$0xff]  ;;  %v587_v11 = vld [vmem:[#allocation5 + $0xaa8] sm:$0xff] }
  0xee   : > { %2857 = vmatprep.subr.bf16.mxu1 %v2856_v22  ;;  %1250 = vmatmul.mubr.f32.vlgmr.msra.gmra.mrb[6].mxu0 %v226_v28  ;;  %v2876_v22 = vpack.c.bf16 %v561_v15, %v560_v14  ;;  %v2846_v28 = vpack.c.bf16 %v513_v20, %v512_v19  ;;  %v235_v14 = vld [vmem:[%s3499_s29 + $0xa8] sm:$0xff]  ;;  %v570_v19 = vld [vmem:[#allocation5 + $0xa20] sm:$0xff] }
  0xef   : > { %2827 = vmatpush3.bf16.msra.mxu0 %v2826_v29  ;;  %1389 = vmatprep.mubr.f32.mxu0 %v231_v42  ;;  %v2878_v29 = vpack.c.bf16 %v545_v23, %v544_v21  ;;  %v571_v20 = vld [vmem:[#allocation5 + $0xa28] sm:$0xff]  ;;  %v602_v21 = vld [vmem:[#allocation5 + $0xb20] sm:$0xff] }
  0xf0   : > { %1320 = vmatmul.mubr.f32.vlgmr.msra.gmra.mrb[6].mxu1 %v228_v30  ;;  %2829 = vmatprep.subr.bf16.mxu0 %v2828_v32  ;;  %v2848_v30 = vpack.c.bf16 %v531_v25, %v530_v24  ;;  %v515_v32 = vld [vmem:[#allocation5 + $0x868] sm:$0xff]  ;;  %v588_v24 = vld [vmem:[#allocation5 + $0xab0] sm:$0xff]  ;;  %v589_v25 = vld [vmem:[#allocation5 + $0xab8] sm:$0xff] }
  0xf1   : > { %2859 = vmatpush3.bf16.msra.mxu1 %v2858_v31  ;;  %1459 = vmatprep.mubr.f32.mxu1 %v233_v44  ;;  %v514_v31 = vld [vmem:[#allocation5 + $0x860] sm:$0xff]  ;;  %v517_v44 = vld [vmem:[#allocation5 + $0x878] sm:$0xff]  ;;  %v603_v23 = vld [vmem:[#allocation5 + $0xb28] sm:$0xff] }
  0xf2   : > { %2861 = vmatprep.subr.bf16.mxu1 %v2860_v36  ;;  %v532_v36 = vld [vmem:[#allocation5 + $0x8f0] sm:$0xff]  ;;  %v2850_v40 = vpack.c.bf16 %v515_v32, %v514_v31  ;;  %v573_v32 = vld [vmem:[#allocation5 + $0xa38] sm:$0xff] }
  0xf3   : > { %2831 = vmatpush3.bf16.msra.mxu0 %v2830_v43  ;;  %v2852_v42 = vpack.c.bf16 %v533_v37, %v532_v36  ;;  %v516_v43 = vld [vmem:[#allocation5 + $0x870] sm:$0xff]  ;;  %v590_v36 = vld [vmem:[#allocation5 + $0xac0] sm:$0xff]  ;;  %v591_v37 = vld [vmem:[#allocation5 + $0xac8] sm:$0xff] }
  0xf4   : > { %2833 = vmatprep.subr.bf16.mxu0 %v2832_v46  ;;  %v2884_v46 = vpack.c.bf16 %v565_v39, %v564_v38  ;;  %v2854_v52 = vpack.c.bf16 %v517_v44, %v516_v43  ;;  %v572_v31 = vld [vmem:[#allocation5 + $0xa30] sm:$0xff]  ;;  %v622_v38 = vld [vmem:[#allocation5 + $0xbc0] sm:$0xff]  ;;  %v623_v39 = vld [vmem:[#allocation5 + $0xbc8] sm:$0xff] }
  0xf5   : > { %2863 = vmatpush3.bf16.msra.mxu1 %v2862_v45  ;;  %v548_v45 = vld [vmem:[#allocation5 + $0x970] sm:$0xff]  ;;  %v574_v43 = vld [vmem:[#allocation5 + $0xa40] sm:$0xff]  ;;  %v575_v44 = vld [vmem:[#allocation5 + $0xa48] sm:$0xff] }
  0xf6   : > { %2865 = vmatprep.subr.bf16.mxu1 %v2864_v50  ;;  %v614_v50 = vld [vmem:[#allocation5 + $0xb80] sm:$0xff]  ;;  %v2886_v53 = vpack.c.bf16 %v549_v47, %v548_v45  ;;  %v607_v47 = vld [vmem:[#allocation5 + $0xb48] sm:$0xff] }
  0xf7   : > { %2835 = vmatpush3.bf16.msra.mxu0 %v2834_v56  ;;  %v567_v56 = vld [vmem:[#allocation5 + $0xa08] sm:$0xff]  ;;  %v606_v45 = vld [vmem:[#allocation5 + $0xb40] sm:$0xff] }
  0xf8   : > { %2837 = vmatprep.subr.bf16.mxu0 %v2836_v58  ;;  %v2920_v58 = vpack.c.bf16 %v615_v51, %v614_v50  ;;  %v2890_v1 = vpack.c.bf16 %v567_v56, %v566_v55  ;;  %v624_v50 = vld [vmem:[#allocation5 + $0xbd0] sm:$0xff]  ;;  %v625_v51 = vld [vmem:[#allocation5 + $0xbd8] sm:$0xff] }
  0xf9   : > { %2867 = vmatpush3.bf16.msra.mxu1 %v2866_v57  ;;  %v598_v57 = vld [vmem:[#allocation5 + $0xb00] sm:$0xff]  ;;  %v576_v55 = vld [vmem:[#allocation5 + $0xa50] sm:$0xff]  ;;  %v577_v56 = vld [vmem:[#allocation5 + $0xa58] sm:$0xff] }
  0xfa   : > { %2869 = vmatprep.subr.bf16.mxu1 %v2868_v62  ;;  %v616_v62 = vld [vmem:[#allocation5 + $0xb90] sm:$0xff]  ;;  %v2922_v3 = vpack.c.bf16 %v599_v59, %v598_v57  ;;  %v609_v59 = vld [vmem:[#allocation5 + $0xb58] sm:$0xff] }
  0xfb   : > { %2839 = vmatpush3.bf16.msra.mxu0 %v2838_v4  ;;  %v2892_v4 = vpack.c.bf16 %v585_v61, %v584_v60  ;;  %v2924_v8 = vpack.c.bf16 %v617_v63, %v616_v62  ;;  %v608_v57 = vld [vmem:[#allocation5 + $0xb50] sm:$0xff]  ;;  %v594_v60 = vld [vmem:[#allocation5 + $0xae0] sm:$0xff]  ;;  %v595_v61 = vld [vmem:[#allocation5 + $0xae8] sm:$0xff] }
  0xfc   : > { %2841 = vmatprep.subr.bf16.mxu0 %v2840_v6  ;;  %v569_v6 = vld [vmem:[#allocation5 + $0xa18] sm:$0xff]  ;;  %v626_v62 = vld [vmem:[#allocation5 + $0xbe0] sm:$0xff]  ;;  %v627_v63 = vld [vmem:[#allocation5 + $0xbe8] sm:$0xff] }
  0xfd   : > { %2871 = vmatpush3.bf16.msra.mxu1 %v2870_v5  ;;  %v568_v5 = vld [vmem:[#allocation5 + $0xa10] sm:$0xff] }
  0xfe   : > { %2873 = vmatprep.subr.bf16.mxu1 %v2872_v10  ;;  %v586_v10 = vld [vmem:[#allocation5 + $0xaa0] sm:$0xff]  ;;  %v2894_v15 = vpack.c.bf16 %v569_v6, %v568_v5  ;;  %v2944_v6 = vpack.c.bf16 %v627_v63, %v626_v62  ;;  %v684_v62 = vld [vmem:[#allocation5 + $0xdb0] sm:$0xff]  ;;  %v685_v63 = vld [vmem:[#allocation5 + $0xdb8] sm:$0xff] }
  0xff   : > { %2843 = vmatpush3.bf16.msra.mxu0 %v2842_v16  ;;  %v237_v16 = vld [vmem:[%s3499_s29 + $0xb8] sm:$0xff]  ;;  %v610_v5 = vld [vmem:[#allocation5 + $0xb60] sm:$0xff] }
 0x100   : > { %2845 = vmatprep.subr.bf16.mxu0 %v2844_v18  ;;  %v2896_v18 = vpack.c.bf16 %v587_v11, %v586_v10  ;;  %v628_v10 = vld [vmem:[#allocation5 + $0xbf0] sm:$0xff]  ;;  %v629_v11 = vld [vmem:[#allocation5 + $0xbf8] sm:$0xff] }
 0x101   : > { %2875 = vmatpush3.bf16.msra.mxu1 %v2874_v17  ;;  %v2926_v17 = vpack.c.bf16 %v601_v9, %v600_v7  ;;  %v611_v7 = vld [vmem:[#allocation5 + $0xb68] sm:$0xff]  ;;  %v597_v9 = vld [vmem:[#allocation5 + $0xaf8] sm:$0xff] }
 0x102   : > { %2877 = vmatprep.subr.bf16.mxu1 %v2876_v22  ;;  %v2928_v22 = vpack.c.bf16 %v619_v13, %v618_v12  ;;  %v2946_v13 = vpack.c.bf16 %v611_v7, %v610_v5  ;;  %v668_v5 = vld [vmem:[#allocation5 + $0xd30] sm:$0xff]  ;;  %v669_v7 = vld [vmem:[#allocation5 + $0xd38] sm:$0xff] }
 0x103   : > { %2847 = vmatpush3.bf16.msra.mxu0 %v2846_v28  ;;  %v2898_v28 = vpack.c.bf16 %v571_v20, %v570_v19  ;;  %v613_v19 = vld [vmem:[#allocation5 + $0xb78] sm:$0xff]  ;;  %v646_v20 = vld [vmem:[#allocation5 + $0xc80] sm:$0xff] }
 0x104   : > { %2849 = vmatprep.subr.bf16.mxu0 %v2848_v30  ;;  %v2900_v30 = vpack.c.bf16 %v589_v25, %v588_v24 }
 0x105   : > { %2879 = vmatpush3.bf16.msra.mxu1 %v2878_v29  ;;  %v2930_v29 = vpack.c.bf16 %v603_v23, %v602_v21  ;;  %v647_v21 = vld [vmem:[#allocation5 + $0xc88] sm:$0xff] }
 0x106   : > { %2881 = vmatprep.subr.bf16.mxu1 %v2880_v34  ;;  %v2932_v34 = vpack.c.bf16 %v621_v27, %v620_v26  ;;  %v679_v23 = vld [vmem:[#allocation5 + $0xd88] sm:$0xff]  ;;  %v2952_v26 = vpack.c.bf16 %v647_v21, %v646_v20  ;;  %v630_v27 = vld [vmem:[#allocation5 + $0xc00] sm:$0xff]  ;;  %v656_v20 = vld [vmem:[#allocation5 + $0xcd0] sm:$0xff] }
 0x107   : > { %2851 = vmatpush3.bf16.msra.mxu0 %v2850_v40  ;;  %v2902_v40 = vpack.c.bf16 %v573_v32, %v572_v31  ;;  %v663_v31 = vld [vmem:[#allocation5 + $0xd08] sm:$0xff]  ;;  %v648_v32 = vld [vmem:[#allocation5 + $0xc90] sm:$0xff]  ;;  %v657_v21 = vld [vmem:[#allocation5 + $0xcd8] sm:$0xff] }
 0x108   : > { %2853 = vmatprep.subr.bf16.mxu0 %v2852_v42  ;;  %v2904_v42 = vpack.c.bf16 %v591_v37, %v590_v36  ;;  %v234_v36 = vld [vmem:[%s3499_s29 + $0xa0] sm:$0xff] }
 0x109   : > { %2883 = vmatpush3.bf16.msra.mxu1 %v2882_v41  ;;  %v2934_v41 = vpack.c.bf16 %v605_v35, %v604_v33  ;;  %v649_v33 = vld [vmem:[#allocation5 + $0xc98] sm:$0xff] }
 0x10a   : > { %2885 = vmatprep.subr.bf16.mxu1 %v2884_v46  ;;  %v2936_v46 = vpack.c.bf16 %v623_v39, %v622_v38  ;;  %v681_v35 = vld [vmem:[#allocation5 + $0xd98] sm:$0xff]  ;;  %v236_v38 = vld [vmem:[%s3499_s29 + $0xb0] sm:$0xff] }
 0x10b   : > { %2855 = vmatpush3.bf16.msra.mxu0 %v2854_v52  ;;  %v2906_v52 = vpack.c.bf16 %v575_v44, %v574_v43  ;;  %v664_v43 = vld [vmem:[#allocation5 + $0xd10] sm:$0xff] }
 0x10c   : > { %2889 = vmatprep.subr.bf16.mxu0 %v2888_v54  ;;  %v2908_v54 = vpack.c.bf16 %v593_v49, %v592_v48  ;;  %v682_v48 = vld [vmem:[#allocation5 + $0xda0] sm:$0xff]  ;;  %v683_v49 = vld [vmem:[#allocation5 + $0xda8] sm:$0xff] }
 0x10d   : > { %2887 = vmatpush3.bf16.msra.mxu1 %v2886_v53  ;;  %v2938_v53 = vpack.c.bf16 %v607_v47, %v606_v45  ;;  %v665_v45 = vld [vmem:[#allocation5 + $0xd18] sm:$0xff]  ;;  %v651_v47 = vld [vmem:[#allocation5 + $0xca8] sm:$0xff] }
 0x10e   : > { %2921 = vmatprep.subr.bf16.mxu1 %v2920_v58  ;;  %1390 = vmatmul.mubr.f32.vlgmr.msra.gmra.mrb[8].mxu0 %v230_v0  ;;  %v2940_v58 = vpack.c.bf16 %v625_v51, %v624_v50  ;;  %v2910_v0 = vpack.c.bf16 %v577_v56, %v576_v55  ;;  %v239_v50 = vld [vmem:[%s3499_s29 + $0xc8] sm:$0xff]  ;;  %v634_v55 = vld [vmem:[#allocation5 + $0xc20] sm:$0xff] }
 0x10f   : > { %2891 = vmatpush3.bf16.msra.mxu0 %v2890_v1  ;;  %1529 = vmatprep.mubr.f32.mxu0 %v235_v14  ;;  %v2942_v1 = vpack.c.bf16 %v609_v59, %v608_v57  ;;  %v635_v56 = vld [vmem:[#allocation5 + $0xc28] sm:$0xff]  ;;  %v666_v57 = vld [vmem:[#allocation5 + $0xd20] sm:$0xff] }
 0x110   : > { %1460 = vmatmul.mubr.f32.vlgmr.msra.gmra.mrb[8].mxu1 %v232_v2  ;;  %2893 = vmatprep.subr.bf16.mxu0 %v2892_v4  ;;  %v2912_v2 = vpack.c.bf16 %v595_v61, %v594_v60  ;;  %v579_v4 = vld [vmem:[#allocation5 + $0xa68] sm:$0xff]  ;;  %v652_v60 = vld [vmem:[#allocation5 + $0xcb0] sm:$0xff]  ;;  %v653_v61 = vld [vmem:[#allocation5 + $0xcb8] sm:$0xff] }
 0x111   : > { %2923 = vmatpush3.bf16.msra.mxu1 %v2922_v3  ;;  %1599 = vmatprep.mubr.f32.mxu1 %v237_v16  ;;  %v578_v3 = vld [vmem:[#allocation5 + $0xa60] sm:$0xff]  ;;  %v581_v16 = vld [vmem:[#allocation5 + $0xa78] sm:$0xff]  ;;  %v667_v59 = vld [vmem:[#allocation5 + $0xd28] sm:$0xff] }
 0x112   : > { %2925 = vmatprep.subr.bf16.mxu1 %v2924_v8  ;;  %v596_v8 = vld [vmem:[#allocation5 + $0xaf0] sm:$0xff]  ;;  %v2914_v12 = vpack.c.bf16 %v579_v4, %v578_v3  ;;  %v637_v4 = vld [vmem:[#allocation5 + $0xc38] sm:$0xff] }
 0x113   : > { %2895 = vmatpush3.bf16.msra.mxu0 %v2894_v15  ;;  %v2916_v14 = vpack.c.bf16 %v597_v9, %v596_v8  ;;  %v580_v15 = vld [vmem:[#allocation5 + $0xa70] sm:$0xff]  ;;  %v654_v8 = vld [vmem:[#allocation5 + $0xcc0] sm:$0xff]  ;;  %v655_v9 = vld [vmem:[#allocation5 + $0xcc8] sm:$0xff] }
 0x114   : > { %2897 = vmatprep.subr.bf16.mxu0 %v2896_v18  ;;  %v2948_v18 = vpack.c.bf16 %v629_v11, %v628_v10  ;;  %v2918_v24 = vpack.c.bf16 %v581_v16, %v580_v15  ;;  %v636_v3 = vld [vmem:[#allocation5 + $0xc30] sm:$0xff]  ;;  %v686_v10 = vld [vmem:[#allocation5 + $0xdc0] sm:$0xff]  ;;  %v687_v11 = vld [vmem:[#allocation5 + $0xdc8] sm:$0xff] }
 0x115   : > { %2927 = vmatpush3.bf16.msra.mxu1 %v2926_v17  ;;  %v612_v17 = vld [vmem:[#allocation5 + $0xb70] sm:$0xff]  ;;  %v638_v15 = vld [vmem:[#allocation5 + $0xc40] sm:$0xff]  ;;  %v639_v16 = vld [vmem:[#allocation5 + $0xc48] sm:$0xff] }
 0x116   : > { %2929 = vmatprep.subr.bf16.mxu1 %v2928_v22  ;;  %v678_v22 = vld [vmem:[#allocation5 + $0xd80] sm:$0xff]  ;;  %v2950_v25 = vpack.c.bf16 %v613_v19, %v612_v17  ;;  %v671_v19 = vld [vmem:[#allocation5 + $0xd48] sm:$0xff] }
 0x117   : > { %2899 = vmatpush3.bf16.msra.mxu0 %v2898_v28  ;;  %v631_v28 = vld [vmem:[#allocation5 + $0xc08] sm:$0xff]  ;;  %v670_v17 = vld [vmem:[#allocation5 + $0xd40] sm:$0xff] }
 0x118   : > { %2901 = vmatprep.subr.bf16.mxu0 %v2900_v30  ;;  %v2984_v30 = vpack.c.bf16 %v679_v23, %v678_v22  ;;  %v2954_v37 = vpack.c.bf16 %v631_v28, %v630_v27  ;;  %v688_v22 = vld [vmem:[#allocation5 + $0xdd0] sm:$0xff]  ;;  %v689_v23 = vld [vmem:[#allocation5 + $0xdd8] sm:$0xff] }
 0x119   : > { %2931 = vmatpush3.bf16.msra.mxu1 %v2930_v29  ;;  %v662_v29 = vld [vmem:[#allocation5 + $0xd00] sm:$0xff]  ;;  %v640_v27 = vld [vmem:[#allocation5 + $0xc50] sm:$0xff]  ;;  %v641_v28 = vld [vmem:[#allocation5 + $0xc58] sm:$0xff] }
 0x11a   : > { %2933 = vmatprep.subr.bf16.mxu1 %v2932_v34  ;;  %v680_v34 = vld [vmem:[#allocation5 + $0xd90] sm:$0xff]  ;;  %v2986_v39 = vpack.c.bf16 %v663_v31, %v662_v29  ;;  %v673_v31 = vld [vmem:[#allocation5 + $0xd58] sm:$0xff] }
 0x11b   : > { %2903 = vmatpush3.bf16.msra.mxu0 %v2902_v40  ;;  %v2956_v40 = vpack.c.bf16 %v649_v33, %v648_v32  ;;  %v2988_v44 = vpack.c.bf16 %v681_v35, %v680_v34  ;;  %v672_v29 = vld [vmem:[#allocation5 + $0xd50] sm:$0xff]  ;;  %v658_v32 = vld [vmem:[#allocation5 + $0xce0] sm:$0xff]  ;;  %v659_v33 = vld [vmem:[#allocation5 + $0xce8] sm:$0xff] }
 0x11c   : > { %2905 = vmatprep.subr.bf16.mxu0 %v2904_v42  ;;  %v633_v42 = vld [vmem:[#allocation5 + $0xc18] sm:$0xff]  ;;  %v690_v34 = vld [vmem:[#allocation5 + $0xde0] sm:$0xff]  ;;  %v691_v35 = vld [vmem:[#allocation5 + $0xde8] sm:$0xff] }
 0x11d   : > { %2935 = vmatpush3.bf16.msra.mxu1 %v2934_v41  ;;  %v632_v41 = vld [vmem:[#allocation5 + $0xc10] sm:$0xff] }
 0x11e   : > { %2937 = vmatprep.subr.bf16.mxu1 %v2936_v46  ;;  %v650_v46 = vld [vmem:[#allocation5 + $0xca0] sm:$0xff]  ;;  %v2958_v51 = vpack.c.bf16 %v633_v42, %v632_v41  ;;  %v3008_v42 = vpack.c.bf16 %v691_v35, %v690_v34  ;;  %v748_v34 = vld [vmem:[#allocation5 + $0xfb0] sm:$0xff]  ;;  %v749_v35 = vld [vmem:[#allocation5 + $0xfb8] sm:$0xff] }
 0x11f   : > { %2907 = vmatpush3.bf16.msra.mxu0 %v2906_v52  ;;  %v241_v52 = vld [vmem:[%s3499_s29 + $0xd8] sm:$0xff]  ;;  %v674_v41 = vld [vmem:[#allocation5 + $0xd60] sm:$0xff] }
 0x120   : > { %2909 = vmatprep.subr.bf16.mxu0 %v2908_v54  ;;  %v2960_v54 = vpack.c.bf16 %v651_v47, %v650_v46  ;;  %v692_v46 = vld [vmem:[#allocation5 + $0xdf0] sm:$0xff]  ;;  %v693_v47 = vld [vmem:[#allocation5 + $0xdf8] sm:$0xff] }
 0x121   : > { %2939 = vmatpush3.bf16.msra.mxu1 %v2938_v53  ;;  %v2990_v53 = vpack.c.bf16 %v665_v45, %v664_v43  ;;  %v675_v43 = vld [vmem:[#allocation5 + $0xd68] sm:$0xff]  ;;  %v661_v45 = vld [vmem:[#allocation5 + $0xcf8] sm:$0xff] }
 0x122   : > { %2941 = vmatprep.subr.bf16.mxu1 %v2940_v58  ;;  %v2992_v58 = vpack.c.bf16 %v683_v49, %v682_v48  ;;  %v3010_v49 = vpack.c.bf16 %v675_v43, %v674_v41  ;;  %v732_v41 = vld [vmem:[#allocation5 + $0xf30] sm:$0xff]  ;;  %v733_v43 = vld [vmem:[#allocation5 + $0xf38] sm:$0xff] }
 0x123   : > { %2911 = vmatpush3.bf16.msra.mxu0 %v2910_v0  ;;  %v2962_v0 = vpack.c.bf16 %v635_v56, %v634_v55  ;;  %v677_v55 = vld [vmem:[#allocation5 + $0xd78] sm:$0xff]  ;;  %v710_v56 = vld [vmem:[#allocation5 + $0xe80] sm:$0xff] }
 0x124   : > { %2913 = vmatprep.subr.bf16.mxu0 %v2912_v2  ;;  %v2964_v2 = vpack.c.bf16 %v653_v61, %v652_v60 }
 0x125   : > { %2943 = vmatpush3.bf16.msra.mxu1 %v2942_v1  ;;  %v2994_v1 = vpack.c.bf16 %v667_v59, %v666_v57  ;;  %v711_v57 = vld [vmem:[#allocation5 + $0xe88] sm:$0xff] }
 0x126   : > { %2945 = vmatprep.subr.bf16.mxu1 %v2944_v6  ;;  %v2996_v6 = vpack.c.bf16 %v685_v63, %v684_v62  ;;  %v743_v59 = vld [vmem:[#allocation5 + $0xf88] sm:$0xff]  ;;  %v3016_v62 = vpack.c.bf16 %v711_v57, %v710_v56  ;;  %v694_v63 = vld [vmem:[#allocation5 + $0xe00] sm:$0xff]  ;;  %v720_v56 = vld [vmem:[#allocation5 + $0xed0] sm:$0xff] }
 0x127   : > { %2915 = vmatpush3.bf16.msra.mxu0 %v2914_v12  ;;  %v2966_v12 = vpack.c.bf16 %v637_v4, %v636_v3  ;;  %v727_v3 = vld [vmem:[#allocation5 + $0xf08] sm:$0xff]  ;;  %v712_v4 = vld [vmem:[#allocation5 + $0xe90] sm:$0xff]  ;;  %v721_v57 = vld [vmem:[#allocation5 + $0xed8] sm:$0xff] }
 0x128   : > { %2917 = vmatprep.subr.bf16.mxu0 %v2916_v14  ;;  %v2968_v14 = vpack.c.bf16 %v655_v9, %v654_v8  ;;  %v238_v8 = vld [vmem:[%s3499_s29 + $0xc0] sm:$0xff] }
 0x129   : > { %2947 = vmatpush3.bf16.msra.mxu1 %v2946_v13  ;;  %v2998_v13 = vpack.c.bf16 %v669_v7, %v668_v5  ;;  %v713_v5 = vld [vmem:[#allocation5 + $0xe98] sm:$0xff] }
 0x12a   : > { %2949 = vmatprep.subr.bf16.mxu1 %v2948_v18  ;;  %v3000_v18 = vpack.c.bf16 %v687_v11, %v686_v10  ;;  %v745_v7 = vld [vmem:[#allocation5 + $0xf98] sm:$0xff]  ;;  %v240_v10 = vld [vmem:[%s3499_s29 + $0xd0] sm:$0xff] }
 0x12b   : > { %2919 = vmatpush3.bf16.msra.mxu0 %v2918_v24  ;;  %v2970_v24 = vpack.c.bf16 %v639_v16, %v638_v15  ;;  %v728_v15 = vld [vmem:[#allocation5 + $0xf10] sm:$0xff] }
 0x12c   : > { %2953 = vmatprep.subr.bf16.mxu0 %v2952_v26  ;;  %v2972_v26 = vpack.c.bf16 %v657_v21, %v656_v20  ;;  %v746_v20 = vld [vmem:[#allocation5 + $0xfa0] sm:$0xff]  ;;  %v747_v21 = vld [vmem:[#allocation5 + $0xfa8] sm:$0xff] }
 0x12d   : > { %2951 = vmatpush3.bf16.msra.mxu1 %v2950_v25  ;;  %v3002_v25 = vpack.c.bf16 %v671_v19, %v670_v17  ;;  %v729_v17 = vld [vmem:[#allocation5 + $0xf18] sm:$0xff]  ;;  %v715_v19 = vld [vmem:[#allocation5 + $0xea8] sm:$0xff] }
 0x12e   : > { %2985 = vmatprep.subr.bf16.mxu1 %v2984_v30  ;;  %1530 = vmatmul.mubr.f32.vlgmr.msra.gmra.mrb[10].mxu0 %v234_v36  ;;  %v3004_v30 = vpack.c.bf16 %v689_v23, %v688_v22  ;;  %v2974_v36 = vpack.c.bf16 %v641_v28, %v640_v27  ;;  %v243_v22 = vld [vmem:[%s3499_s29 + $0xe8] sm:$0xff]  ;;  %v698_v27 = vld [vmem:[#allocation5 + $0xe20] sm:$0xff] }
 0x12f   : > { %2955 = vmatpush3.bf16.msra.mxu0 %v2954_v37  ;;  %1669 = vmatprep.mubr.f32.mxu0 %v239_v50  ;;  %v3006_v37 = vpack.c.bf16 %v673_v31, %v672_v29  ;;  %v699_v28 = vld [vmem:[#allocation5 + $0xe28] sm:$0xff]  ;;  %v730_v29 = vld [vmem:[#allocation5 + $0xf20] sm:$0xff] }
 0x130   : > { %1600 = vmatmul.mubr.f32.vlgmr.msra.gmra.mrb[10].mxu1 %v236_v38  ;;  %2957 = vmatprep.subr.bf16.mxu0 %v2956_v40  ;;  %v2976_v38 = vpack.c.bf16 %v659_v33, %v658_v32  ;;  %v643_v40 = vld [vmem:[#allocation5 + $0xc68] sm:$0xff]  ;;  %v716_v32 = vld [vmem:[#allocation5 + $0xeb0] sm:$0xff]  ;;  %v717_v33 = vld [vmem:[#allocation5 + $0xeb8] sm:$0xff] }
 0x131   : > { %2987 = vmatpush3.bf16.msra.mxu1 %v2986_v39  ;;  %1739 = vmatprep.mubr.f32.mxu1 %v241_v52  ;;  %v642_v39 = vld [vmem:[#allocation5 + $0xc60] sm:$0xff]  ;;  %v645_v52 = vld [vmem:[#allocation5 + $0xc78] sm:$0xff]  ;;  %v731_v31 = vld [vmem:[#allocation5 + $0xf28] sm:$0xff] }
 0x132   : > { %2989 = vmatprep.subr.bf16.mxu1 %v2988_v44  ;;  %v660_v44 = vld [vmem:[#allocation5 + $0xcf0] sm:$0xff]  ;;  %v2978_v48 = vpack.c.bf16 %v643_v40, %v642_v39  ;;  %v701_v40 = vld [vmem:[#allocation5 + $0xe38] sm:$0xff] }
 0x133   : > { %2959 = vmatpush3.bf16.msra.mxu0 %v2958_v51  ;;  %v2980_v50 = vpack.c.bf16 %v661_v45, %v660_v44  ;;  %v644_v51 = vld [vmem:[#allocation5 + $0xc70] sm:$0xff]  ;;  %v718_v44 = vld [vmem:[#allocation5 + $0xec0] sm:$0xff]  ;;  %v719_v45 = vld [vmem:[#allocation5 + $0xec8] sm:$0xff] }
 0x134   : > { %2961 = vmatprep.subr.bf16.mxu0 %v2960_v54  ;;  %v3012_v54 = vpack.c.bf16 %v693_v47, %v692_v46  ;;  %v2982_v60 = vpack.c.bf16 %v645_v52, %v644_v51  ;;  %v700_v39 = vld [vmem:[#allocation5 + $0xe30] sm:$0xff]  ;;  %v750_v46 = vld [vmem:[#allocation5 + $0xfc0] sm:$0xff]  ;;  %v751_v47 = vld [vmem:[#allocation5 + $0xfc8] sm:$0xff] }
 0x135   : > { %2991 = vmatpush3.bf16.msra.mxu1 %v2990_v53  ;;  %v676_v53 = vld [vmem:[#allocation5 + $0xd70] sm:$0xff]  ;;  %v702_v51 = vld [vmem:[#allocation5 + $0xe40] sm:$0xff]  ;;  %v703_v52 = vld [vmem:[#allocation5 + $0xe48] sm:$0xff] }
 0x136   : > { %2993 = vmatprep.subr.bf16.mxu1 %v2992_v58  ;;  %v742_v58 = vld [vmem:[#allocation5 + $0xf80] sm:$0xff]  ;;  %v3014_v61 = vpack.c.bf16 %v677_v55, %v676_v53  ;;  %v735_v55 = vld [vmem:[#allocation5 + $0xf48] sm:$0xff] }
 0x137   : > { %2963 = vmatpush3.bf16.msra.mxu0 %v2962_v0  ;;  %v695_v0 = vld [vmem:[#allocation5 + $0xe08] sm:$0xff]  ;;  %v734_v53 = vld [vmem:[#allocation5 + $0xf40] sm:$0xff] }
 0x138   : > { %2965 = vmatprep.subr.bf16.mxu0 %v2964_v2  ;;  %v3048_v2 = vpack.c.bf16 %v743_v59, %v742_v58  ;;  %v3018_v9 = vpack.c.bf16 %v695_v0, %v694_v63  ;;  %v752_v58 = vld [vmem:[#allocation5 + $0xfd0] sm:$0xff]  ;;  %v753_v59 = vld [vmem:[#allocation5 + $0xfd8] sm:$0xff] }
 0x139   : > { %2995 = vmatpush3.bf16.msra.mxu1 %v2994_v1  ;;  %v726_v1 = vld [vmem:[#allocation5 + $0xf00] sm:$0xff]  ;;  %v704_v63 = vld [vmem:[#allocation5 + $0xe50] sm:$0xff]  ;;  %v705_v0 = vld [vmem:[#allocation5 + $0xe58] sm:$0xff] }
 0x13a   : > { %2997 = vmatprep.subr.bf16.mxu1 %v2996_v6  ;;  %v744_v6 = vld [vmem:[#allocation5 + $0xf90] sm:$0xff]  ;;  %v3050_v11 = vpack.c.bf16 %v727_v3, %v726_v1  ;;  %v737_v3 = vld [vmem:[#allocation5 + $0xf58] sm:$0xff] }
 0x13b   : > { %2967 = vmatpush3.bf16.msra.mxu0 %v2966_v12  ;;  %v3020_v12 = vpack.c.bf16 %v713_v5, %v712_v4  ;;  %v3052_v16 = vpack.c.bf16 %v745_v7, %v744_v6  ;;  %v736_v1 = vld [vmem:[#allocation5 + $0xf50] sm:$0xff]  ;;  %v722_v4 = vld [vmem:[#allocation5 + $0xee0] sm:$0xff]  ;;  %v723_v5 = vld [vmem:[#allocation5 + $0xee8] sm:$0xff] }
 0x13c   : > { %2969 = vmatprep.subr.bf16.mxu0 %v2968_v14  ;;  %v697_v14 = vld [vmem:[#allocation5 + $0xe18] sm:$0xff]  ;;  %v754_v6 = vld [vmem:[#allocation5 + $0xfe0] sm:$0xff]  ;;  %v755_v7 = vld [vmem:[#allocation5 + $0xfe8] sm:$0xff] }
 0x13d   : > { %2999 = vmatpush3.bf16.msra.mxu1 %v2998_v13  ;;  %v696_v13 = vld [vmem:[#allocation5 + $0xe10] sm:$0xff] }
 0x13e   : > { %3001 = vmatprep.subr.bf16.mxu1 %v3000_v18  ;;  %v714_v18 = vld [vmem:[#allocation5 + $0xea0] sm:$0xff]  ;;  %v3022_v23 = vpack.c.bf16 %v697_v14, %v696_v13 }
 0x13f   : > { %2971 = vmatpush3.bf16.msra.mxu0 %v2970_v24  ;;  %v245_v24 = vld [vmem:[%s3499_s29 + $0xf8] sm:$0xff]  ;;  %v738_v13 = vld [vmem:[#allocation5 + $0xf60] sm:$0xff] }
 0x140   : > { %2973 = vmatprep.subr.bf16.mxu0 %v2972_v26  ;;  %v3024_v26 = vpack.c.bf16 %v715_v19, %v714_v18  ;;  %v725_v18 = vld [vmem:[#allocation5 + $0xef8] sm:$0xff]  ;;  %v2002_v19 = vld [vmem:[#allocation7] ss:$0 sm:$0xff] }
 0x141   : > { %3003 = vmatpush3.bf16.msra.mxu1 %v3002_v25  ;;  %v3054_v25 = vpack.c.bf16 %v729_v17, %v728_v15  ;;  %v3072_v15 = vpack.c.bf16 %v755_v7, %v754_v6  ;;  %v724_v17 = vld [vmem:[#allocation5 + $0xef0] sm:$0xff] }
 0x142   : > { %3005 = vmatprep.subr.bf16.mxu1 %v3004_v30  ;;  %v3056_v30 = vpack.c.bf16 %v747_v21, %v746_v20 }
 0x143   : > { %2975 = vmatpush3.bf16.msra.mxu0 %v2974_v36  ;;  %v3026_v36 = vpack.c.bf16 %v699_v28, %v698_v27 }
 0x144   : > { %2977 = vmatprep.subr.bf16.mxu0 %v2976_v38  ;;  %v3028_v38 = vpack.c.bf16 %v717_v33, %v716_v32 }
 0x145   : > { %3007 = vmatpush3.bf16.msra.mxu1 %v3006_v37  ;;  %v3058_v37 = vpack.c.bf16 %v731_v31, %v730_v29  ;;  %v3044_v29 = vpack.c.bf16 %v725_v18, %v724_v17  ;;  %v709_v31 = vld [vmem:[#allocation5 + $0xe78] sm:$0xff] }
 0x146   : > { %3009 = vmatprep.subr.bf16.mxu1 %v3008_v42  ;;  %v3060_v42 = vpack.c.bf16 %v749_v35, %v748_v34  ;;  %v740_v34 = vld [vmem:[#allocation5 + $0xf70] sm:$0xff]  ;;  %v741_v35 = vld [vmem:[#allocation5 + $0xf78] sm:$0xff] }
 0x147   : > { %2979 = vmatpush3.bf16.msra.mxu0 %v2978_v48  ;;  %v3030_v48 = vpack.c.bf16 %v701_v40, %v700_v39  ;;  %v242_v39 = vld [vmem:[%s3499_s29 + $0xe0] sm:$0xff]  ;;  %v244_v40 = vld [vmem:[%s3499_s29 + $0xf0] sm:$0xff] }
 0x148   : > { %2981 = vmatprep.subr.bf16.mxu0 %v2980_v50  ;;  %v3032_v50 = vpack.c.bf16 %v719_v45, %v718_v44 }
 0x149   : > { %3011 = vmatpush3.bf16.msra.mxu1 %v3010_v49  ;;  %v3062_v49 = vpack.c.bf16 %v733_v43, %v732_v41 }
 0x14a   : > { %3013 = vmatprep.subr.bf16.mxu1 %v3012_v54  ;;  %v3064_v54 = vpack.c.bf16 %v751_v47, %v750_v46 }
 0x14b   : > { %2983 = vmatpush3.bf16.msra.mxu0 %v2982_v60  ;;  %v3034_v60 = vpack.c.bf16 %v703_v52, %v702_v51 }
 0x14c   : > { %3017 = vmatprep.subr.bf16.mxu0 %v3016_v62  ;;  %v3036_v62 = vpack.c.bf16 %v721_v57, %v720_v56 }
 0x14d   : > { %3015 = vmatpush3.bf16.msra.mxu1 %v3014_v61  ;;  %v3066_v61 = vpack.c.bf16 %v735_v55, %v734_v53 }
 0x14e   : > { %3049 = vmatprep.subr.bf16.mxu1 %v3048_v2  ;;  %1670 = vmatmul.mubr.f32.vlgmr.msra.gmra.mrb[12].mxu0 %v238_v8  ;;  %v3068_v2 = vpack.c.bf16 %v753_v59, %v752_v58  ;;  %v3038_v8 = vpack.c.bf16 %v705_v0, %v704_v63 }
 0x14f   : > { %3019 = vmatpush3.bf16.msra.mxu0 %v3018_v9  ;;  %1809 = vmatprep.mubr.f32.mxu0 %v243_v22  ;;  %v3070_v9 = vpack.c.bf16 %v737_v3, %v736_v1  ;;  %v756_v22 = vld [vmem:[#allocation5 + $0xff0] sm:$0xff] }
 0x150   : > { %1740 = vmatmul.mubr.f32.vlgmr.msra.gmra.mrb[12].mxu1 %v240_v10  ;;  %3021 = vmatprep.subr.bf16.mxu0 %v3020_v12  ;;  %v3040_v10 = vpack.c.bf16 %v723_v5, %v722_v4  ;;  %v707_v12 = vld [vmem:[#allocation5 + $0xe68] sm:$0xff] }
 0x151   : > { %3051 = vmatpush3.bf16.msra.mxu1 %v3050_v11  ;;  %1879 = vmatprep.mubr.f32.mxu1 %v245_v24  ;;  %v706_v11 = vld [vmem:[#allocation5 + $0xe60] sm:$0xff] }
 0x152   : > { %3053 = vmatprep.subr.bf16.mxu1 %v3052_v16  ;;  %v739_v16 = vld [vmem:[#allocation5 + $0xf68] sm:$0xff] }
 0x153   : > { %3023 = vmatpush3.bf16.msra.mxu0 %v3022_v23  ;;  %v757_v23 = vld [vmem:[#allocation5 + $0xff8] sm:$0xff]  ;;  %v3074_v28 = vpack.c.bf16 %v739_v16, %v738_v13 }
 0x154   : > { %3025 = vmatprep.subr.bf16.mxu0 %v3024_v26  ;;  %v3042_v26 = vpack.c.bf16 %v707_v12, %v706_v11  ;;  %v3076_v33 = vpack.c.bf16 %v757_v23, %v756_v22 }
 0x155   : > { %3055 = vmatpush3.bf16.msra.mxu1 %v3054_v25 }
 0x156   : > { %3057 = vmatprep.subr.bf16.mxu1 %v3056_v30  ;;  %v708_v30 = vld [vmem:[#allocation5 + $0xe70] sm:$0xff] }
 0x157   : > { %3027 = vmatpush3.bf16.msra.mxu0 %v3026_v36 }
 0x158   : > { %3029 = vmatprep.subr.bf16.mxu0 %v3028_v38  ;;  %v3078_v38 = vpack.c.bf16 %v741_v35, %v740_v34 }
 0x159   : > { %3059 = vmatpush3.bf16.msra.mxu1 %v3058_v37  ;;  %v3046_v37 = vpack.c.bf16 %v709_v31, %v708_v30 }
 0x15a   : > { %3061 = vmatprep.subr.bf16.mxu1 %v3060_v42 }
 0x15b   : > { %3031 = vmatpush3.bf16.msra.mxu0 %v3030_v48 }
 0x15c   : > { %3033 = vmatprep.subr.bf16.mxu0 %v3032_v50 }
 0x15d   : > { %3063 = vmatpush3.bf16.msra.mxu1 %v3062_v49 }
 0x15e   : > { %3065 = vmatprep.subr.bf16.mxu1 %v3064_v54 }
 0x15f   : > { %3035 = vmatpush3.bf16.msra.mxu0 %v3034_v60 }
 0x160   : > { %3037 = vmatprep.subr.bf16.mxu0 %v3036_v62 }
 0x161   : > { %3067 = vmatpush3.bf16.msra.mxu1 %v3066_v61  ;;  %v2040_v14 = vpop.f32.mrb[0].mxu0 }
 0x162   : > { %3069 = vmatprep.subr.bf16.mxu1 %v3068_v2  ;;  %v2041_v20 = vpop.f32.mrb[1].mxu0 }
 0x163   : > { %v2075_v21 = vpop.f32.mrb[0].mxu1  ;;  %v2042_v24 = vadd.f32 %v2041_v20, %v2040_v14  ;;  %3039 = vmatpush3.bf16.msra.mxu0 %v3038_v8 }
 0x164   : > { %v2076_v25 = vpop.f32.mrb[1].mxu1  ;;  %3041 = vmatprep.subr.bf16.mxu0 %v3040_v10 }
 0x165   : > { %v2077_v27 = vadd.f32 %v2076_v25, %v2075_v21  ;;  %3071 = vmatpush3.bf16.msra.mxu1 %v3070_v9  ;;  %v832_v32 = vadd.f32 %v2042_v24, %v2002_v19 }
 0x166   : > { %3073 = vmatprep.subr.bf16.mxu1 %v3072_v15 }
 0x167   : > { %v902_v36 = vadd.f32 %v2077_v27, %v832_v32  ;;  %3043 = vmatpush3.bf16.msra.mxu0 %v3042_v26 }
 0x168   : > { %3045 = vmatprep.subr.bf16.mxu0 %v3044_v29 }
 0x169   : > { %3075 = vmatpush3.bf16.msra.mxu1 %v3074_v28 }
 0x16a   : > { %3077 = vmatprep.subr.bf16.mxu1 %v3076_v33 }
 0x16b   : > { %3047 = vmatpush3.bf16.msra.mxu0 %v3046_v37 }
 0x16d   : > { %3079 = vmatpush3.bf16.msra.mxu1 %v3078_v38 }
 0x16e   : > { %1810 = vmatmul.mubr.f32.vlgmr.msra.gmra.mrb[14].mxu0 %v242_v39 }
 0x170   : > { %1880 = vmatmul.mubr.f32.vlgmr.msra.gmra.mrb[14].mxu1 %v244_v40 }
 0x181   : > { %v2110_v41 = vpop.f32.mrb[2].mxu0 }
 0x182   : > { %v2111_v42 = vpop.f32.mrb[3].mxu0 }
 0x183   : > { %v2145_v43 = vpop.f32.mrb[2].mxu1  ;;  %v2112_v44 = vadd.f32 %v2111_v42, %v2110_v41 }
 0x184   : > { %v2146_v45 = vpop.f32.mrb[3].mxu1 }
 0x185   : > { %v2147_v46 = vadd.f32 %v2146_v45, %v2145_v43  ;;  %v972_v47 = vadd.f32 %v2112_v44, %v902_v36 }
 0x187   : > { %v1042_v48 = vadd.f32 %v2147_v46, %v972_v47 }
 0x1a1   : > { %v2180_v49 = vpop.f32.mrb[4].mxu0 }
 0x1a2   : > { %v2181_v50 = vpop.f32.mrb[5].mxu0 }
 0x1a3   : > { %v2215_v51 = vpop.f32.mrb[4].mxu1  ;;  %v2182_v52 = vadd.f32 %v2181_v50, %v2180_v49 }
 0x1a4   : > { %v2216_v53 = vpop.f32.mrb[5].mxu1 }
 0x1a5   : > { %v2217_v54 = vadd.f32 %v2216_v53, %v2215_v51  ;;  %v1112_v55 = vadd.f32 %v2182_v52, %v1042_v48 }
 0x1a7   : > { %v1182_v56 = vadd.f32 %v2217_v54, %v1112_v55 }
 0x1c1   : > { %v2250_v57 = vpop.f32.mrb[6].mxu0 }
 0x1c2   : > { %v2251_v58 = vpop.f32.mrb[7].mxu0 }
 0x1c3   : > { %v2285_v59 = vpop.f32.mrb[6].mxu1  ;;  %v2252_v60 = vadd.f32 %v2251_v58, %v2250_v57 }
 0x1c4   : > { %v2286_v61 = vpop.f32.mrb[7].mxu1 }
 0x1c5   : > { %v2287_v62 = vadd.f32 %v2286_v61, %v2285_v59  ;;  %v1252_v63 = vadd.f32 %v2252_v60, %v1182_v56 }
 0x1c7   : > { %v1322_v0 = vadd.f32 %v2287_v62, %v1252_v63 }
 0x1e1   : > { %v2320_v1 = vpop.f32.mrb[8].mxu0 }
 0x1e2   : > { %v2321_v2 = vpop.f32.mrb[9].mxu0 }
 0x1e3   : > { %v2355_v3 = vpop.f32.mrb[8].mxu1  ;;  %v2322_v4 = vadd.f32 %v2321_v2, %v2320_v1 }
 0x1e4   : > { %v2356_v5 = vpop.f32.mrb[9].mxu1 }
 0x1e5   : > { %v2357_v6 = vadd.f32 %v2356_v5, %v2355_v3  ;;  %v1392_v7 = vadd.f32 %v2322_v4, %v1322_v0 }
 0x1e7   : > { %v1462_v8 = vadd.f32 %v2357_v6, %v1392_v7 }
 0x201   : > { %v2390_v9 = vpop.f32.mrb[10].mxu0 }
 0x202   : > { %v2391_v10 = vpop.f32.mrb[11].mxu0 }
 0x203   : > { %v2425_v11 = vpop.f32.mrb[10].mxu1  ;;  %v2392_v12 = vadd.f32 %v2391_v10, %v2390_v9 }
 0x204   : > { %v2426_v13 = vpop.f32.mrb[11].mxu1 }
 0x205   : > { %v2427_v14 = vadd.f32 %v2426_v13, %v2425_v11  ;;  %v1532_v15 = vadd.f32 %v2392_v12, %v1462_v8 }
 0x207   : > { %v1602_v16 = vadd.f32 %v2427_v14, %v1532_v15 }
 0x221   : > { %v2460_v17 = vpop.f32.mrb[12].mxu0 }
 0x222   : > { %v2461_v18 = vpop.f32.mrb[13].mxu0 }
 0x223   : > { %v2495_v19 = vpop.f32.mrb[12].mxu1  ;;  %v2462_v20 = vadd.f32 %v2461_v18, %v2460_v17 }
 0x224   : > { %v2496_v21 = vpop.f32.mrb[13].mxu1 }
 0x225   : > { %v2497_v22 = vadd.f32 %v2496_v21, %v2495_v19  ;;  %v1672_v23 = vadd.f32 %v2462_v20, %v1602_v16 }
 0x227   : > { %v1742_v24 = vadd.f32 %v2497_v22, %v1672_v23 }
 0x241   : > { %v2530_v25 = vpop.f32.mrb[14].mxu0 }
 0x242   : > { %v2531_v26 = vpop.f32.mrb[15].mxu0 }
 0x243   : > { %v2565_v27 = vpop.f32.mrb[14].mxu1  ;;  %v2532_v28 = vadd.f32 %v2531_v26, %v2530_v25 }
 0x244   : > { %v2566_v29 = vpop.f32.mrb[15].mxu1 }
 0x245   : > { %v2567_v30 = vadd.f32 %v2566_v29, %v2565_v27  ;;  %v1812_v31 = vadd.f32 %v2532_v28, %v1742_v24 }
 0x247   : > { %v1882_v32 = vadd.f32 %v2567_v30, %v1812_v31 }
 0x249   : > { %1885 = vst [vmem:[%s213_s21] sm:$0xff] %v1882_v32 }
 0x24a   : > { %3248 = shalt.err (!%p3245_p7)
}
 0x24b   : > { %s3249_s10 = scalar_lea.hbm %s3546_s30, 128  ;;  %s3253_s17 = scalar_lea.hbm %s3592_s3, 512 }
 0x24c   : > { %p3250_p9 = scmp.ne.s32.totalorder %s3546_s30, %s3249_s10  ;;  %p3254_p0 = scmp.lt.u32.totalorder %s3546_s30, %s3592_s3 }
 0x24d   : > { %p3255_p10 = scmp.lt.u32.totalorder %s3253_s17, %s3249_s10  ;;  %p3257_p1 = scmp.lt.u32.totalorder %s3249_s10, %s3546_s30 }
 0x24e   : > { %p3251_p12 = pnand %p3250_p9, %p3446_p4 }
 0x24f   : > { %p3256_p11 = por %p3255_p10, %p3254_p0 }
 0x250   : > { %p3252_p5 = pneg %p3251_p12 }
 0x251   : > { %p3258_p2 = por %p3257_p1, %p3256_p11 }
 0x253   : > { %p3259_p6 = pnand %p3258_p2, %p3252_p5 }
 0x255   : > { %3262 = shalt.err (!%p3259_p6)
}
 0x256   : > { %3090 = dma.vmem_to_hbm [thread:$0]  (%p3446_p4), %s3548_s26, 128, %s3546_s30, %s1887_s4  }
 0x257 PF: > { %p3112_p8 = scmp.ge.s32.totalorder %s3305_s15, 2  ;;  %s1912_s29 = sand.u32 1, %s3293_s12  }
 0x258   : > { %p3607_p13 = scmp.ne.s32.totalorder %s3597_s19, 0  ;;  %s1913_s18 = scalar_lea.sflag [#allocation4], %s1912_s29 }
 0x25a   : > { %p3104_p3 = pnand %p3112_p8, %p3607_p13 }
 0x25c   : > { %3288 = dma.done.wait (!%p3104_p3), %s1913_s18, 128  }
 0x25d   : > { %3290 = vsyncadd (!%p3104_p3), %s1913_s18, 4294967168  ;;  %p17_p7 = scmp.ge.s32.totalorder %s3436_s5, 6   ;;  %s3608_s12 = smov %s3297_s13 }
 0x25e   : > { %s3609_s13 = smov %s3301_s14  ;;  %s3610_s14 = smov %s3452_s8 }
 0x25f   : > { %s3611_s15 = smov %s3436_s5  ;;  %19 = sbr.rel (!%p17_p7) target bundleno = 6 (0x6), region = 85 }
 0x266   :  { %1918 = vsyncpa [#allocation3], 1 }
 0x267   :  { %1920 = vsyncpa [#allocation3 + $0x1], 1 }
 0x268   :  { %1921 = vsyncpa [#allocation6], 1 }
 0x269   :  { %1922 = vsyncpa [#allocation4], 1 }
 0x26a   :  { %1924 = vsyncpa [#allocation4 + $0x1], 1 }

// kernel: tpu_custom_call.1
= control target key start
LH: loop header
LB: loop body
LE: loop exit
PB: predicated region body
PF: predicated region fallthrough
CT: control target
= control target key end

     0   :  { %8 = vsyncpa [#allocation3], 0  ;;  %s3589_s0 = inlined_call_operand.hbm [shape: f32[32,4096], index: 0, kind: input, shape index: {}]   ;;  %s3590_s1 = inlined_call_operand.hbm [shape: f32[4096,128], index: 1, kind: input, shape index: {}]   ;;  %s3591_s2 = inlined_call_operand.hbm [shape: f32[1,128], index: 2, kind: input, shape index: {}]   ;;  %s3592_s3 = inlined_call_operand.hbm [shape: f32[32,128], index: 3, kind: output, shape index: {}]  }
   0x1   :  { %10 = vsyncpa [#allocation3 + $0x1], 0 }
   0x2   :  { %11 = vsyncpa [#allocation6], 0 }
   0x3   :  { %12 = vsyncpa [#allocation4], 0 }
   0x4   :  { %14 = vsyncpa [#allocation4 + $0x1], 0  ;;  %s3333_s12 = smov 0   ;;  %s3335_s13 = smov 0  }
   0x5   :  { %s3337_s14 = smov 0   ;;  %s3339_s15 = smov 0  }
   0x6 LB: > { %s3354_s16 = sadd.s32 4294967295, %s3305_s15   ;;  %s1989_s17 = sadd.s32 4294967294, %s3305_s15   ;;  %s3305_s15 = sphi %s3339_s15, %s3611_s15   ;;  %s3301_s14 = sphi %s3337_s14, %s3610_s14   ;;  %s3297_s13 = sphi %s3335_s13, %s3609_s13   ;;  %s3293_s12 = sphi %s3333_s12, %s3608_s12  }
   0x7   : > { %p40_p0 = scmp.ne.s32.totalorder %s3297_s13, %s3293_s12  ;;  %p3593_p1 = scmp.eq.s32.totalorder %s3354_s16, 0 }
   0x8   : > { %p112_p3 = scmp.eq.s32.totalorder %s1989_s17, 3  ;;  %p1990_p5 = scmp.ge.s32.totalorder %s3305_s15, 1 }
   0x9   : > { %p3363_p4 = por %p3593_p1, %p40_p0  ;;  %p119_p7 = scmp.lt.s32.totalorder %s3305_s15, 5 }
   0xa   : > { %p3368_p6 = por %p112_p3, %p40_p0  ;;  %s3307_s21 = smov [#allocation5]  }
   0xb   : > { %s3596_s18 = scalar_select %p3363_p4, 1, 0 }
   0xc   : > { %s3597_s19 = scalar_select %p3368_p6, 1, 0 }
   0xd   : > { %p3373_p8 = pnand %p1990_p5, %p119_p7  ;;  %s131_s22 = sshll.u32 %s3307_s21, 4  ;;  %s132_s22 = int_to_ptr.vmem [resolvable:$true] %s131_s22 }
   0xe   : > { %s3308_s24 = smov [#allocation7]   ;;  %s3149_s28 = scalar_lea.hbm %s3590_s1, 65536 }
   0xf   : > { %s3598_s20 = scalar_select %p3373_p8, 1, 0 }
  0x10   : > { %p3092_p9 = pneg %p3373_p8  ;;  %s145_s25 = sshll.u32 %s3308_s24, 4  ;;  %s3385_s25 = int_to_ptr.vmem [resolvable:$true] %s145_s25 }
  0x11   : > { %p3150_p11 = scmp.ne.s32.totalorder %s3590_s1, %s3149_s28  ;;  %p3156_p3 = scmp.lt.u32.totalorder %s3149_s28, %s3590_s1 }
  0x12   : > { %p3381_p10 = pnand %p3092_p9, %p3593_p1 }
  0x14   : > { %p3151_p12 = pneg %p3381_p10 }
  0x16   : > { %p3152_p13 = pnand %p3151_p12, %p3150_p11 }
  0x18   : > { %p3153_p0 = pneg %p3152_p13 }
  0x1a   : > { %p3158_p5 = pnand %p3156_p3, %p3153_p0 }
  0x1c   : > { %3161 = shalt.err (!%p3158_p5)
}
  0x1d   : > { %s3162_s6 = scalar_lea.vmem %s132_s22, 65536  ;;  %p3170_p2 = scmp.lt.s32.totalorder %s132_s22, %s132_s22 }
  0x1e   : > { %p3163_p7 = scmp.ne.s32.totalorder %s132_s22, %s3162_s6  ;;  %p3171_p6 = scmp.lt.s32.totalorder %s3162_s6, %s3162_s6 }
  0x20   : > { %p3165_p9 = pnand %p3163_p7, %p3151_p12  ;;  %p3172_p4 = por %p3171_p6, %p3170_p2 }
  0x22   : > { %p3166_p1 = pneg %p3165_p9 }
  0x24   : > { %p3173_p8 = pnand %p3172_p4, %p3166_p1 }
  0x26   : > { %3176 = shalt.err (!%p3173_p8)
}
  0x27   : > { %s3309_s7 = smov 128   ;;  %s3310_s8 = smov 8  }
  0x28   : > { %3095 = dma.hbm_to_vmem [thread:$0]  (!%p3381_p10), %s3590_s1, 65536, %s132_s22, [#allocation6], %s3309_s7, %s3309_s7, %s3310_s8  }
  0x29   : > { %s3177_s21 = scalar_lea.hbm %s3591_s2, 16 }
  0x2a   : > { %p3178_p11 = scmp.ne.s32.totalorder %s3591_s2, %s3177_s21  ;;  %p3184_p4 = scmp.lt.u32.totalorder %s3177_s21, %s3591_s2 }
  0x2c   : > { %p3180_p1 = pnand %p3178_p11, %p3151_p12 }
  0x2e   : > { %p3181_p2 = pneg %p3180_p1 }
  0x30   : > { %p3186_p6 = pnand %p3184_p4, %p3181_p2 }
  0x32   : > { %3189 = shalt.err (!%p3186_p6)
}
  0x33   : > { %s3190_s22 = scalar_lea.vmem %s3385_s25, 16  ;;  %s3197_s29 = scalar_lea.vmem %s3385_s25, 32 }
  0x34   : > { %p3191_p8 = scmp.ne.s32.totalorder %s3385_s25, %s3190_s22  ;;  %p3198_p3 = scmp.lt.s32.totalorder %s3385_s25, %s3385_s25 }
  0x35   : > { %p3199_p5 = scmp.lt.s32.totalorder %s3197_s29, %s3190_s22 }
  0x36   : > { %p3193_p13 = pnand %p3191_p8, %p3151_p12 }
  0x37   : > { %p3200_p7 = por %p3199_p5, %p3198_p3 }
  0x38   : > { %p3194_p0 = pneg %p3193_p13 }
  0x3a   : > { %p3201_p9 = pnand %p3200_p7, %p3194_p0 }
  0x3c   : > { %3204 = shalt.err (!%p3201_p9)
}
  0x3d   : > { %3098 = dma.hbm_to_vmem [thread:$0]  (!%p3381_p10), %s3591_s2, 16, %s3385_s25, [#allocation6]  }
  0x3e   : > { %s3436_s5 = sadd.s32 1, %s3305_s15   ;;  %s27_s23 = sadd.s32 1, %s3301_s14 }
  0x3f   : > { %s24_s6 = ssub.s32 %s3305_s15, %s3436_s5  ;;  %p34_p12 = scmp.ne.s32.totalorder %s3301_s14, %s3297_s13 }
  0x40   : > { %p25_p11 = scmp.eq.s32.totalorder %s24_s6, 0  ;;  %p35_p1 = scmp.eq.s32.totalorder %s3305_s15, 0 }
  0x41   : > { %p3600_p2 = scmp.eq.s32.totalorder %s3354_s16, 3  ;;  %p3109_p6 = scmp.lt.s32.totalorder %s3305_s15, 4 }
  0x42   : > { %s3452_s8 = scalar_select %p25_p11, %s3301_s14, %s27_s23  }
  0x43   : > { %p3446_p4 = por %p3600_p2, %p34_p12  ;;  %p36_p8 = por %p35_p1, %p34_p12 }
  0x44   : > { %s156_s9 = sand.u32 1, %s3301_s14   ;;  %s2007_s25 = sshll.u32 %s3305_s15, 12 }
  0x45   : > { %s1994_s10 = sshll.u32 %s156_s9, 8  ;;  %s3459_s21 = scalar_lea.hbm %s3589_s0, %s2007_s25 }
  0x46   : > { %s160_s24 = scalar_lea.vmem [#allocation2], %s1994_s10  ;;  %p3463_p10 = pnand %p3109_p6, %p36_p8 }
  0x47   : > { %s168_s26 = sshll.u32 %s160_s24, 4  ;;  %s157_s28 = scalar_lea.sflag [#allocation3], %s156_s9  ;;  %s3461_s26 = int_to_ptr.vmem [resolvable:$true] %s168_s26 }
  0x48   : > { %s3205_s22 = scalar_lea.hbm %s3459_s21, 4096  ;;  %p3207_p0 = pneg %p3463_p10 }
  0x49   : > { %p3206_p13 = scmp.ne.s32.totalorder %s3459_s21, %s3205_s22  ;;  %s3210_s4 = scalar_lea.hbm %s3589_s0, 16384 }
  0x4a   : > { %p3211_p7 = scmp.lt.u32.totalorder %s3459_s21, %s3589_s0  ;;  %p3212_p9 = scmp.lt.u32.totalorder %s3210_s4, %s3205_s22 }
  0x4b   : > { %p3208_p3 = pnand %p3207_p0, %p3206_p13  ;;  %p3214_p11 = scmp.lt.u32.totalorder %s3205_s22, %s3459_s21 }
  0x4c   : > { %p3213_p12 = por %p3212_p9, %p3211_p7 }
  0x4d   : > { %p3209_p5 = pneg %p3208_p3 }
  0x4e   : > { %p3215_p1 = por %p3214_p11, %p3213_p12 }
  0x50   : > { %p3216_p2 = pnand %p3215_p1, %p3209_p5 }
  0x52   : > { %3219 = shalt.err (!%p3216_p2)
}
  0x53   : > { %s3220_s9 = scalar_lea.vmem %s3461_s26, 4096  ;;  %s3311_s10 = smov [#allocation2]  }
  0x54   : > { %p3221_p6 = scmp.ne.s32.totalorder %s3461_s26, %s3220_s9  ;;  %s3225_s25 = sshll.u32 %s3311_s10, 4  ;;  %s3226_s25 = int_to_ptr.vmem [resolvable:$false] %s3225_s25 }
  0x55   : > { %s3227_s11 = scalar_lea.vmem %s3226_s25, 8192  ;;  %p3228_p3 = scmp.lt.s32.totalorder %s3461_s26, %s3226_s25 }
  0x56   : > { %p3223_p8 = pnand %p3221_p6, %p3207_p0  ;;  %p3229_p7 = scmp.lt.s32.totalorder %s3227_s11, %s3220_s9 }
  0x58   : > { %p3224_p13 = pneg %p3223_p8  ;;  %p3230_p9 = por %p3229_p7, %p3228_p3 }
  0x5a   : > { %p3231_p12 = pnand %p3230_p9, %p3224_p13 }
  0x5c   : > { %3234 = shalt.err (!%p3231_p12)
}
  0x5d   : > { %3102 = dma.hbm_to_vmem [thread:$0]  (!%p3463_p10), %s3459_s21, 4096, %s3461_s26, %s157_s28  }
  0x5e   : > { %p3603_p5 = scmp.ne.s32.totalorder %s3598_s20, 0 }
  0x5f   : > { %s3495_s17 = sand.u32 (!%p3603_p5), 1, %s3297_s13   ;;  %p3604_p0 = scmp.ne.s32.totalorder (!%p3603_p5), %s3596_s18, 0 }
  0x60   : > { %177 = sbr.rel (%p3603_p5) target bundleno = 599 (0x257), region = 32  ;;  %s1998_s24 = sshll.u32 (!%p3603_p5), %s3495_s17, 8 }
  0x61   : > { %s180_s22 = scalar_lea.sflag (!%p3603_p5), [#allocation3], %s3495_s17  ;;  %s3499_s29 = scalar_lea.vmem (!%p3603_p5), [#allocation2], %s1998_s24 }
  0x67   : > { %3280 = dma.done.wait (%p3604_p0), %s180_s22, 4096  }
  0x68   : > { %3282 = vsyncadd (%p3604_p0), %s180_s22, 4294963200  ;;  %p3605_p10 = scmp.eq.s32.totalorder %s3354_s16, 0 }
  0x6a   : > { %3284 = dma.done.wait (%p3605_p10), [#allocation6], 65552   ;;  %p3606_p11 = pmov %p3605_p10 }
  0x6b   : > { %v262_v0 = vld [vmem:[#allocation5 + $0x80] sm:$0xff]  ;;  %v263_v1 = vld [vmem:[#allocation5 + $0x88] sm:$0xff]  ;;  %v264_v11 = vld [vmem:[#allocation5 + $0x90] sm:$0xff]  ;;  %s2001_s18 = sshll.u32 %s3495_s17, 3  ;;  %s2004_s20 = sshll.u32 %s3354_s16, 7 }
  0x6c   : > { %3286 = vsyncadd (%p3606_p11), [#allocation6], 4294901744  ;;  %v246_v2 = vld [vmem:[#allocation5] sm:$0xff]  ;;  %v2568_v3 = vpack.c.bf16 %v263_v1, %v262_v0  ;;  %v247_v4 = vld [vmem:[#allocation5 + $0x8] sm:$0xff]  ;;  %s213_s21 = scalar_lea.vmem [#allocation8], %s2001_s18  ;;  %s3546_s30 = scalar_lea.hbm %s3592_s3, %s2004_s20 }
  0x6d   : > { %v294_v5 = vld [vmem:[#allocation5 + $0x180] sm:$0xff]  ;;  %v295_v6 = vld [vmem:[#allocation5 + $0x188] sm:$0xff]  ;;  %v2570_v7 = vpack.c.bf16 %v247_v4, %v246_v2  ;;  %v265_v13 = vld [vmem:[#allocation5 + $0x98] sm:$0xff]  ;;  %s1900_s26 = sshll.u32 %s213_s21, 4  ;;  %s1887_s4 = scalar_lea.sflag [#allocation4], %s3495_s17  ;;  %s3548_s26 = int_to_ptr.vmem [resolvable:$true] %s1900_s26 }
  0x6e   : > { %v2600_v8 = vpack.c.bf16 %v295_v6, %v294_v5  ;;  %v278_v9 = vld [vmem:[#allocation5 + $0x100] sm:$0xff]  ;;  %v279_v10 = vld [vmem:[#allocation5 + $0x108] sm:$0xff]  ;;  %2569 = vmatprep.subr.bf16.mxu0 %v2568_v3  ;;  %v248_v14 = vld [vmem:[#allocation5 + $0x10] sm:$0xff]  ;;  %v2572_v16 = vpack.c.bf16 %v265_v13, %v264_v11  ;;  %s3235_s23 = scalar_lea.vmem %s3548_s26, 128  ;;  %s3312_s16 = smov [#allocation8]  }
  0x6f   : > { %v2602_v12 = vpack.c.bf16 %v279_v10, %v278_v9  ;;  %v249_v15 = vld [vmem:[#allocation5 + $0x18] sm:$0xff]  ;;  %2571 = vmatpush3.bf16.msra.mxu0 %v2570_v7  ;;  %v296_v18 = vld [vmem:[#allocation5 + $0x190] sm:$0xff]  ;;  %v266_v23 = vld [vmem:[#allocation5 + $0xa0] sm:$0xff]  ;;  %p3236_p1 = scmp.ne.s32.totalorder %s3548_s26, %s3235_s23  ;;  %s3239_s6 = sshll.u32 %s3312_s16, 4  ;;  %s3240_s6 = int_to_ptr.vmem [resolvable:$false] %s3239_s6 }
  0x70   : > { %2601 = vmatprep.subr.bf16.mxu1 %v2600_v8  ;;  %v2574_v17 = vpack.c.bf16 %v249_v15, %v248_v14  ;;  %v297_v19 = vld [vmem:[#allocation5 + $0x198] sm:$0xff]  ;;  %v280_v20 = vld [vmem:[#allocation5 + $0x110] sm:$0xff]  ;;  %v267_v24 = vld [vmem:[#allocation5 + $0xa8] sm:$0xff]  ;;  %2573 = vmatprep.subr.bf16.mxu0 %v2572_v16  ;;  %s3241_s9 = scalar_lea.vmem %s3240_s6, 256  ;;  %p3242_p8 = scmp.lt.s32.totalorder %s3548_s26, %s3240_s6 }
  0x71   : > { %2603 = vmatpush3.bf16.msra.mxu1 %v2602_v12  ;;  %v2604_v21 = vpack.c.bf16 %v297_v19, %v296_v18  ;;  %v281_v22 = vld [vmem:[#allocation5 + $0x118] sm:$0xff]  ;;  %v2576_v26 = vpack.c.bf16 %v267_v24, %v266_v23  ;;  %v250_v27 = vld [vmem:[#allocation5 + $0x20] sm:$0xff]  ;;  %v251_v28 = vld [vmem:[#allocation5 + $0x28] sm:$0xff]  ;;  %p3237_p2 = pnand %p3236_p1, %p3446_p4  ;;  %p3243_p13 = scmp.lt.s32.totalorder %s3241_s9, %s3235_s23 }
  0x72   : > { %v2606_v25 = vpack.c.bf16 %v281_v22, %v280_v20  ;;  %v298_v29 = vld [vmem:[#allocation5 + $0x1a0] sm:$0xff]  ;;  %v299_v30 = vld [vmem:[#allocation5 + $0x1a8] sm:$0xff]  ;;  %v2578_v33 = vpack.c.bf16 %v251_v28, %v250_v27  ;;  %v268_v35 = vld [vmem:[#allocation5 + $0xb0] sm:$0xff] }
  0x73   : > { %2605 = vmatprep.subr.bf16.mxu1 %v2604_v21  ;;  %v282_v31 = vld [vmem:[#allocation5 + $0x120] sm:$0xff]  ;;  %v283_v32 = vld [vmem:[#allocation5 + $0x128] sm:$0xff]  ;;  %2575 = vmatpush3.bf16.msra.mxu0 %v2574_v17  ;;  %v2608_v34 = vpack.c.bf16 %v299_v30, %v298_v29  ;;  %v269_v36 = vld [vmem:[#allocation5 + $0xb8] sm:$0xff]  ;;  %p3238_p6 = pneg %p3237_p2  ;;  %p3244_p3 = por %p3243_p13, %p3242_p8 }
  0x74   : > { %v252_v37 = vld [vmem:[#allocation5 + $0x30] sm:$0xff]  ;;  %2577 = vmatprep.subr.bf16.mxu0 %v2576_v26  ;;  %v2610_v38 = vpack.c.bf16 %v283_v32, %v282_v31  ;;  %v2580_v39 = vpack.c.bf16 %v269_v36, %v268_v35  ;;  %v253_v40 = vld [vmem:[#allocation5 + $0x38] sm:$0xff]  ;;  %v270_v46 = vld [vmem:[#allocation5 + $0xc0] sm:$0xff] }
  0x75   : > { %2607 = vmatpush3.bf16.msra.mxu1 %v2606_v25  ;;  %v300_v41 = vld [vmem:[#allocation5 + $0x1b0] sm:$0xff]  ;;  %v301_v42 = vld [vmem:[#allocation5 + $0x1b8] sm:$0xff]  ;;  %v271_v47 = vld [vmem:[#allocation5 + $0xc8] sm:$0xff]  ;;  %v2582_v48 = vpack.c.bf16 %v253_v40, %v252_v37  ;;  %p3245_p7 = pnand %p3244_p3, %p3238_p6 }
  0x76   : > { %2609 = vmatprep.subr.bf16.mxu1 %v2608_v34  ;;  %v2612_v43 = vpack.c.bf16 %v301_v42, %v300_v41  ;;  %v284_v44 = vld [vmem:[#allocation5 + $0x130] sm:$0xff]  ;;  %v285_v45 = vld [vmem:[#allocation5 + $0x138] sm:$0xff]  ;;  %v302_v49 = vld [vmem:[#allocation5 + $0x1c0] sm:$0xff]  ;;  %v2584_v52 = vpack.c.bf16 %v271_v47, %v270_v46 }
  0x77   : > { %2579 = vmatpush3.bf16.msra.mxu0 %v2578_v33  ;;  %v303_v50 = vld [vmem:[#allocation5 + $0x1c8] sm:$0xff]  ;;  %v2614_v51 = vpack.c.bf16 %v285_v45, %v284_v44  ;;  %v254_v53 = vld [vmem:[#allocation5 + $0x40] sm:$0xff]  ;;  %v272_v58 = vld [vmem:[#allocation5 + $0xd0] sm:$0xff] }
  0x78   : > { %2581 = vmatprep.subr.bf16.mxu0 %v2580_v39  ;;  %v255_v54 = vld [vmem:[#allocation5 + $0x48] sm:$0xff]  ;;  %v286_v55 = vld [vmem:[#allocation5 + $0x140] sm:$0xff]  ;;  %v2616_v56 = vpack.c.bf16 %v303_v50, %v302_v49  ;;  %v273_v59 = vld [vmem:[#allocation5 + $0xd8] sm:$0xff] }
  0x79   : > { %2611 = vmatpush3.bf16.msra.mxu1 %v2610_v38  ;;  %v287_v57 = vld [vmem:[#allocation5 + $0x148] sm:$0xff]  ;;  %v304_v60 = vld [vmem:[#allocation5 + $0x1d0] sm:$0xff]  ;;  %v305_v61 = vld [vmem:[#allocation5 + $0x1d8] sm:$0xff]  ;;  %v2586_v62 = vpack.c.bf16 %v255_v54, %v254_v53  ;;  %v2588_v0 = vpack.c.bf16 %v273_v59, %v272_v58 }
  0x7a   : > { %2613 = vmatprep.subr.bf16.mxu1 %v2612_v43  ;;  %v2618_v63 = vpack.c.bf16 %v287_v57, %v286_v55  ;;  %v256_v1 = vld [vmem:[#allocation5 + $0x50] sm:$0xff]  ;;  %v257_v2 = vld [vmem:[#allocation5 + $0x58] sm:$0xff]  ;;  %v2620_v4 = vpack.c.bf16 %v305_v61, %v304_v60  ;;  %v274_v6 = vld [vmem:[#allocation5 + $0xe0] sm:$0xff] }
  0x7b   : > { %2583 = vmatpush3.bf16.msra.mxu0 %v2582_v48  ;;  %v288_v3 = vld [vmem:[#allocation5 + $0x150] sm:$0xff]  ;;  %v289_v5 = vld [vmem:[#allocation5 + $0x158] sm:$0xff]  ;;  %v275_v7 = vld [vmem:[#allocation5 + $0xe8] sm:$0xff]  ;;  %v2590_v10 = vpack.c.bf16 %v257_v2, %v256_v1 }
  0x7c   : > { %2585 = vmatprep.subr.bf16.mxu0 %v2584_v52  ;;  %v306_v8 = vld [vmem:[#allocation5 + $0x1e0] sm:$0xff]  ;;  %v307_v9 = vld [vmem:[#allocation5 + $0x1e8] sm:$0xff]  ;;  %v2622_v13 = vpack.c.bf16 %v289_v5, %v288_v3  ;;  %v2592_v14 = vpack.c.bf16 %v275_v7, %v274_v6  ;;  %v276_v19 = vld [vmem:[#allocation5 + $0xf0] sm:$0xff] }
  0x7d   : > { %2615 = vmatpush3.bf16.msra.mxu1 %v2614_v51  ;;  %v258_v11 = vld [vmem:[#allocation5 + $0x60] sm:$0xff]  ;;  %v259_v12 = vld [vmem:[#allocation5 + $0x68] sm:$0xff]  ;;  %v2624_v18 = vpack.c.bf16 %v307_v9, %v306_v8  ;;  %v277_v20 = vld [vmem:[#allocation5 + $0xf8] sm:$0xff] }
  0x7e   : > { %2617 = vmatprep.subr.bf16.mxu1 %v2616_v56  ;;  %v290_v15 = vld [vmem:[#allocation5 + $0x160] sm:$0xff]  ;;  %v291_v16 = vld [vmem:[#allocation5 + $0x168] sm:$0xff]  ;;  %v217_v21 = vld [vmem:[%s3499_s29 + $0x18] sm:$0xff]  ;;  %v2594_v24 = vpack.c.bf16 %v259_v12, %v258_v11  ;;  %v2596_v26 = vpack.c.bf16 %v277_v20, %v276_v19 }
  0x7f   : > { %2587 = vmatpush3.bf16.msra.mxu0 %v2586_v62  ;;  %v215_v17 = vld [vmem:[%s3499_s29 + $0x8] sm:$0xff]  ;;  %v308_v22 = vld [vmem:[#allocation5 + $0x1f0] sm:$0xff]  ;;  %v309_v23 = vld [vmem:[#allocation5 + $0x1f8] sm:$0xff]  ;;  %899 = vmatprep.mubr.f32.mxu1 %v217_v21  ;;  %v2626_v25 = vpack.c.bf16 %v291_v16, %v290_v15 }
  0x80   : > { %2589 = vmatprep.subr.bf16.mxu0 %v2588_v0  ;;  %829 = vmatprep.mubr.f32.mxu0 %v215_v17  ;;  %v260_v27 = vld [vmem:[#allocation5 + $0x70] sm:$0xff]  ;;  %v261_v28 = vld [vmem:[#allocation5 + $0x78] sm:$0xff]  ;;  %v2628_v30 = vpack.c.bf16 %v309_v23, %v308_v22  ;;  %v326_v32 = vld [vmem:[#allocation5 + $0x280] sm:$0xff] }
  0x81   : > { %2619 = vmatpush3.bf16.msra.mxu1 %v2618_v63  ;;  %v292_v29 = vld [vmem:[#allocation5 + $0x170] sm:$0xff]  ;;  %v293_v31 = vld [vmem:[#allocation5 + $0x178] sm:$0xff]  ;;  %v327_v33 = vld [vmem:[#allocation5 + $0x288] sm:$0xff]  ;;  %v2598_v36 = vpack.c.bf16 %v261_v28, %v260_v27 }
  0x82   : > { %2621 = vmatprep.subr.bf16.mxu1 %v2620_v4  ;;  %v358_v34 = vld [vmem:[#allocation5 + $0x380] sm:$0xff]  ;;  %v359_v35 = vld [vmem:[#allocation5 + $0x388] sm:$0xff]  ;;  %v2630_v37 = vpack.c.bf16 %v293_v31, %v292_v29  ;;  %v2632_v38 = vpack.c.bf16 %v327_v33, %v326_v32  ;;  %v328_v44 = vld [vmem:[#allocation5 + $0x290] sm:$0xff] }
  0x83   : > { %2591 = vmatpush3.bf16.msra.mxu0 %v2590_v10  ;;  %v310_v39 = vld [vmem:[#allocation5 + $0x200] sm:$0xff]  ;;  %v311_v40 = vld [vmem:[#allocation5 + $0x208] sm:$0xff]  ;;  %v2664_v42 = vpack.c.bf16 %v359_v35, %v358_v34  ;;  %v329_v45 = vld [vmem:[#allocation5 + $0x298] sm:$0xff] }
  0x84   : > { %2593 = vmatprep.subr.bf16.mxu0 %v2592_v14  ;;  %v342_v41 = vld [vmem:[#allocation5 + $0x300] sm:$0xff]  ;;  %v343_v43 = vld [vmem:[#allocation5 + $0x308] sm:$0xff]  ;;  %v360_v46 = vld [vmem:[#allocation5 + $0x390] sm:$0xff]  ;;  %v2634_v49 = vpack.c.bf16 %v311_v40, %v310_v39  ;;  %v2636_v52 = vpack.c.bf16 %v329_v45, %v328_v44 }
  0x85   : > { %2623 = vmatpush3.bf16.msra.mxu1 %v2622_v13  ;;  %v361_v47 = vld [vmem:[#allocation5 + $0x398] sm:$0xff]  ;;  %v214_v48 = vld [vmem:[%s3499_s29] sm:$0xff]  ;;  %v216_v50 = vld [vmem:[%s3499_s29 + $0x10] sm:$0xff]  ;;  %v2666_v51 = vpack.c.bf16 %v343_v43, %v342_v41 }
  0x86   : > { %2625 = vmatprep.subr.bf16.mxu1 %v2624_v18  ;;  %v312_v53 = vld [vmem:[#allocation5 + $0x210] sm:$0xff]  ;;  %v313_v54 = vld [vmem:[#allocation5 + $0x218] sm:$0xff]  ;;  %v2668_v56 = vpack.c.bf16 %v361_v47, %v360_v46  ;;  %v330_v58 = vld [vmem:[#allocation5 + $0x2a0] sm:$0xff] }
  0x87   : > { %2595 = vmatpush3.bf16.msra.mxu0 %v2594_v24  ;;  %v344_v55 = vld [vmem:[#allocation5 + $0x310] sm:$0xff]  ;;  %v345_v57 = vld [vmem:[#allocation5 + $0x318] sm:$0xff]  ;;  %v331_v59 = vld [vmem:[#allocation5 + $0x2a8] sm:$0xff]  ;;  %v2638_v62 = vpack.c.bf16 %v313_v54, %v312_v53 }
  0x88   : > { %2597 = vmatprep.subr.bf16.mxu0 %v2596_v26  ;;  %v362_v60 = vld [vmem:[#allocation5 + $0x3a0] sm:$0xff]  ;;  %v363_v61 = vld [vmem:[#allocation5 + $0x3a8] sm:$0xff]  ;;  %v2670_v63 = vpack.c.bf16 %v345_v57, %v344_v55  ;;  %v2640_v0 = vpack.c.bf16 %v331_v59, %v330_v58  ;;  %v332_v6 = vld [vmem:[#allocation5 + $0x2b0] sm:$0xff] }
  0x89   : > { %2627 = vmatpush3.bf16.msra.mxu1 %v2626_v25  ;;  %v314_v1 = vld [vmem:[#allocation5 + $0x220] sm:$0xff]  ;;  %v315_v2 = vld [vmem:[#allocation5 + $0x228] sm:$0xff]  ;;  %v2672_v4 = vpack.c.bf16 %v363_v61, %v362_v60  ;;  %v333_v7 = vld [vmem:[#allocation5 + $0x2b8] sm:$0xff] }
  0x8a   : > { %2629 = vmatprep.subr.bf16.mxu1 %v2628_v30  ;;  %v346_v3 = vld [vmem:[#allocation5 + $0x320] sm:$0xff]  ;;  %v347_v5 = vld [vmem:[#allocation5 + $0x328] sm:$0xff]  ;;  %v364_v8 = vld [vmem:[#allocation5 + $0x3b0] sm:$0xff]  ;;  %v2642_v10 = vpack.c.bf16 %v315_v2, %v314_v1  ;;  %v2644_v12 = vpack.c.bf16 %v333_v7, %v332_v6 }
  0x8b   : > { %2599 = vmatpush3.bf16.msra.mxu0 %v2598_v36  ;;  %v365_v9 = vld [vmem:[#allocation5 + $0x3b8] sm:$0xff]  ;;  %v2674_v11 = vpack.c.bf16 %v347_v5, %v346_v3  ;;  %v316_v13 = vld [vmem:[#allocation5 + $0x230] sm:$0xff]  ;;  %v334_v18 = vld [vmem:[#allocation5 + $0x2c0] sm:$0xff] }
  0x8c   : > { %2633 = vmatprep.subr.bf16.mxu0 %v2632_v38  ;;  %v317_v14 = vld [vmem:[#allocation5 + $0x238] sm:$0xff]  ;;  %v348_v15 = vld [vmem:[#allocation5 + $0x330] sm:$0xff]  ;;  %v2676_v16 = vpack.c.bf16 %v365_v9, %v364_v8  ;;  %v335_v19 = vld [vmem:[#allocation5 + $0x2c8] sm:$0xff] }
  0x8d   : > { %2631 = vmatpush3.bf16.msra.mxu1 %v2630_v37  ;;  %v349_v17 = vld [vmem:[#allocation5 + $0x338] sm:$0xff]  ;;  %v366_v20 = vld [vmem:[#allocation5 + $0x3c0] sm:$0xff]  ;;  %v367_v21 = vld [vmem:[#allocation5 + $0x3c8] sm:$0xff]  ;;  %v2646_v22 = vpack.c.bf16 %v317_v14, %v316_v13  ;;  %v2648_v26 = vpack.c.bf16 %v335_v19, %v334_v18 }
  0x8e   : > { %2665 = vmatprep.subr.bf16.mxu1 %v2664_v42  ;;  %830 = vmatmul.mubr.f32.vlgmr.msra.gmra.mrb[0].mxu0 %v214_v48  ;;  %v318_v23 = vld [vmem:[#allocation5 + $0x240] sm:$0xff]  ;;  %v219_v24 = vld [vmem:[%s3499_s29 + $0x28] sm:$0xff]  ;;  %v2678_v25 = vpack.c.bf16 %v349_v17, %v348_v15  ;;  %v221_v29 = vld [vmem:[%s3499_s29 + $0x38] sm:$0xff]  ;;  %v2680_v30 = vpack.c.bf16 %v367_v21, %v366_v20 }
  0x8f   : > { %2635 = vmatpush3.bf16.msra.mxu0 %v2634_v49  ;;  %v319_v27 = vld [vmem:[#allocation5 + $0x248] sm:$0xff]  ;;  %v350_v28 = vld [vmem:[#allocation5 + $0x340] sm:$0xff]  ;;  %v336_v32 = vld [vmem:[#allocation5 + $0x2d0] sm:$0xff]  ;;  %969 = vmatprep.mubr.f32.mxu0 %v219_v24 }
  0x90   : > { %900 = vmatmul.mubr.f32.vlgmr.msra.gmra.mrb[0].mxu1 %v216_v50  ;;  %2637 = vmatprep.subr.bf16.mxu0 %v2636_v52  ;;  %v351_v31 = vld [vmem:[#allocation5 + $0x348] sm:$0xff]  ;;  %v337_v33 = vld [vmem:[#allocation5 + $0x2d8] sm:$0xff]  ;;  %v368_v34 = vld [vmem:[#allocation5 + $0x3d0] sm:$0xff]  ;;  %v2650_v36 = vpack.c.bf16 %v319_v27, %v318_v23 }
  0x91   : > { %2667 = vmatpush3.bf16.msra.mxu1 %v2666_v51  ;;  %v369_v35 = vld [vmem:[#allocation5 + $0x3d8] sm:$0xff]  ;;  %1039 = vmatprep.mubr.f32.mxu1 %v221_v29  ;;  %v2682_v37 = vpack.c.bf16 %v351_v31, %v350_v28  ;;  %v2652_v38 = vpack.c.bf16 %v337_v33, %v336_v32  ;;  %v320_v39 = vld [vmem:[#allocation5 + $0x250] sm:$0xff]  ;;  %v338_v44 = vld [vmem:[#allocation5 + $0x2e0] sm:$0xff] }
  0x92   : > { %2669 = vmatprep.subr.bf16.mxu1 %v2668_v56  ;;  %v321_v40 = vld [vmem:[#allocation5 + $0x258] sm:$0xff]  ;;  %v352_v41 = vld [vmem:[#allocation5 + $0x350] sm:$0xff]  ;;  %v2684_v42 = vpack.c.bf16 %v369_v35, %v368_v34  ;;  %v339_v45 = vld [vmem:[#allocation5 + $0x2e8] sm:$0xff] }
  0x93   : > { %2639 = vmatpush3.bf16.msra.mxu0 %v2638_v62  ;;  %v353_v43 = vld [vmem:[#allocation5 + $0x358] sm:$0xff]  ;;  %v370_v46 = vld [vmem:[#allocation5 + $0x3e0] sm:$0xff]  ;;  %v371_v47 = vld [vmem:[#allocation5 + $0x3e8] sm:$0xff]  ;;  %v2654_v48 = vpack.c.bf16 %v321_v40, %v320_v39  ;;  %v2656_v50 = vpack.c.bf16 %v339_v45, %v338_v44 }
  0x94   : > { %2641 = vmatprep.subr.bf16.mxu0 %v2640_v0  ;;  %v2686_v49 = vpack.c.bf16 %v353_v43, %v352_v41  ;;  %v322_v51 = vld [vmem:[#allocation5 + $0x260] sm:$0xff]  ;;  %v323_v52 = vld [vmem:[#allocation5 + $0x268] sm:$0xff]  ;;  %v2688_v54 = vpack.c.bf16 %v371_v47, %v370_v46  ;;  %v340_v56 = vld [vmem:[#allocation5 + $0x2f0] sm:$0xff] }
  0x95   : > { %2671 = vmatpush3.bf16.msra.mxu1 %v2670_v63  ;;  %v354_v53 = vld [vmem:[#allocation5 + $0x360] sm:$0xff]  ;;  %v355_v55 = vld [vmem:[#allocation5 + $0x368] sm:$0xff]  ;;  %v341_v57 = vld [vmem:[#allocation5 + $0x2f8] sm:$0xff]  ;;  %v2658_v60 = vpack.c.bf16 %v323_v52, %v322_v51 }
  0x96   : > { %2673 = vmatprep.subr.bf16.mxu1 %v2672_v4  ;;  %v372_v58 = vld [vmem:[#allocation5 + $0x3f0] sm:$0xff]  ;;  %v373_v59 = vld [vmem:[#allocation5 + $0x3f8] sm:$0xff]  ;;  %v2690_v61 = vpack.c.bf16 %v355_v55, %v354_v53  ;;  %v2660_v62 = vpack.c.bf16 %v341_v57, %v340_v56  ;;  %v390_v4 = vld [vmem:[#allocation5 + $0x480] sm:$0xff] }
  0x97   : > { %2643 = vmatpush3.bf16.msra.mxu0 %v2642_v10  ;;  %v324_v63 = vld [vmem:[#allocation5 + $0x270] sm:$0xff]  ;;  %v325_v0 = vld [vmem:[#allocation5 + $0x278] sm:$0xff]  ;;  %v2692_v2 = vpack.c.bf16 %v373_v59, %v372_v58  ;;  %v391_v5 = vld [vmem:[#allocation5 + $0x488] sm:$0xff] }
  0x98   : > { %2645 = vmatprep.subr.bf16.mxu0 %v2644_v12  ;;  %v356_v1 = vld [vmem:[#allocation5 + $0x370] sm:$0xff]  ;;  %v357_v3 = vld [vmem:[#allocation5 + $0x378] sm:$0xff]  ;;  %v422_v6 = vld [vmem:[#allocation5 + $0x580] sm:$0xff]  ;;  %v2662_v8 = vpack.c.bf16 %v325_v0, %v324_v63  ;;  %v2696_v10 = vpack.c.bf16 %v391_v5, %v390_v4 }
  0x99   : > { %2675 = vmatpush3.bf16.msra.mxu1 %v2674_v11  ;;  %v423_v7 = vld [vmem:[#allocation5 + $0x588] sm:$0xff]  ;;  %v2694_v9 = vpack.c.bf16 %v357_v3, %v356_v1  ;;  %v374_v11 = vld [vmem:[#allocation5 + $0x400] sm:$0xff]  ;;  %v393_v17 = vld [vmem:[#allocation5 + $0x498] sm:$0xff] }
  0x9a   : > { %2677 = vmatprep.subr.bf16.mxu1 %v2676_v16  ;;  %v375_v12 = vld [vmem:[#allocation5 + $0x408] sm:$0xff]  ;;  %v406_v13 = vld [vmem:[#allocation5 + $0x500] sm:$0xff]  ;;  %v2728_v14 = vpack.c.bf16 %v423_v7, %v422_v6  ;;  %v392_v16 = vld [vmem:[#allocation5 + $0x490] sm:$0xff] }
  0x9b   : > { %2647 = vmatpush3.bf16.msra.mxu0 %v2646_v22  ;;  %v407_v15 = vld [vmem:[#allocation5 + $0x508] sm:$0xff]  ;;  %v424_v18 = vld [vmem:[#allocation5 + $0x590] sm:$0xff]  ;;  %v425_v19 = vld [vmem:[#allocation5 + $0x598] sm:$0xff]  ;;  %v2698_v21 = vpack.c.bf16 %v375_v12, %v374_v11  ;;  %v2700_v24 = vpack.c.bf16 %v393_v17, %v392_v16 }
  0x9c   : > { %2649 = vmatprep.subr.bf16.mxu0 %v2648_v26  ;;  %v218_v20 = vld [vmem:[%s3499_s29 + $0x20] sm:$0xff]  ;;  %v220_v22 = vld [vmem:[%s3499_s29 + $0x30] sm:$0xff]  ;;  %v2730_v23 = vpack.c.bf16 %v407_v15, %v406_v13  ;;  %v377_v26 = vld [vmem:[#allocation5 + $0x418] sm:$0xff]  ;;  %v2732_v28 = vpack.c.bf16 %v425_v19, %v424_v18 }
  0x9d   : > { %2679 = vmatpush3.bf16.msra.mxu1 %v2678_v25  ;;  %v376_v25 = vld [vmem:[#allocation5 + $0x410] sm:$0xff]  ;;  %v409_v29 = vld [vmem:[#allocation5 + $0x518] sm:$0xff]  ;;  %v395_v31 = vld [vmem:[#allocation5 + $0x4a8] sm:$0xff] }
  0x9e   : > { %2681 = vmatprep.subr.bf16.mxu1 %v2680_v30  ;;  %v408_v27 = vld [vmem:[#allocation5 + $0x510] sm:$0xff]  ;;  %v394_v30 = vld [vmem:[#allocation5 + $0x4a0] sm:$0xff]  ;;  %v427_v33 = vld [vmem:[#allocation5 + $0x5a8] sm:$0xff]  ;;  %v2702_v35 = vpack.c.bf16 %v377_v26, %v376_v25 }
  0x9f   : > { %2651 = vmatpush3.bf16.msra.mxu0 %v2650_v36  ;;  %v426_v32 = vld [vmem:[#allocation5 + $0x5a0] sm:$0xff]  ;;  %v223_v34 = vld [vmem:[%s3499_s29 + $0x48] sm:$0xff]  ;;  %v225_v36 = vld [vmem:[%s3499_s29 + $0x58] sm:$0xff] }
  0xa0   : > { %2653 = vmatprep.subr.bf16.mxu0 %v2652_v38  ;;  %v2704_v38 = vpack.c.bf16 %v395_v31, %v394_v30  ;;  %v378_v39 = vld [vmem:[#allocation5 + $0x420] sm:$0xff]  ;;  %v379_v40 = vld [vmem:[#allocation5 + $0x428] sm:$0xff]  ;;  %v396_v44 = vld [vmem:[#allocation5 + $0x4b0] sm:$0xff] }
  0xa1   : > { %2683 = vmatpush3.bf16.msra.mxu1 %v2682_v37  ;;  %v2734_v37 = vpack.c.bf16 %v409_v29, %v408_v27  ;;  %v410_v41 = vld [vmem:[#allocation5 + $0x520] sm:$0xff]  ;;  %v411_v43 = vld [vmem:[#allocation5 + $0x528] sm:$0xff]  ;;  %v397_v45 = vld [vmem:[#allocation5 + $0x4b8] sm:$0xff] }
  0xa2   : > { %2685 = vmatprep.subr.bf16.mxu1 %v2684_v42  ;;  %v2736_v42 = vpack.c.bf16 %v427_v33, %v426_v32  ;;  %v428_v46 = vld [vmem:[#allocation5 + $0x5b0] sm:$0xff]  ;;  %v429_v47 = vld [vmem:[#allocation5 + $0x5b8] sm:$0xff]  ;;  %v398_v56 = vld [vmem:[#allocation5 + $0x4c0] sm:$0xff] }
  0xa3   : > { %2655 = vmatpush3.bf16.msra.mxu0 %v2654_v48  ;;  %v2706_v48 = vpack.c.bf16 %v379_v40, %v378_v39  ;;  %v380_v51 = vld [vmem:[#allocation5 + $0x430] sm:$0xff]  ;;  %v381_v52 = vld [vmem:[#allocation5 + $0x438] sm:$0xff]  ;;  %v399_v57 = vld [vmem:[#allocation5 + $0x4c8] sm:$0xff] }
  0xa4   : > { %2657 = vmatprep.subr.bf16.mxu0 %v2656_v50  ;;  %v2708_v50 = vpack.c.bf16 %v397_v45, %v396_v44  ;;  %v412_v53 = vld [vmem:[#allocation5 + $0x530] sm:$0xff]  ;;  %v413_v55 = vld [vmem:[#allocation5 + $0x538] sm:$0xff]  ;;  %v430_v58 = vld [vmem:[#allocation5 + $0x5c0] sm:$0xff] }
  0xa5   : > { %2687 = vmatpush3.bf16.msra.mxu1 %v2686_v49  ;;  %v2738_v49 = vpack.c.bf16 %v411_v43, %v410_v41  ;;  %v431_v59 = vld [vmem:[#allocation5 + $0x5c8] sm:$0xff]  ;;  %v382_v63 = vld [vmem:[#allocation5 + $0x440] sm:$0xff]  ;;  %v400_v4 = vld [vmem:[#allocation5 + $0x4d0] sm:$0xff] }
  0xa6   : > { %2689 = vmatprep.subr.bf16.mxu1 %v2688_v54  ;;  %v2740_v54 = vpack.c.bf16 %v429_v47, %v428_v46  ;;  %v383_v0 = vld [vmem:[#allocation5 + $0x448] sm:$0xff]  ;;  %v414_v1 = vld [vmem:[#allocation5 + $0x540] sm:$0xff]  ;;  %v401_v5 = vld [vmem:[#allocation5 + $0x4d8] sm:$0xff] }
  0xa7   : > { %2659 = vmatpush3.bf16.msra.mxu0 %v2658_v60  ;;  %v2710_v60 = vpack.c.bf16 %v381_v52, %v380_v51  ;;  %v415_v3 = vld [vmem:[#allocation5 + $0x548] sm:$0xff]  ;;  %v432_v6 = vld [vmem:[#allocation5 + $0x5d0] sm:$0xff]  ;;  %v433_v7 = vld [vmem:[#allocation5 + $0x5d8] sm:$0xff] }
  0xa8   : > { %2661 = vmatprep.subr.bf16.mxu0 %v2660_v62  ;;  %v2712_v62 = vpack.c.bf16 %v399_v57, %v398_v56  ;;  %v384_v11 = vld [vmem:[#allocation5 + $0x450] sm:$0xff]  ;;  %v385_v12 = vld [vmem:[#allocation5 + $0x458] sm:$0xff]  ;;  %v402_v16 = vld [vmem:[#allocation5 + $0x4e0] sm:$0xff] }
  0xa9   : > { %2691 = vmatpush3.bf16.msra.mxu1 %v2690_v61  ;;  %v2742_v61 = vpack.c.bf16 %v413_v55, %v412_v53  ;;  %v416_v13 = vld [vmem:[#allocation5 + $0x550] sm:$0xff]  ;;  %v417_v15 = vld [vmem:[#allocation5 + $0x558] sm:$0xff]  ;;  %v403_v17 = vld [vmem:[#allocation5 + $0x4e8] sm:$0xff] }
  0xaa   : > { %2693 = vmatprep.subr.bf16.mxu1 %v2692_v2  ;;  %v2744_v2 = vpack.c.bf16 %v431_v59, %v430_v58  ;;  %v434_v18 = vld [vmem:[#allocation5 + $0x5e0] sm:$0xff]  ;;  %v435_v19 = vld [vmem:[#allocation5 + $0x5e8] sm:$0xff]  ;;  %v405_v29 = vld [vmem:[#allocation5 + $0x4f8] sm:$0xff] }
  0xab   : > { %2663 = vmatpush3.bf16.msra.mxu0 %v2662_v8  ;;  %v2714_v8 = vpack.c.bf16 %v383_v0, %v382_v63  ;;  %v418_v25 = vld [vmem:[#allocation5 + $0x560] sm:$0xff]  ;;  %v2752_v26 = vpack.c.bf16 %v435_v19, %v434_v18  ;;  %v419_v27 = vld [vmem:[#allocation5 + $0x568] sm:$0xff]  ;;  %v436_v30 = vld [vmem:[#allocation5 + $0x5f0] sm:$0xff] }
  0xac   : > { %2697 = vmatprep.subr.bf16.mxu0 %v2696_v10  ;;  %v2716_v10 = vpack.c.bf16 %v401_v5, %v400_v4  ;;  %v437_v31 = vld [vmem:[#allocation5 + $0x5f8] sm:$0xff]  ;;  %v2754_v33 = vpack.c.bf16 %v419_v27, %v418_v25  ;;  %v454_v40 = vld [vmem:[#allocation5 + $0x680] sm:$0xff]  ;;  %v455_v41 = vld [vmem:[#allocation5 + $0x688] sm:$0xff] }
  0xad   : > { %2695 = vmatpush3.bf16.msra.mxu1 %v2694_v9  ;;  %v2746_v9 = vpack.c.bf16 %v415_v3, %v414_v1  ;;  %v421_v39 = vld [vmem:[#allocation5 + $0x578] sm:$0xff]  ;;  %v487_v43 = vld [vmem:[#allocation5 + $0x788] sm:$0xff]  ;;  %v2760_v46 = vpack.c.bf16 %v455_v41, %v454_v40  ;;  %v438_v47 = vld [vmem:[#allocation5 + $0x600] sm:$0xff] }
  0xae   : > { %2729 = vmatprep.subr.bf16.mxu1 %v2728_v14  ;;  %970 = vmatmul.mubr.f32.vlgmr.msra.gmra.mrb[2].mxu0 %v218_v20  ;;  %v2748_v14 = vpack.c.bf16 %v433_v7, %v432_v6  ;;  %v2718_v20 = vpack.c.bf16 %v385_v12, %v384_v11  ;;  %v471_v51 = vld [vmem:[#allocation5 + $0x708] sm:$0xff]  ;;  %v456_v52 = vld [vmem:[#allocation5 + $0x690] sm:$0xff]  ;;  %v457_v53 = vld [vmem:[#allocation5 + $0x698] sm:$0xff] }
  0xaf   : > { %2699 = vmatpush3.bf16.msra.mxu0 %v2698_v21  ;;  %1109 = vmatprep.mubr.f32.mxu0 %v223_v34  ;;  %v2750_v21 = vpack.c.bf16 %v417_v15, %v416_v13  ;;  %v489_v55 = vld [vmem:[#allocation5 + $0x798] sm:$0xff]  ;;  %v222_v56 = vld [vmem:[%s3499_s29 + $0x40] sm:$0xff]  ;;  %v224_v58 = vld [vmem:[%s3499_s29 + $0x50] sm:$0xff] }
  0xb0   : > { %1040 = vmatmul.mubr.f32.vlgmr.msra.gmra.mrb[2].mxu1 %v220_v22  ;;  %2701 = vmatprep.subr.bf16.mxu0 %v2700_v24  ;;  %v2720_v22 = vpack.c.bf16 %v403_v17, %v402_v16  ;;  %v387_v24 = vld [vmem:[#allocation5 + $0x468] sm:$0xff]  ;;  %v472_v63 = vld [vmem:[#allocation5 + $0x710] sm:$0xff]  ;;  %v473_v1 = vld [vmem:[#allocation5 + $0x718] sm:$0xff] }
  0xb1   : > { %2731 = vmatpush3.bf16.msra.mxu1 %v2730_v23  ;;  %1179 = vmatprep.mubr.f32.mxu1 %v225_v36  ;;  %v386_v23 = vld [vmem:[#allocation5 + $0x460] sm:$0xff]  ;;  %v389_v36 = vld [vmem:[#allocation5 + $0x478] sm:$0xff]  ;;  %v459_v3 = vld [vmem:[#allocation5 + $0x6a8] sm:$0xff] }
  0xb2   : > { %2733 = vmatprep.subr.bf16.mxu1 %v2732_v28  ;;  %v404_v28 = vld [vmem:[#allocation5 + $0x4f0] sm:$0xff]  ;;  %v2722_v32 = vpack.c.bf16 %v387_v24, %v386_v23  ;;  %v490_v4 = vld [vmem:[#allocation5 + $0x7a0] sm:$0xff]  ;;  %v491_v5 = vld [vmem:[#allocation5 + $0x7a8] sm:$0xff] }
  0xb3   : > { %2703 = vmatpush3.bf16.msra.mxu0 %v2702_v35  ;;  %v2724_v34 = vpack.c.bf16 %v405_v29, %v404_v28  ;;  %v388_v35 = vld [vmem:[#allocation5 + $0x470] sm:$0xff]  ;;  %v227_v6 = vld [vmem:[%s3499_s29 + $0x68] sm:$0xff]  ;;  %v442_v11 = vld [vmem:[#allocation5 + $0x620] sm:$0xff] }
  0xb4   : > { %2705 = vmatprep.subr.bf16.mxu0 %v2704_v38  ;;  %v2756_v38 = vpack.c.bf16 %v437_v31, %v436_v30  ;;  %v2726_v44 = vpack.c.bf16 %v389_v36, %v388_v35  ;;  %v443_v12 = vld [vmem:[#allocation5 + $0x628] sm:$0xff]  ;;  %v474_v13 = vld [vmem:[#allocation5 + $0x720] sm:$0xff]  ;;  %v460_v16 = vld [vmem:[#allocation5 + $0x6b0] sm:$0xff] }
  0xb5   : > { %2735 = vmatpush3.bf16.msra.mxu1 %v2734_v37  ;;  %v420_v37 = vld [vmem:[#allocation5 + $0x570] sm:$0xff]  ;;  %v475_v15 = vld [vmem:[#allocation5 + $0x728] sm:$0xff]  ;;  %v461_v17 = vld [vmem:[#allocation5 + $0x6b8] sm:$0xff] }
  0xb6   : > { %2737 = vmatprep.subr.bf16.mxu1 %v2736_v42  ;;  %v486_v42 = vld [vmem:[#allocation5 + $0x780] sm:$0xff]  ;;  %v2758_v45 = vpack.c.bf16 %v421_v39, %v420_v37  ;;  %v492_v18 = vld [vmem:[#allocation5 + $0x7b0] sm:$0xff]  ;;  %v493_v19 = vld [vmem:[#allocation5 + $0x7b8] sm:$0xff] }
  0xb7   : > { %2707 = vmatpush3.bf16.msra.mxu0 %v2706_v48  ;;  %v439_v48 = vld [vmem:[#allocation5 + $0x608] sm:$0xff]  ;;  %v444_v23 = vld [vmem:[#allocation5 + $0x630] sm:$0xff]  ;;  %v445_v24 = vld [vmem:[#allocation5 + $0x638] sm:$0xff] }
  0xb8   : > { %2709 = vmatprep.subr.bf16.mxu0 %v2708_v50  ;;  %v2792_v50 = vpack.c.bf16 %v487_v43, %v486_v42  ;;  %v2762_v57 = vpack.c.bf16 %v439_v48, %v438_v47  ;;  %v476_v25 = vld [vmem:[#allocation5 + $0x730] sm:$0xff]  ;;  %v477_v27 = vld [vmem:[#allocation5 + $0x738] sm:$0xff]  ;;  %v462_v28 = vld [vmem:[#allocation5 + $0x6c0] sm:$0xff] }
  0xb9   : > { %2739 = vmatpush3.bf16.msra.mxu1 %v2738_v49  ;;  %v470_v49 = vld [vmem:[#allocation5 + $0x700] sm:$0xff]  ;;  %v463_v29 = vld [vmem:[#allocation5 + $0x6c8] sm:$0xff]  ;;  %v464_v40 = vld [vmem:[#allocation5 + $0x6d0] sm:$0xff] }
  0xba   : > { %2741 = vmatprep.subr.bf16.mxu1 %v2740_v54  ;;  %v488_v54 = vld [vmem:[#allocation5 + $0x790] sm:$0xff]  ;;  %v2794_v59 = vpack.c.bf16 %v471_v51, %v470_v49  ;;  %v494_v30 = vld [vmem:[#allocation5 + $0x7c0] sm:$0xff]  ;;  %v495_v31 = vld [vmem:[#allocation5 + $0x7c8] sm:$0xff] }
  0xbb   : > { %2711 = vmatpush3.bf16.msra.mxu0 %v2710_v60  ;;  %v2764_v60 = vpack.c.bf16 %v457_v53, %v456_v52  ;;  %v2796_v0 = vpack.c.bf16 %v489_v55, %v488_v54  ;;  %v446_v35 = vld [vmem:[#allocation5 + $0x640] sm:$0xff]  ;;  %v447_v36 = vld [vmem:[#allocation5 + $0x648] sm:$0xff]  ;;  %v465_v41 = vld [vmem:[#allocation5 + $0x6d8] sm:$0xff] }
  0xbc   : > { %2713 = vmatprep.subr.bf16.mxu0 %v2712_v62  ;;  %v441_v62 = vld [vmem:[#allocation5 + $0x618] sm:$0xff]  ;;  %v478_v37 = vld [vmem:[#allocation5 + $0x740] sm:$0xff]  ;;  %v479_v39 = vld [vmem:[#allocation5 + $0x748] sm:$0xff] }
  0xbd   : > { %2743 = vmatpush3.bf16.msra.mxu1 %v2742_v61  ;;  %v440_v61 = vld [vmem:[#allocation5 + $0x610] sm:$0xff]  ;;  %v497_v43 = vld [vmem:[#allocation5 + $0x7d8] sm:$0xff]  ;;  %v466_v52 = vld [vmem:[#allocation5 + $0x6e0] sm:$0xff] }
  0xbe   : > { %2745 = vmatprep.subr.bf16.mxu1 %v2744_v2  ;;  %v458_v2 = vld [vmem:[#allocation5 + $0x6a0] sm:$0xff]  ;;  %v2766_v7 = vpack.c.bf16 %v441_v62, %v440_v61  ;;  %v496_v42 = vld [vmem:[#allocation5 + $0x7d0] sm:$0xff]  ;;  %v449_v48 = vld [vmem:[#allocation5 + $0x658] sm:$0xff] }
  0xbf   : > { %2715 = vmatpush3.bf16.msra.mxu0 %v2714_v8  ;;  %v229_v8 = vld [vmem:[%s3499_s29 + $0x78] sm:$0xff]  ;;  %v448_v47 = vld [vmem:[#allocation5 + $0x650] sm:$0xff]  ;;  %v467_v53 = vld [vmem:[#allocation5 + $0x6e8] sm:$0xff] }
  0xc0   : > { %2717 = vmatprep.subr.bf16.mxu0 %v2716_v10  ;;  %v2768_v10 = vpack.c.bf16 %v459_v3, %v458_v2  ;;  %v480_v49 = vld [vmem:[#allocation5 + $0x750] sm:$0xff]  ;;  %v481_v51 = vld [vmem:[#allocation5 + $0x758] sm:$0xff]  ;;  %v498_v54 = vld [vmem:[#allocation5 + $0x7e0] sm:$0xff] }
  0xc1   : > { %2747 = vmatpush3.bf16.msra.mxu1 %v2746_v9  ;;  %v2798_v9 = vpack.c.bf16 %v473_v1, %v472_v63  ;;  %v499_v55 = vld [vmem:[#allocation5 + $0x7e8] sm:$0xff]  ;;  %v482_v61 = vld [vmem:[#allocation5 + $0x760] sm:$0xff]  ;;  %v469_v1 = vld [vmem:[#allocation5 + $0x6f8] sm:$0xff] }
  0xc2   : > { %2749 = vmatprep.subr.bf16.mxu1 %v2748_v14  ;;  %v2800_v14 = vpack.c.bf16 %v491_v5, %v490_v4  ;;  %v2816_v62 = vpack.c.bf16 %v499_v55, %v498_v54  ;;  %v483_v63 = vld [vmem:[#allocation5 + $0x768] sm:$0xff]  ;;  %v500_v2 = vld [vmem:[#allocation5 + $0x7f0] sm:$0xff]  ;;  %v501_v3 = vld [vmem:[#allocation5 + $0x7f8] sm:$0xff] }
  0xc3   : > { %2719 = vmatpush3.bf16.msra.mxu0 %v2718_v20  ;;  %v2770_v20 = vpack.c.bf16 %v443_v12, %v442_v11  ;;  %v2818_v5 = vpack.c.bf16 %v483_v63, %v482_v61  ;;  %v485_v11 = vld [vmem:[#allocation5 + $0x778] sm:$0xff]  ;;  %v518_v12 = vld [vmem:[#allocation5 + $0x880] sm:$0xff]  ;;  %v556_v54 = vld [vmem:[#allocation5 + $0x9b0] sm:$0xff] }
  0xc4   : > { %2721 = vmatprep.subr.bf16.mxu0 %v2720_v22  ;;  %v2772_v22 = vpack.c.bf16 %v461_v17, %v460_v16  ;;  %v557_v55 = vld [vmem:[#allocation5 + $0x9b8] sm:$0xff]  ;;  %v540_v61 = vld [vmem:[#allocation5 + $0x930] sm:$0xff] }
  0xc5   : > { %2751 = vmatpush3.bf16.msra.mxu1 %v2750_v21  ;;  %v2802_v21 = vpack.c.bf16 %v475_v15, %v474_v13  ;;  %v519_v13 = vld [vmem:[#allocation5 + $0x888] sm:$0xff]  ;;  %v541_v63 = vld [vmem:[#allocation5 + $0x938] sm:$0xff] }
  0xc6   : > { %2753 = vmatprep.subr.bf16.mxu1 %v2752_v26  ;;  %v2804_v26 = vpack.c.bf16 %v493_v19, %v492_v18  ;;  %v551_v15 = vld [vmem:[#allocation5 + $0x988] sm:$0xff]  ;;  %v2824_v18 = vpack.c.bf16 %v519_v13, %v518_v12  ;;  %v502_v19 = vld [vmem:[#allocation5 + $0x800] sm:$0xff]  ;;  %v528_v12 = vld [vmem:[#allocation5 + $0x8d0] sm:$0xff] }
  0xc7   : > { %2723 = vmatpush3.bf16.msra.mxu0 %v2722_v32  ;;  %v2774_v32 = vpack.c.bf16 %v445_v24, %v444_v23  ;;  %v535_v23 = vld [vmem:[#allocation5 + $0x908] sm:$0xff]  ;;  %v520_v24 = vld [vmem:[#allocation5 + $0x890] sm:$0xff]  ;;  %v529_v13 = vld [vmem:[#allocation5 + $0x8d8] sm:$0xff] }
  0xc8   : > { %2725 = vmatprep.subr.bf16.mxu0 %v2724_v34  ;;  %v2776_v34 = vpack.c.bf16 %v463_v29, %v462_v28  ;;  %v226_v28 = vld [vmem:[%s3499_s29 + $0x60] sm:$0xff] }
  0xc9   : > { %2755 = vmatpush3.bf16.msra.mxu1 %v2754_v33  ;;  %v2806_v33 = vpack.c.bf16 %v477_v27, %v476_v25  ;;  %v521_v25 = vld [vmem:[#allocation5 + $0x898] sm:$0xff] }
  0xca   : > { %2757 = vmatprep.subr.bf16.mxu1 %v2756_v38  ;;  %v2808_v38 = vpack.c.bf16 %v495_v31, %v494_v30  ;;  %v553_v27 = vld [vmem:[#allocation5 + $0x998] sm:$0xff]  ;;  %v228_v30 = vld [vmem:[%s3499_s29 + $0x70] sm:$0xff] }
  0xcb   : > { %2727 = vmatpush3.bf16.msra.mxu0 %v2726_v44  ;;  %v2778_v44 = vpack.c.bf16 %v447_v36, %v446_v35  ;;  %v536_v35 = vld [vmem:[#allocation5 + $0x910] sm:$0xff] }
  0xcc   : > { %2761 = vmatprep.subr.bf16.mxu0 %v2760_v46  ;;  %v2780_v46 = vpack.c.bf16 %v465_v41, %v464_v40  ;;  %v554_v40 = vld [vmem:[#allocation5 + $0x9a0] sm:$0xff]  ;;  %v555_v41 = vld [vmem:[#allocation5 + $0x9a8] sm:$0xff] }
  0xcd   : > { %2759 = vmatpush3.bf16.msra.mxu1 %v2758_v45  ;;  %v2810_v45 = vpack.c.bf16 %v479_v39, %v478_v37  ;;  %v537_v37 = vld [vmem:[#allocation5 + $0x918] sm:$0xff]  ;;  %v523_v39 = vld [vmem:[#allocation5 + $0x8a8] sm:$0xff] }
  0xce   : > { %2793 = vmatprep.subr.bf16.mxu1 %v2792_v50  ;;  %1110 = vmatmul.mubr.f32.vlgmr.msra.gmra.mrb[4].mxu0 %v222_v56  ;;  %v2812_v50 = vpack.c.bf16 %v497_v43, %v496_v42  ;;  %v2782_v56 = vpack.c.bf16 %v449_v48, %v448_v47  ;;  %v231_v42 = vld [vmem:[%s3499_s29 + $0x88] sm:$0xff]  ;;  %v506_v47 = vld [vmem:[#allocation5 + $0x820] sm:$0xff] }
  0xcf   : > { %2763 = vmatpush3.bf16.msra.mxu0 %v2762_v57  ;;  %1249 = vmatprep.mubr.f32.mxu0 %v227_v6  ;;  %v2814_v57 = vpack.c.bf16 %v481_v51, %v480_v49  ;;  %v507_v48 = vld [vmem:[#allocation5 + $0x828] sm:$0xff]  ;;  %v538_v49 = vld [vmem:[#allocation5 + $0x920] sm:$0xff] }
  0xd0   : > { %1180 = vmatmul.mubr.f32.vlgmr.msra.gmra.mrb[4].mxu1 %v224_v58  ;;  %2765 = vmatprep.subr.bf16.mxu0 %v2764_v60  ;;  %v2784_v58 = vpack.c.bf16 %v467_v53, %v466_v52  ;;  %v451_v60 = vld [vmem:[#allocation5 + $0x668] sm:$0xff]  ;;  %v524_v52 = vld [vmem:[#allocation5 + $0x8b0] sm:$0xff]  ;;  %v525_v53 = vld [vmem:[#allocation5 + $0x8b8] sm:$0xff] }
  0xd1   : > { %2795 = vmatpush3.bf16.msra.mxu1 %v2794_v59  ;;  %1319 = vmatprep.mubr.f32.mxu1 %v229_v8  ;;  %v450_v59 = vld [vmem:[#allocation5 + $0x660] sm:$0xff]  ;;  %v453_v8 = vld [vmem:[#allocation5 + $0x678] sm:$0xff]  ;;  %v539_v51 = vld [vmem:[#allocation5 + $0x928] sm:$0xff] }
  0xd2   : > { %2797 = vmatprep.subr.bf16.mxu1 %v2796_v0  ;;  %v468_v0 = vld [vmem:[#allocation5 + $0x6f0] sm:$0xff]  ;;  %v2786_v4 = vpack.c.bf16 %v451_v60, %v450_v59  ;;  %v509_v60 = vld [vmem:[#allocation5 + $0x838] sm:$0xff] }
  0xd3   : > { %2767 = vmatpush3.bf16.msra.mxu0 %v2766_v7  ;;  %v2788_v6 = vpack.c.bf16 %v469_v1, %v468_v0  ;;  %v452_v7 = vld [vmem:[#allocation5 + $0x670] sm:$0xff]  ;;  %v526_v0 = vld [vmem:[#allocation5 + $0x8c0] sm:$0xff]  ;;  %v527_v1 = vld [vmem:[#allocation5 + $0x8c8] sm:$0xff] }
  0xd4   : > { %2769 = vmatprep.subr.bf16.mxu0 %v2768_v10  ;;  %v2820_v10 = vpack.c.bf16 %v501_v3, %v500_v2  ;;  %v2790_v16 = vpack.c.bf16 %v453_v8, %v452_v7  ;;  %v508_v59 = vld [vmem:[#allocation5 + $0x830] sm:$0xff]  ;;  %v558_v2 = vld [vmem:[#allocation5 + $0x9c0] sm:$0xff]  ;;  %v559_v3 = vld [vmem:[#allocation5 + $0x9c8] sm:$0xff] }
  0xd5   : > { %2799 = vmatpush3.bf16.msra.mxu1 %v2798_v9  ;;  %v484_v9 = vld [vmem:[#allocation5 + $0x770] sm:$0xff]  ;;  %v510_v7 = vld [vmem:[#allocation5 + $0x840] sm:$0xff]  ;;  %v511_v8 = vld [vmem:[#allocation5 + $0x848] sm:$0xff] }
  0xd6   : > { %2801 = vmatprep.subr.bf16.mxu1 %v2800_v14  ;;  %v550_v14 = vld [vmem:[#allocation5 + $0x980] sm:$0xff]  ;;  %v2822_v17 = vpack.c.bf16 %v485_v11, %v484_v9  ;;  %v543_v11 = vld [vmem:[#allocation5 + $0x948] sm:$0xff] }
  0xd7   : > { %2771 = vmatpush3.bf16.msra.mxu0 %v2770_v20  ;;  %v503_v20 = vld [vmem:[#allocation5 + $0x808] sm:$0xff]  ;;  %v542_v9 = vld [vmem:[#allocation5 + $0x940] sm:$0xff] }
  0xd8   : > { %2773 = vmatprep.subr.bf16.mxu0 %v2772_v22  ;;  %v2856_v22 = vpack.c.bf16 %v551_v15, %v550_v14  ;;  %v2826_v29 = vpack.c.bf16 %v503_v20, %v502_v19  ;;  %v560_v14 = vld [vmem:[#allocation5 + $0x9d0] sm:$0xff]  ;;  %v561_v15 = vld [vmem:[#allocation5 + $0x9d8] sm:$0xff] }
  0xd9   : > { %2803 = vmatpush3.bf16.msra.mxu1 %v2802_v21  ;;  %v534_v21 = vld [vmem:[#allocation5 + $0x900] sm:$0xff]  ;;  %v512_v19 = vld [vmem:[#allocation5 + $0x850] sm:$0xff]  ;;  %v513_v20 = vld [vmem:[#allocation5 + $0x858] sm:$0xff] }
  0xda   : > { %2805 = vmatprep.subr.bf16.mxu1 %v2804_v26  ;;  %v552_v26 = vld [vmem:[#allocation5 + $0x990] sm:$0xff]  ;;  %v2858_v31 = vpack.c.bf16 %v535_v23, %v534_v21  ;;  %v545_v23 = vld [vmem:[#allocation5 + $0x958] sm:$0xff] }
  0xdb   : > { %2775 = vmatpush3.bf16.msra.mxu0 %v2774_v32  ;;  %v2828_v32 = vpack.c.bf16 %v521_v25, %v520_v24  ;;  %v2860_v36 = vpack.c.bf16 %v553_v27, %v552_v26  ;;  %v544_v21 = vld [vmem:[#allocation5 + $0x950] sm:$0xff]  ;;  %v530_v24 = vld [vmem:[#allocation5 + $0x8e0] sm:$0xff]  ;;  %v531_v25 = vld [vmem:[#allocation5 + $0x8e8] sm:$0xff] }
  0xdc   : > { %2777 = vmatprep.subr.bf16.mxu0 %v2776_v34  ;;  %v505_v34 = vld [vmem:[#allocation5 + $0x818] sm:$0xff]  ;;  %v562_v26 = vld [vmem:[#allocation5 + $0x9e0] sm:$0xff]  ;;  %v563_v27 = vld [vmem:[#allocation5 + $0x9e8] sm:$0xff] }
  0xdd   : > { %2807 = vmatpush3.bf16.msra.mxu1 %v2806_v33  ;;  %v504_v33 = vld [vmem:[#allocation5 + $0x810] sm:$0xff] }
  0xde   : > { %2809 = vmatprep.subr.bf16.mxu1 %v2808_v38  ;;  %v522_v38 = vld [vmem:[#allocation5 + $0x8a0] sm:$0xff]  ;;  %v2830_v43 = vpack.c.bf16 %v505_v34, %v504_v33  ;;  %v2880_v34 = vpack.c.bf16 %v563_v27, %v562_v26  ;;  %v620_v26 = vld [vmem:[#allocation5 + $0xbb0] sm:$0xff]  ;;  %v621_v27 = vld [vmem:[#allocation5 + $0xbb8] sm:$0xff] }
  0xdf   : > { %2779 = vmatpush3.bf16.msra.mxu0 %v2778_v44  ;;  %v233_v44 = vld [vmem:[%s3499_s29 + $0x98] sm:$0xff]  ;;  %v546_v33 = vld [vmem:[#allocation5 + $0x960] sm:$0xff] }
  0xe0   : > { %2781 = vmatprep.subr.bf16.mxu0 %v2780_v46  ;;  %v2832_v46 = vpack.c.bf16 %v523_v39, %v522_v38  ;;  %v564_v38 = vld [vmem:[#allocation5 + $0x9f0] sm:$0xff]  ;;  %v565_v39 = vld [vmem:[#allocation5 + $0x9f8] sm:$0xff] }
  0xe1   : > { %2811 = vmatpush3.bf16.msra.mxu1 %v2810_v45  ;;  %v2862_v45 = vpack.c.bf16 %v537_v37, %v536_v35  ;;  %v547_v35 = vld [vmem:[#allocation5 + $0x968] sm:$0xff]  ;;  %v533_v37 = vld [vmem:[#allocation5 + $0x8f8] sm:$0xff] }
  0xe2   : > { %2813 = vmatprep.subr.bf16.mxu1 %v2812_v50  ;;  %v2864_v50 = vpack.c.bf16 %v555_v41, %v554_v40  ;;  %v2882_v41 = vpack.c.bf16 %v547_v35, %v546_v33  ;;  %v604_v33 = vld [vmem:[#allocation5 + $0xb30] sm:$0xff]  ;;  %v605_v35 = vld [vmem:[#allocation5 + $0xb38] sm:$0xff] }
  0xe3   : > { %2783 = vmatpush3.bf16.msra.mxu0 %v2782_v56  ;;  %v2834_v56 = vpack.c.bf16 %v507_v48, %v506_v47  ;;  %v549_v47 = vld [vmem:[#allocation5 + $0x978] sm:$0xff]  ;;  %v582_v48 = vld [vmem:[#allocation5 + $0xa80] sm:$0xff] }
  0xe4   : > { %2785 = vmatprep.subr.bf16.mxu0 %v2784_v58  ;;  %v2836_v58 = vpack.c.bf16 %v525_v53, %v524_v52 }
  0xe5   : > { %2815 = vmatpush3.bf16.msra.mxu1 %v2814_v57  ;;  %v2866_v57 = vpack.c.bf16 %v539_v51, %v538_v49  ;;  %v583_v49 = vld [vmem:[#allocation5 + $0xa88] sm:$0xff] }
  0xe6   : > { %2817 = vmatprep.subr.bf16.mxu1 %v2816_v62  ;;  %v2868_v62 = vpack.c.bf16 %v557_v55, %v556_v54  ;;  %v615_v51 = vld [vmem:[#allocation5 + $0xb88] sm:$0xff]  ;;  %v2888_v54 = vpack.c.bf16 %v583_v49, %v582_v48  ;;  %v566_v55 = vld [vmem:[#allocation5 + $0xa00] sm:$0xff]  ;;  %v592_v48 = vld [vmem:[#allocation5 + $0xad0] sm:$0xff] }
  0xe7   : > { %2787 = vmatpush3.bf16.msra.mxu0 %v2786_v4  ;;  %v2838_v4 = vpack.c.bf16 %v509_v60, %v508_v59  ;;  %v599_v59 = vld [vmem:[#allocation5 + $0xb08] sm:$0xff]  ;;  %v584_v60 = vld [vmem:[#allocation5 + $0xa90] sm:$0xff]  ;;  %v593_v49 = vld [vmem:[#allocation5 + $0xad8] sm:$0xff] }
  0xe8   : > { %2789 = vmatprep.subr.bf16.mxu0 %v2788_v6  ;;  %v2840_v6 = vpack.c.bf16 %v527_v1, %v526_v0  ;;  %v230_v0 = vld [vmem:[%s3499_s29 + $0x80] sm:$0xff] }
  0xe9   : > { %2819 = vmatpush3.bf16.msra.mxu1 %v2818_v5  ;;  %v2870_v5 = vpack.c.bf16 %v541_v63, %v540_v61  ;;  %v585_v61 = vld [vmem:[#allocation5 + $0xa98] sm:$0xff] }
  0xea   : > { %2821 = vmatprep.subr.bf16.mxu1 %v2820_v10  ;;  %v2872_v10 = vpack.c.bf16 %v559_v3, %v558_v2  ;;  %v617_v63 = vld [vmem:[#allocation5 + $0xb98] sm:$0xff]  ;;  %v232_v2 = vld [vmem:[%s3499_s29 + $0x90] sm:$0xff] }
  0xeb   : > { %2791 = vmatpush3.bf16.msra.mxu0 %v2790_v16  ;;  %v2842_v16 = vpack.c.bf16 %v511_v8, %v510_v7  ;;  %v600_v7 = vld [vmem:[#allocation5 + $0xb10] sm:$0xff] }
  0xec   : > { %2825 = vmatprep.subr.bf16.mxu0 %v2824_v18  ;;  %v2844_v18 = vpack.c.bf16 %v529_v13, %v528_v12  ;;  %v618_v12 = vld [vmem:[#allocation5 + $0xba0] sm:$0xff]  ;;  %v619_v13 = vld [vmem:[#allocation5 + $0xba8] sm:$0xff] }
  0xed   : > { %2823 = vmatpush3.bf16.msra.mxu1 %v2822_v17  ;;  %v2874_v17 = vpack.c.bf16 %v543_v11, %v542_v9  ;;  %v601_v9 = vld [vmem:[#allocation5 + $0xb18] sm:$0xff]  ;;  %v587_v11 = vld [vmem:[#allocation5 + $0xaa8] sm:$0xff] }
  0xee   : > { %2857 = vmatprep.subr.bf16.mxu1 %v2856_v22  ;;  %1250 = vmatmul.mubr.f32.vlgmr.msra.gmra.mrb[6].mxu0 %v226_v28  ;;  %v2876_v22 = vpack.c.bf16 %v561_v15, %v560_v14  ;;  %v2846_v28 = vpack.c.bf16 %v513_v20, %v512_v19  ;;  %v235_v14 = vld [vmem:[%s3499_s29 + $0xa8] sm:$0xff]  ;;  %v570_v19 = vld [vmem:[#allocation5 + $0xa20] sm:$0xff] }
  0xef   : > { %2827 = vmatpush3.bf16.msra.mxu0 %v2826_v29  ;;  %1389 = vmatprep.mubr.f32.mxu0 %v231_v42  ;;  %v2878_v29 = vpack.c.bf16 %v545_v23, %v544_v21  ;;  %v571_v20 = vld [vmem:[#allocation5 + $0xa28] sm:$0xff]  ;;  %v602_v21 = vld [vmem:[#allocation5 + $0xb20] sm:$0xff] }
  0xf0   : > { %1320 = vmatmul.mubr.f32.vlgmr.msra.gmra.mrb[6].mxu1 %v228_v30  ;;  %2829 = vmatprep.subr.bf16.mxu0 %v2828_v32  ;;  %v2848_v30 = vpack.c.bf16 %v531_v25, %v530_v24  ;;  %v515_v32 = vld [vmem:[#allocation5 + $0x868] sm:$0xff]  ;;  %v588_v24 = vld [vmem:[#allocation5 + $0xab0] sm:$0xff]  ;;  %v589_v25 = vld [vmem:[#allocation5 + $0xab8] sm:$0xff] }
  0xf1   : > { %2859 = vmatpush3.bf16.msra.mxu1 %v2858_v31  ;;  %1459 = vmatprep.mubr.f32.mxu1 %v233_v44  ;;  %v514_v31 = vld [vmem:[#allocation5 + $0x860] sm:$0xff]  ;;  %v517_v44 = vld [vmem:[#allocation5 + $0x878] sm:$0xff]  ;;  %v603_v23 = vld [vmem:[#allocation5 + $0xb28] sm:$0xff] }
  0xf2   : > { %2861 = vmatprep.subr.bf16.mxu1 %v2860_v36  ;;  %v532_v36 = vld [vmem:[#allocation5 + $0x8f0] sm:$0xff]  ;;  %v2850_v40 = vpack.c.bf16 %v515_v32, %v514_v31  ;;  %v573_v32 = vld [vmem:[#allocation5 + $0xa38] sm:$0xff] }
  0xf3   : > { %2831 = vmatpush3.bf16.msra.mxu0 %v2830_v43  ;;  %v2852_v42 = vpack.c.bf16 %v533_v37, %v532_v36  ;;  %v516_v43 = vld [vmem:[#allocation5 + $0x870] sm:$0xff]  ;;  %v590_v36 = vld [vmem:[#allocation5 + $0xac0] sm:$0xff]  ;;  %v591_v37 = vld [vmem:[#allocation5 + $0xac8] sm:$0xff] }
  0xf4   : > { %2833 = vmatprep.subr.bf16.mxu0 %v2832_v46  ;;  %v2884_v46 = vpack.c.bf16 %v565_v39, %v564_v38  ;;  %v2854_v52 = vpack.c.bf16 %v517_v44, %v516_v43  ;;  %v572_v31 = vld [vmem:[#allocation5 + $0xa30] sm:$0xff]  ;;  %v622_v38 = vld [vmem:[#allocation5 + $0xbc0] sm:$0xff]  ;;  %v623_v39 = vld [vmem:[#allocation5 + $0xbc8] sm:$0xff] }
  0xf5   : > { %2863 = vmatpush3.bf16.msra.mxu1 %v2862_v45  ;;  %v548_v45 = vld [vmem:[#allocation5 + $0x970] sm:$0xff]  ;;  %v574_v43 = vld [vmem:[#allocation5 + $0xa40] sm:$0xff]  ;;  %v575_v44 = vld [vmem:[#allocation5 + $0xa48] sm:$0xff] }
  0xf6   : > { %2865 = vmatprep.subr.bf16.mxu1 %v2864_v50  ;;  %v614_v50 = vld [vmem:[#allocation5 + $0xb80] sm:$0xff]  ;;  %v2886_v53 = vpack.c.bf16 %v549_v47, %v548_v45  ;;  %v607_v47 = vld [vmem:[#allocation5 + $0xb48] sm:$0xff] }
  0xf7   : > { %2835 = vmatpush3.bf16.msra.mxu0 %v2834_v56  ;;  %v567_v56 = vld [vmem:[#allocation5 + $0xa08] sm:$0xff]  ;;  %v606_v45 = vld [vmem:[#allocation5 + $0xb40] sm:$0xff] }
  0xf8   : > { %2837 = vmatprep.subr.bf16.mxu0 %v2836_v58  ;;  %v2920_v58 = vpack.c.bf16 %v615_v51, %v614_v50  ;;  %v2890_v1 = vpack.c.bf16 %v567_v56, %v566_v55  ;;  %v624_v50 = vld [vmem:[#allocation5 + $0xbd0] sm:$0xff]  ;;  %v625_v51 = vld [vmem:[#allocation5 + $0xbd8] sm:$0xff] }
  0xf9   : > { %2867 = vmatpush3.bf16.msra.mxu1 %v2866_v57  ;;  %v598_v57 = vld [vmem:[#allocation5 + $0xb00] sm:$0xff]  ;;  %v576_v55 = vld [vmem:[#allocation5 + $0xa50] sm:$0xff]  ;;  %v577_v56 = vld [vmem:[#allocation5 + $0xa58] sm:$0xff] }
  0xfa   : > { %2869 = vmatprep.subr.bf16.mxu1 %v2868_v62  ;;  %v616_v62 = vld [vmem:[#allocation5 + $0xb90] sm:$0xff]  ;;  %v2922_v3 = vpack.c.bf16 %v599_v59, %v598_v57  ;;  %v609_v59 = vld [vmem:[#allocation5 + $0xb58] sm:$0xff] }
  0xfb   : > { %2839 = vmatpush3.bf16.msra.mxu0 %v2838_v4  ;;  %v2892_v4 = vpack.c.bf16 %v585_v61, %v584_v60  ;;  %v2924_v8 = vpack.c.bf16 %v617_v63, %v616_v62  ;;  %v608_v57 = vld [vmem:[#allocation5 + $0xb50] sm:$0xff]  ;;  %v594_v60 = vld [vmem:[#allocation5 + $0xae0] sm:$0xff]  ;;  %v595_v61 = vld [vmem:[#allocation5 + $0xae8] sm:$0xff] }
  0xfc   : > { %2841 = vmatprep.subr.bf16.mxu0 %v2840_v6  ;;  %v569_v6 = vld [vmem:[#allocation5 + $0xa18] sm:$0xff]  ;;  %v626_v62 = vld [vmem:[#allocation5 + $0xbe0] sm:$0xff]  ;;  %v627_v63 = vld [vmem:[#allocation5 + $0xbe8] sm:$0xff] }
  0xfd   : > { %2871 = vmatpush3.bf16.msra.mxu1 %v2870_v5  ;;  %v568_v5 = vld [vmem:[#allocation5 + $0xa10] sm:$0xff] }
  0xfe   : > { %2873 = vmatprep.subr.bf16.mxu1 %v2872_v10  ;;  %v586_v10 = vld [vmem:[#allocation5 + $0xaa0] sm:$0xff]  ;;  %v2894_v15 = vpack.c.bf16 %v569_v6, %v568_v5  ;;  %v2944_v6 = vpack.c.bf16 %v627_v63, %v626_v62  ;;  %v684_v62 = vld [vmem:[#allocation5 + $0xdb0] sm:$0xff]  ;;  %v685_v63 = vld [vmem:[#allocation5 + $0xdb8] sm:$0xff] }
  0xff   : > { %2843 = vmatpush3.bf16.msra.mxu0 %v2842_v16  ;;  %v237_v16 = vld [vmem:[%s3499_s29 + $0xb8] sm:$0xff]  ;;  %v610_v5 = vld [vmem:[#allocation5 + $0xb60] sm:$0xff] }
 0x100   : > { %2845 = vmatprep.subr.bf16.mxu0 %v2844_v18  ;;  %v2896_v18 = vpack.c.bf16 %v587_v11, %v586_v10  ;;  %v628_v10 = vld [vmem:[#allocation5 + $0xbf0] sm:$0xff]  ;;  %v629_v11 = vld [vmem:[#allocation5 + $0xbf8] sm:$0xff] }
 0x101   : > { %2875 = vmatpush3.bf16.msra.mxu1 %v2874_v17  ;;  %v2926_v17 = vpack.c.bf16 %v601_v9, %v600_v7  ;;  %v611_v7 = vld [vmem:[#allocation5 + $0xb68] sm:$0xff]  ;;  %v597_v9 = vld [vmem:[#allocation5 + $0xaf8] sm:$0xff] }
 0x102   : > { %2877 = vmatprep.subr.bf16.mxu1 %v2876_v22  ;;  %v2928_v22 = vpack.c.bf16 %v619_v13, %v618_v12  ;;  %v2946_v13 = vpack.c.bf16 %v611_v7, %v610_v5  ;;  %v668_v5 = vld [vmem:[#allocation5 + $0xd30] sm:$0xff]  ;;  %v669_v7 = vld [vmem:[#allocation5 + $0xd38] sm:$0xff] }
 0x103   : > { %2847 = vmatpush3.bf16.msra.mxu0 %v2846_v28  ;;  %v2898_v28 = vpack.c.bf16 %v571_v20, %v570_v19  ;;  %v613_v19 = vld [vmem:[#allocation5 + $0xb78] sm:$0xff]  ;;  %v646_v20 = vld [vmem:[#allocation5 + $0xc80] sm:$0xff] }
 0x104   : > { %2849 = vmatprep.subr.bf16.mxu0 %v2848_v30  ;;  %v2900_v30 = vpack.c.bf16 %v589_v25, %v588_v24 }
 0x105   : > { %2879 = vmatpush3.bf16.msra.mxu1 %v2878_v29  ;;  %v2930_v29 = vpack.c.bf16 %v603_v23, %v602_v21  ;;  %v647_v21 = vld [vmem:[#allocation5 + $0xc88] sm:$0xff] }
 0x106   : > { %2881 = vmatprep.subr.bf16.mxu1 %v2880_v34  ;;  %v2932_v34 = vpack.c.bf16 %v621_v27, %v620_v26  ;;  %v679_v23 = vld [vmem:[#allocation5 + $0xd88] sm:$0xff]  ;;  %v2952_v26 = vpack.c.bf16 %v647_v21, %v646_v20  ;;  %v630_v27 = vld [vmem:[#allocation5 + $0xc00] sm:$0xff]  ;;  %v656_v20 = vld [vmem:[#allocation5 + $0xcd0] sm:$0xff] }
 0x107   : > { %2851 = vmatpush3.bf16.msra.mxu0 %v2850_v40  ;;  %v2902_v40 = vpack.c.bf16 %v573_v32, %v572_v31  ;;  %v663_v31 = vld [vmem:[#allocation5 + $0xd08] sm:$0xff]  ;;  %v648_v32 = vld [vmem:[#allocation5 + $0xc90] sm:$0xff]  ;;  %v657_v21 = vld [vmem:[#allocation5 + $0xcd8] sm:$0xff] }
 0x108   : > { %2853 = vmatprep.subr.bf16.mxu0 %v2852_v42  ;;  %v2904_v42 = vpack.c.bf16 %v591_v37, %v590_v36  ;;  %v234_v36 = vld [vmem:[%s3499_s29 + $0xa0] sm:$0xff] }
 0x109   : > { %2883 = vmatpush3.bf16.msra.mxu1 %v2882_v41  ;;  %v2934_v41 = vpack.c.bf16 %v605_v35, %v604_v33  ;;  %v649_v33 = vld [vmem:[#allocation5 + $0xc98] sm:$0xff] }
 0x10a   : > { %2885 = vmatprep.subr.bf16.mxu1 %v2884_v46  ;;  %v2936_v46 = vpack.c.bf16 %v623_v39, %v622_v38  ;;  %v681_v35 = vld [vmem:[#allocation5 + $0xd98] sm:$0xff]  ;;  %v236_v38 = vld [vmem:[%s3499_s29 + $0xb0] sm:$0xff] }
 0x10b   : > { %2855 = vmatpush3.bf16.msra.mxu0 %v2854_v52  ;;  %v2906_v52 = vpack.c.bf16 %v575_v44, %v574_v43  ;;  %v664_v43 = vld [vmem:[#allocation5 + $0xd10] sm:$0xff] }
 0x10c   : > { %2889 = vmatprep.subr.bf16.mxu0 %v2888_v54  ;;  %v2908_v54 = vpack.c.bf16 %v593_v49, %v592_v48  ;;  %v682_v48 = vld [vmem:[#allocation5 + $0xda0] sm:$0xff]  ;;  %v683_v49 = vld [vmem:[#allocation5 + $0xda8] sm:$0xff] }
 0x10d   : > { %2887 = vmatpush3.bf16.msra.mxu1 %v2886_v53  ;;  %v2938_v53 = vpack.c.bf16 %v607_v47, %v606_v45  ;;  %v665_v45 = vld [vmem:[#allocation5 + $0xd18] sm:$0xff]  ;;  %v651_v47 = vld [vmem:[#allocation5 + $0xca8] sm:$0xff] }
 0x10e   : > { %2921 = vmatprep.subr.bf16.mxu1 %v2920_v58  ;;  %1390 = vmatmul.mubr.f32.vlgmr.msra.gmra.mrb[8].mxu0 %v230_v0  ;;  %v2940_v58 = vpack.c.bf16 %v625_v51, %v624_v50  ;;  %v2910_v0 = vpack.c.bf16 %v577_v56, %v576_v55  ;;  %v239_v50 = vld [vmem:[%s3499_s29 + $0xc8] sm:$0xff]  ;;  %v634_v55 = vld [vmem:[#allocation5 + $0xc20] sm:$0xff] }
 0x10f   : > { %2891 = vmatpush3.bf16.msra.mxu0 %v2890_v1  ;;  %1529 = vmatprep.mubr.f32.mxu0 %v235_v14  ;;  %v2942_v1 = vpack.c.bf16 %v609_v59, %v608_v57  ;;  %v635_v56 = vld [vmem:[#allocation5 + $0xc28] sm:$0xff]  ;;  %v666_v57 = vld [vmem:[#allocation5 + $0xd20] sm:$0xff] }
 0x110   : > { %1460 = vmatmul.mubr.f32.vlgmr.msra.gmra.mrb[8].mxu1 %v232_v2  ;;  %2893 = vmatprep.subr.bf16.mxu0 %v2892_v4  ;;  %v2912_v2 = vpack.c.bf16 %v595_v61, %v594_v60  ;;  %v579_v4 = vld [vmem:[#allocation5 + $0xa68] sm:$0xff]  ;;  %v652_v60 = vld [vmem:[#allocation5 + $0xcb0] sm:$0xff]  ;;  %v653_v61 = vld [vmem:[#allocation5 + $0xcb8] sm:$0xff] }
 0x111   : > { %2923 = vmatpush3.bf16.msra.mxu1 %v2922_v3  ;;  %1599 = vmatprep.mubr.f32.mxu1 %v237_v16  ;;  %v578_v3 = vld [vmem:[#allocation5 + $0xa60] sm:$0xff]  ;;  %v581_v16 = vld [vmem:[#allocation5 + $0xa78] sm:$0xff]  ;;  %v667_v59 = vld [vmem:[#allocation5 + $0xd28] sm:$0xff] }
 0x112   : > { %2925 = vmatprep.subr.bf16.mxu1 %v2924_v8  ;;  %v596_v8 = vld [vmem:[#allocation5 + $0xaf0] sm:$0xff]  ;;  %v2914_v12 = vpack.c.bf16 %v579_v4, %v578_v3  ;;  %v637_v4 = vld [vmem:[#allocation5 + $0xc38] sm:$0xff] }
 0x113   : > { %2895 = vmatpush3.bf16.msra.mxu0 %v2894_v15  ;;  %v2916_v14 = vpack.c.bf16 %v597_v9, %v596_v8  ;;  %v580_v15 = vld [vmem:[#allocation5 + $0xa70] sm:$0xff]  ;;  %v654_v8 = vld [vmem:[#allocation5 + $0xcc0] sm:$0xff]  ;;  %v655_v9 = vld [vmem:[#allocation5 + $0xcc8] sm:$0xff] }
 0x114   : > { %2897 = vmatprep.subr.bf16.mxu0 %v2896_v18  ;;  %v2948_v18 = vpack.c.bf16 %v629_v11, %v628_v10  ;;  %v2918_v24 = vpack.c.bf16 %v581_v16, %v580_v15  ;;  %v636_v3 = vld [vmem:[#allocation5 + $0xc30] sm:$0xff]  ;;  %v686_v10 = vld [vmem:[#allocation5 + $0xdc0] sm:$0xff]  ;;  %v687_v11 = vld [vmem:[#allocation5 + $0xdc8] sm:$0xff] }
 0x115   : > { %2927 = vmatpush3.bf16.msra.mxu1 %v2926_v17  ;;  %v612_v17 = vld [vmem:[#allocation5 + $0xb70] sm:$0xff]  ;;  %v638_v15 = vld [vmem:[#allocation5 + $0xc40] sm:$0xff]  ;;  %v639_v16 = vld [vmem:[#allocation5 + $0xc48] sm:$0xff] }
 0x116   : > { %2929 = vmatprep.subr.bf16.mxu1 %v2928_v22  ;;  %v678_v22 = vld [vmem:[#allocation5 + $0xd80] sm:$0xff]  ;;  %v2950_v25 = vpack.c.bf16 %v613_v19, %v612_v17  ;;  %v671_v19 = vld [vmem:[#allocation5 + $0xd48] sm:$0xff] }
 0x117   : > { %2899 = vmatpush3.bf16.msra.mxu0 %v2898_v28  ;;  %v631_v28 = vld [vmem:[#allocation5 + $0xc08] sm:$0xff]  ;;  %v670_v17 = vld [vmem:[#allocation5 + $0xd40] sm:$0xff] }
 0x118   : > { %2901 = vmatprep.subr.bf16.mxu0 %v2900_v30  ;;  %v2984_v30 = vpack.c.bf16 %v679_v23, %v678_v22  ;;  %v2954_v37 = vpack.c.bf16 %v631_v28, %v630_v27  ;;  %v688_v22 = vld [vmem:[#allocation5 + $0xdd0] sm:$0xff]  ;;  %v689_v23 = vld [vmem:[#allocation5 + $0xdd8] sm:$0xff] }
 0x119   : > { %2931 = vmatpush3.bf16.msra.mxu1 %v2930_v29  ;;  %v662_v29 = vld [vmem:[#allocation5 + $0xd00] sm:$0xff]  ;;  %v640_v27 = vld [vmem:[#allocation5 + $0xc50] sm:$0xff]  ;;  %v641_v28 = vld [vmem:[#allocation5 + $0xc58] sm:$0xff] }
 0x11a   : > { %2933 = vmatprep.subr.bf16.mxu1 %v2932_v34  ;;  %v680_v34 = vld [vmem:[#allocation5 + $0xd90] sm:$0xff]  ;;  %v2986_v39 = vpack.c.bf16 %v663_v31, %v662_v29  ;;  %v673_v31 = vld [vmem:[#allocation5 + $0xd58] sm:$0xff] }
 0x11b   : > { %2903 = vmatpush3.bf16.msra.mxu0 %v2902_v40  ;;  %v2956_v40 = vpack.c.bf16 %v649_v33, %v648_v32  ;;  %v2988_v44 = vpack.c.bf16 %v681_v35, %v680_v34  ;;  %v672_v29 = vld [vmem:[#allocation5 + $0xd50] sm:$0xff]  ;;  %v658_v32 = vld [vmem:[#allocation5 + $0xce0] sm:$0xff]  ;;  %v659_v33 = vld [vmem:[#allocation5 + $0xce8] sm:$0xff] }
 0x11c   : > { %2905 = vmatprep.subr.bf16.mxu0 %v2904_v42  ;;  %v633_v42 = vld [vmem:[#allocation5 + $0xc18] sm:$0xff]  ;;  %v690_v34 = vld [vmem:[#allocation5 + $0xde0] sm:$0xff]  ;;  %v691_v35 = vld [vmem:[#allocation5 + $0xde8] sm:$0xff] }
 0x11d   : > { %2935 = vmatpush3.bf16.msra.mxu1 %v2934_v41  ;;  %v632_v41 = vld [vmem:[#allocation5 + $0xc10] sm:$0xff] }
 0x11e   : > { %2937 = vmatprep.subr.bf16.mxu1 %v2936_v46  ;;  %v650_v46 = vld [vmem:[#allocation5 + $0xca0] sm:$0xff]  ;;  %v2958_v51 = vpack.c.bf16 %v633_v42, %v632_v41  ;;  %v3008_v42 = vpack.c.bf16 %v691_v35, %v690_v34  ;;  %v748_v34 = vld [vmem:[#allocation5 + $0xfb0] sm:$0xff]  ;;  %v749_v35 = vld [vmem:[#allocation5 + $0xfb8] sm:$0xff] }
 0x11f   : > { %2907 = vmatpush3.bf16.msra.mxu0 %v2906_v52  ;;  %v241_v52 = vld [vmem:[%s3499_s29 + $0xd8] sm:$0xff]  ;;  %v674_v41 = vld [vmem:[#allocation5 + $0xd60] sm:$0xff] }
 0x120   : > { %2909 = vmatprep.subr.bf16.mxu0 %v2908_v54  ;;  %v2960_v54 = vpack.c.bf16 %v651_v47, %v650_v46  ;;  %v692_v46 = vld [vmem:[#allocation5 + $0xdf0] sm:$0xff]  ;;  %v693_v47 = vld [vmem:[#allocation5 + $0xdf8] sm:$0xff] }
 0x121   : > { %2939 = vmatpush3.bf16.msra.mxu1 %v2938_v53  ;;  %v2990_v53 = vpack.c.bf16 %v665_v45, %v664_v43  ;;  %v675_v43 = vld [vmem:[#allocation5 + $0xd68] sm:$0xff]  ;;  %v661_v45 = vld [vmem:[#allocation5 + $0xcf8] sm:$0xff] }
 0x122   : > { %2941 = vmatprep.subr.bf16.mxu1 %v2940_v58  ;;  %v2992_v58 = vpack.c.bf16 %v683_v49, %v682_v48  ;;  %v3010_v49 = vpack.c.bf16 %v675_v43, %v674_v41  ;;  %v732_v41 = vld [vmem:[#allocation5 + $0xf30] sm:$0xff]  ;;  %v733_v43 = vld [vmem:[#allocation5 + $0xf38] sm:$0xff] }
 0x123   : > { %2911 = vmatpush3.bf16.msra.mxu0 %v2910_v0  ;;  %v2962_v0 = vpack.c.bf16 %v635_v56, %v634_v55  ;;  %v677_v55 = vld [vmem:[#allocation5 + $0xd78] sm:$0xff]  ;;  %v710_v56 = vld [vmem:[#allocation5 + $0xe80] sm:$0xff] }
 0x124   : > { %2913 = vmatprep.subr.bf16.mxu0 %v2912_v2  ;;  %v2964_v2 = vpack.c.bf16 %v653_v61, %v652_v60 }
 0x125   : > { %2943 = vmatpush3.bf16.msra.mxu1 %v2942_v1  ;;  %v2994_v1 = vpack.c.bf16 %v667_v59, %v666_v57  ;;  %v711_v57 = vld [vmem:[#allocation5 + $0xe88] sm:$0xff] }
 0x126   : > { %2945 = vmatprep.subr.bf16.mxu1 %v2944_v6  ;;  %v2996_v6 = vpack.c.bf16 %v685_v63, %v684_v62  ;;  %v743_v59 = vld [vmem:[#allocation5 + $0xf88] sm:$0xff]  ;;  %v3016_v62 = vpack.c.bf16 %v711_v57, %v710_v56  ;;  %v694_v63 = vld [vmem:[#allocation5 + $0xe00] sm:$0xff]  ;;  %v720_v56 = vld [vmem:[#allocation5 + $0xed0] sm:$0xff] }
 0x127   : > { %2915 = vmatpush3.bf16.msra.mxu0 %v2914_v12  ;;  %v2966_v12 = vpack.c.bf16 %v637_v4, %v636_v3  ;;  %v727_v3 = vld [vmem:[#allocation5 + $0xf08] sm:$0xff]  ;;  %v712_v4 = vld [vmem:[#allocation5 + $0xe90] sm:$0xff]  ;;  %v721_v57 = vld [vmem:[#allocation5 + $0xed8] sm:$0xff] }
 0x128   : > { %2917 = vmatprep.subr.bf16.mxu0 %v2916_v14  ;;  %v2968_v14 = vpack.c.bf16 %v655_v9, %v654_v8  ;;  %v238_v8 = vld [vmem:[%s3499_s29 + $0xc0] sm:$0xff] }
 0x129   : > { %2947 = vmatpush3.bf16.msra.mxu1 %v2946_v13  ;;  %v2998_v13 = vpack.c.bf16 %v669_v7, %v668_v5  ;;  %v713_v5 = vld [vmem:[#allocation5 + $0xe98] sm:$0xff] }
 0x12a   : > { %2949 = vmatprep.subr.bf16.mxu1 %v2948_v18  ;;  %v3000_v18 = vpack.c.bf16 %v687_v11, %v686_v10  ;;  %v745_v7 = vld [vmem:[#allocation5 + $0xf98] sm:$0xff]  ;;  %v240_v10 = vld [vmem:[%s3499_s29 + $0xd0] sm:$0xff] }
 0x12b   : > { %2919 = vmatpush3.bf16.msra.mxu0 %v2918_v24  ;;  %v2970_v24 = vpack.c.bf16 %v639_v16, %v638_v15  ;;  %v728_v15 = vld [vmem:[#allocation5 + $0xf10] sm:$0xff] }
 0x12c   : > { %2953 = vmatprep.subr.bf16.mxu0 %v2952_v26  ;;  %v2972_v26 = vpack.c.bf16 %v657_v21, %v656_v20  ;;  %v746_v20 = vld [vmem:[#allocation5 + $0xfa0] sm:$0xff]  ;;  %v747_v21 = vld [vmem:[#allocation5 + $0xfa8] sm:$0xff] }
 0x12d   : > { %2951 = vmatpush3.bf16.msra.mxu1 %v2950_v25  ;;  %v3002_v25 = vpack.c.bf16 %v671_v19, %v670_v17  ;;  %v729_v17 = vld [vmem:[#allocation5 + $0xf18] sm:$0xff]  ;;  %v715_v19 = vld [vmem:[#allocation5 + $0xea8] sm:$0xff] }
 0x12e   : > { %2985 = vmatprep.subr.bf16.mxu1 %v2984_v30  ;;  %1530 = vmatmul.mubr.f32.vlgmr.msra.gmra.mrb[10].mxu0 %v234_v36  ;;  %v3004_v30 = vpack.c.bf16 %v689_v23, %v688_v22  ;;  %v2974_v36 = vpack.c.bf16 %v641_v28, %v640_v27  ;;  %v243_v22 = vld [vmem:[%s3499_s29 + $0xe8] sm:$0xff]  ;;  %v698_v27 = vld [vmem:[#allocation5 + $0xe20] sm:$0xff] }
 0x12f   : > { %2955 = vmatpush3.bf16.msra.mxu0 %v2954_v37  ;;  %1669 = vmatprep.mubr.f32.mxu0 %v239_v50  ;;  %v3006_v37 = vpack.c.bf16 %v673_v31, %v672_v29  ;;  %v699_v28 = vld [vmem:[#allocation5 + $0xe28] sm:$0xff]  ;;  %v730_v29 = vld [vmem:[#allocation5 + $0xf20] sm:$0xff] }
 0x130   : > { %1600 = vmatmul.mubr.f32.vlgmr.msra.gmra.mrb[10].mxu1 %v236_v38  ;;  %2957 = vmatprep.subr.bf16.mxu0 %v2956_v40  ;;  %v2976_v38 = vpack.c.bf16 %v659_v33, %v658_v32  ;;  %v643_v40 = vld [vmem:[#allocation5 + $0xc68] sm:$0xff]  ;;  %v716_v32 = vld [vmem:[#allocation5 + $0xeb0] sm:$0xff]  ;;  %v717_v33 = vld [vmem:[#allocation5 + $0xeb8] sm:$0xff] }
 0x131   : > { %2987 = vmatpush3.bf16.msra.mxu1 %v2986_v39  ;;  %1739 = vmatprep.mubr.f32.mxu1 %v241_v52  ;;  %v642_v39 = vld [vmem:[#allocation5 + $0xc60] sm:$0xff]  ;;  %v645_v52 = vld [vmem:[#allocation5 + $0xc78] sm:$0xff]  ;;  %v731_v31 = vld [vmem:[#allocation5 + $0xf28] sm:$0xff] }
 0x132   : > { %2989 = vmatprep.subr.bf16.mxu1 %v2988_v44  ;;  %v660_v44 = vld [vmem:[#allocation5 + $0xcf0] sm:$0xff]  ;;  %v2978_v48 = vpack.c.bf16 %v643_v40, %v642_v39  ;;  %v701_v40 = vld [vmem:[#allocation5 + $0xe38] sm:$0xff] }
 0x133   : > { %2959 = vmatpush3.bf16.msra.mxu0 %v2958_v51  ;;  %v2980_v50 = vpack.c.bf16 %v661_v45, %v660_v44  ;;  %v644_v51 = vld [vmem:[#allocation5 + $0xc70] sm:$0xff]  ;;  %v718_v44 = vld [vmem:[#allocation5 + $0xec0] sm:$0xff]  ;;  %v719_v45 = vld [vmem:[#allocation5 + $0xec8] sm:$0xff] }
 0x134   : > { %2961 = vmatprep.subr.bf16.mxu0 %v2960_v54  ;;  %v3012_v54 = vpack.c.bf16 %v693_v47, %v692_v46  ;;  %v2982_v60 = vpack.c.bf16 %v645_v52, %v644_v51  ;;  %v700_v39 = vld [vmem:[#allocation5 + $0xe30] sm:$0xff]  ;;  %v750_v46 = vld [vmem:[#allocation5 + $0xfc0] sm:$0xff]  ;;  %v751_v47 = vld [vmem:[#allocation5 + $0xfc8] sm:$0xff] }
 0x135   : > { %2991 = vmatpush3.bf16.msra.mxu1 %v2990_v53  ;;  %v676_v53 = vld [vmem:[#allocation5 + $0xd70] sm:$0xff]  ;;  %v702_v51 = vld [vmem:[#allocation5 + $0xe40] sm:$0xff]  ;;  %v703_v52 = vld [vmem:[#allocation5 + $0xe48] sm:$0xff] }
 0x136   : > { %2993 = vmatprep.subr.bf16.mxu1 %v2992_v58  ;;  %v742_v58 = vld [vmem:[#allocation5 + $0xf80] sm:$0xff]  ;;  %v3014_v61 = vpack.c.bf16 %v677_v55, %v676_v53  ;;  %v735_v55 = vld [vmem:[#allocation5 + $0xf48] sm:$0xff] }
 0x137   : > { %2963 = vmatpush3.bf16.msra.mxu0 %v2962_v0  ;;  %v695_v0 = vld [vmem:[#allocation5 + $0xe08] sm:$0xff]  ;;  %v734_v53 = vld [vmem:[#allocation5 + $0xf40] sm:$0xff] }
 0x138   : > { %2965 = vmatprep.subr.bf16.mxu0 %v2964_v2  ;;  %v3048_v2 = vpack.c.bf16 %v743_v59, %v742_v58  ;;  %v3018_v9 = vpack.c.bf16 %v695_v0, %v694_v63  ;;  %v752_v58 = vld [vmem:[#allocation5 + $0xfd0] sm:$0xff]  ;;  %v753_v59 = vld [vmem:[#allocation5 + $0xfd8] sm:$0xff] }
 0x139   : > { %2995 = vmatpush3.bf16.msra.mxu1 %v2994_v1  ;;  %v726_v1 = vld [vmem:[#allocation5 + $0xf00] sm:$0xff]  ;;  %v704_v63 = vld [vmem:[#allocation5 + $0xe50] sm:$0xff]  ;;  %v705_v0 = vld [vmem:[#allocation5 + $0xe58] sm:$0xff] }
 0x13a   : > { %2997 = vmatprep.subr.bf16.mxu1 %v2996_v6  ;;  %v744_v6 = vld [vmem:[#allocation5 + $0xf90] sm:$0xff]  ;;  %v3050_v11 = vpack.c.bf16 %v727_v3, %v726_v1  ;;  %v737_v3 = vld [vmem:[#allocation5 + $0xf58] sm:$0xff] }
 0x13b   : > { %2967 = vmatpush3.bf16.msra.mxu0 %v2966_v12  ;;  %v3020_v12 = vpack.c.bf16 %v713_v5, %v712_v4  ;;  %v3052_v16 = vpack.c.bf16 %v745_v7, %v744_v6  ;;  %v736_v1 = vld [vmem:[#allocation5 + $0xf50] sm:$0xff]  ;;  %v722_v4 = vld [vmem:[#allocation5 + $0xee0] sm:$0xff]  ;;  %v723_v5 = vld [vmem:[#allocation5 + $0xee8] sm:$0xff] }
 0x13c   : > { %2969 = vmatprep.subr.bf16.mxu0 %v2968_v14  ;;  %v697_v14 = vld [vmem:[#allocation5 + $0xe18] sm:$0xff]  ;;  %v754_v6 = vld [vmem:[#allocation5 + $0xfe0] sm:$0xff]  ;;  %v755_v7 = vld [vmem:[#allocation5 + $0xfe8] sm:$0xff] }
 0x13d   : > { %2999 = vmatpush3.bf16.msra.mxu1 %v2998_v13  ;;  %v696_v13 = vld [vmem:[#allocation5 + $0xe10] sm:$0xff] }
 0x13e   : > { %3001 = vmatprep.subr.bf16.mxu1 %v3000_v18  ;;  %v714_v18 = vld [vmem:[#allocation5 + $0xea0] sm:$0xff]  ;;  %v3022_v23 = vpack.c.bf16 %v697_v14, %v696_v13 }
 0x13f   : > { %2971 = vmatpush3.bf16.msra.mxu0 %v2970_v24  ;;  %v245_v24 = vld [vmem:[%s3499_s29 + $0xf8] sm:$0xff]  ;;  %v738_v13 = vld [vmem:[#allocation5 + $0xf60] sm:$0xff] }
 0x140   : > { %2973 = vmatprep.subr.bf16.mxu0 %v2972_v26  ;;  %v3024_v26 = vpack.c.bf16 %v715_v19, %v714_v18  ;;  %v725_v18 = vld [vmem:[#allocation5 + $0xef8] sm:$0xff]  ;;  %v2002_v19 = vld [vmem:[#allocation7] ss:$0 sm:$0xff] }
 0x141   : > { %3003 = vmatpush3.bf16.msra.mxu1 %v3002_v25  ;;  %v3054_v25 = vpack.c.bf16 %v729_v17, %v728_v15  ;;  %v3072_v15 = vpack.c.bf16 %v755_v7, %v754_v6  ;;  %v724_v17 = vld [vmem:[#allocation5 + $0xef0] sm:$0xff] }
 0x142   : > { %3005 = vmatprep.subr.bf16.mxu1 %v3004_v30  ;;  %v3056_v30 = vpack.c.bf16 %v747_v21, %v746_v20 }
 0x143   : > { %2975 = vmatpush3.bf16.msra.mxu0 %v2974_v36  ;;  %v3026_v36 = vpack.c.bf16 %v699_v28, %v698_v27 }
 0x144   : > { %2977 = vmatprep.subr.bf16.mxu0 %v2976_v38  ;;  %v3028_v38 = vpack.c.bf16 %v717_v33, %v716_v32 }
 0x145   : > { %3007 = vmatpush3.bf16.msra.mxu1 %v3006_v37  ;;  %v3058_v37 = vpack.c.bf16 %v731_v31, %v730_v29  ;;  %v3044_v29 = vpack.c.bf16 %v725_v18, %v724_v17  ;;  %v709_v31 = vld [vmem:[#allocation5 + $0xe78] sm:$0xff] }
 0x146   : > { %3009 = vmatprep.subr.bf16.mxu1 %v3008_v42  ;;  %v3060_v42 = vpack.c.bf16 %v749_v35, %v748_v34  ;;  %v740_v34 = vld [vmem:[#allocation5 + $0xf70] sm:$0xff]  ;;  %v741_v35 = vld [vmem:[#allocation5 + $0xf78] sm:$0xff] }
 0x147   : > { %2979 = vmatpush3.bf16.msra.mxu0 %v2978_v48  ;;  %v3030_v48 = vpack.c.bf16 %v701_v40, %v700_v39  ;;  %v242_v39 = vld [vmem:[%s3499_s29 + $0xe0] sm:$0xff]  ;;  %v244_v40 = vld [vmem:[%s3499_s29 + $0xf0] sm:$0xff] }
 0x148   : > { %2981 = vmatprep.subr.bf16.mxu0 %v2980_v50  ;;  %v3032_v50 = vpack.c.bf16 %v719_v45, %v718_v44 }
 0x149   : > { %3011 = vmatpush3.bf16.msra.mxu1 %v3010_v49  ;;  %v3062_v49 = vpack.c.bf16 %v733_v43, %v732_v41 }
 0x14a   : > { %3013 = vmatprep.subr.bf16.mxu1 %v3012_v54  ;;  %v3064_v54 = vpack.c.bf16 %v751_v47, %v750_v46 }
 0x14b   : > { %2983 = vmatpush3.bf16.msra.mxu0 %v2982_v60  ;;  %v3034_v60 = vpack.c.bf16 %v703_v52, %v702_v51 }
 0x14c   : > { %3017 = vmatprep.subr.bf16.mxu0 %v3016_v62  ;;  %v3036_v62 = vpack.c.bf16 %v721_v57, %v720_v56 }
 0x14d   : > { %3015 = vmatpush3.bf16.msra.mxu1 %v3014_v61  ;;  %v3066_v61 = vpack.c.bf16 %v735_v55, %v734_v53 }
 0x14e   : > { %3049 = vmatprep.subr.bf16.mxu1 %v3048_v2  ;;  %1670 = vmatmul.mubr.f32.vlgmr.msra.gmra.mrb[12].mxu0 %v238_v8  ;;  %v3068_v2 = vpack.c.bf16 %v753_v59, %v752_v58  ;;  %v3038_v8 = vpack.c.bf16 %v705_v0, %v704_v63 }
 0x14f   : > { %3019 = vmatpush3.bf16.msra.mxu0 %v3018_v9  ;;  %1809 = vmatprep.mubr.f32.mxu0 %v243_v22  ;;  %v3070_v9 = vpack.c.bf16 %v737_v3, %v736_v1  ;;  %v756_v22 = vld [vmem:[#allocation5 + $0xff0] sm:$0xff] }
 0x150   : > { %1740 = vmatmul.mubr.f32.vlgmr.msra.gmra.mrb[12].mxu1 %v240_v10  ;;  %3021 = vmatprep.subr.bf16.mxu0 %v3020_v12  ;;  %v3040_v10 = vpack.c.bf16 %v723_v5, %v722_v4  ;;  %v707_v12 = vld [vmem:[#allocation5 + $0xe68] sm:$0xff] }
 0x151   : > { %3051 = vmatpush3.bf16.msra.mxu1 %v3050_v11  ;;  %1879 = vmatprep.mubr.f32.mxu1 %v245_v24  ;;  %v706_v11 = vld [vmem:[#allocation5 + $0xe60] sm:$0xff] }
 0x152   : > { %3053 = vmatprep.subr.bf16.mxu1 %v3052_v16  ;;  %v739_v16 = vld [vmem:[#allocation5 + $0xf68] sm:$0xff] }
 0x153   : > { %3023 = vmatpush3.bf16.msra.mxu0 %v3022_v23  ;;  %v757_v23 = vld [vmem:[#allocation5 + $0xff8] sm:$0xff]  ;;  %v3074_v28 = vpack.c.bf16 %v739_v16, %v738_v13 }
 0x154   : > { %3025 = vmatprep.subr.bf16.mxu0 %v3024_v26  ;;  %v3042_v26 = vpack.c.bf16 %v707_v12, %v706_v11  ;;  %v3076_v33 = vpack.c.bf16 %v757_v23, %v756_v22 }
 0x155   : > { %3055 = vmatpush3.bf16.msra.mxu1 %v3054_v25 }
 0x156   : > { %3057 = vmatprep.subr.bf16.mxu1 %v3056_v30  ;;  %v708_v30 = vld [vmem:[#allocation5 + $0xe70] sm:$0xff] }
 0x157   : > { %3027 = vmatpush3.bf16.msra.mxu0 %v3026_v36 }
 0x158   : > { %3029 = vmatprep.subr.bf16.mxu0 %v3028_v38  ;;  %v3078_v38 = vpack.c.bf16 %v741_v35, %v740_v34 }
 0x159   : > { %3059 = vmatpush3.bf16.msra.mxu1 %v3058_v37  ;;  %v3046_v37 = vpack.c.bf16 %v709_v31, %v708_v30 }
 0x15a   : > { %3061 = vmatprep.subr.bf16.mxu1 %v3060_v42 }
 0x15b   : > { %3031 = vmatpush3.bf16.msra.mxu0 %v3030_v48 }
 0x15c   : > { %3033 = vmatprep.subr.bf16.mxu0 %v3032_v50 }
 0x15d   : > { %3063 = vmatpush3.bf16.msra.mxu1 %v3062_v49 }
 0x15e   : > { %3065 = vmatprep.subr.bf16.mxu1 %v3064_v54 }
 0x15f   : > { %3035 = vmatpush3.bf16.msra.mxu0 %v3034_v60 }
 0x160   : > { %3037 = vmatprep.subr.bf16.mxu0 %v3036_v62 }
 0x161   : > { %3067 = vmatpush3.bf16.msra.mxu1 %v3066_v61  ;;  %v2040_v14 = vpop.f32.mrb[0].mxu0 }
 0x162   : > { %3069 = vmatprep.subr.bf16.mxu1 %v3068_v2  ;;  %v2041_v20 = vpop.f32.mrb[1].mxu0 }
 0x163   : > { %v2075_v21 = vpop.f32.mrb[0].mxu1  ;;  %v2042_v24 = vadd.f32 %v2041_v20, %v2040_v14  ;;  %3039 = vmatpush3.bf16.msra.mxu0 %v3038_v8 }
 0x164   : > { %v2076_v25 = vpop.f32.mrb[1].mxu1  ;;  %3041 = vmatprep.subr.bf16.mxu0 %v3040_v10 }
 0x165   : > { %v2077_v27 = vadd.f32 %v2076_v25, %v2075_v21  ;;  %3071 = vmatpush3.bf16.msra.mxu1 %v3070_v9  ;;  %v832_v32 = vadd.f32 %v2042_v24, %v2002_v19 }
 0x166   : > { %3073 = vmatprep.subr.bf16.mxu1 %v3072_v15 }
 0x167   : > { %v902_v36 = vadd.f32 %v2077_v27, %v832_v32  ;;  %3043 = vmatpush3.bf16.msra.mxu0 %v3042_v26 }
 0x168   : > { %3045 = vmatprep.subr.bf16.mxu0 %v3044_v29 }
 0x169   : > { %3075 = vmatpush3.bf16.msra.mxu1 %v3074_v28 }
 0x16a   : > { %3077 = vmatprep.subr.bf16.mxu1 %v3076_v33 }
 0x16b   : > { %3047 = vmatpush3.bf16.msra.mxu0 %v3046_v37 }
 0x16d   : > { %3079 = vmatpush3.bf16.msra.mxu1 %v3078_v38 }
 0x16e   : > { %1810 = vmatmul.mubr.f32.vlgmr.msra.gmra.mrb[14].mxu0 %v242_v39 }
 0x170   : > { %1880 = vmatmul.mubr.f32.vlgmr.msra.gmra.mrb[14].mxu1 %v244_v40 }
 0x181   : > { %v2110_v41 = vpop.f32.mrb[2].mxu0 }
 0x182   : > { %v2111_v42 = vpop.f32.mrb[3].mxu0 }
 0x183   : > { %v2145_v43 = vpop.f32.mrb[2].mxu1  ;;  %v2112_v44 = vadd.f32 %v2111_v42, %v2110_v41 }
 0x184   : > { %v2146_v45 = vpop.f32.mrb[3].mxu1 }
 0x185   : > { %v2147_v46 = vadd.f32 %v2146_v45, %v2145_v43  ;;  %v972_v47 = vadd.f32 %v2112_v44, %v902_v36 }
 0x187   : > { %v1042_v48 = vadd.f32 %v2147_v46, %v972_v47 }
 0x1a1   : > { %v2180_v49 = vpop.f32.mrb[4].mxu0 }
 0x1a2   : > { %v2181_v50 = vpop.f32.mrb[5].mxu0 }
 0x1a3   : > { %v2215_v51 = vpop.f32.mrb[4].mxu1  ;;  %v2182_v52 = vadd.f32 %v2181_v50, %v2180_v49 }
 0x1a4   : > { %v2216_v53 = vpop.f32.mrb[5].mxu1 }
 0x1a5   : > { %v2217_v54 = vadd.f32 %v2216_v53, %v2215_v51  ;;  %v1112_v55 = vadd.f32 %v2182_v52, %v1042_v48 }
 0x1a7   : > { %v1182_v56 = vadd.f32 %v2217_v54, %v1112_v55 }
 0x1c1   : > { %v2250_v57 = vpop.f32.mrb[6].mxu0 }
 0x1c2   : > { %v2251_v58 = vpop.f32.mrb[7].mxu0 }
 0x1c3   : > { %v2285_v59 = vpop.f32.mrb[6].mxu1  ;;  %v2252_v60 = vadd.f32 %v2251_v58, %v2250_v57 }
 0x1c4   : > { %v2286_v61 = vpop.f32.mrb[7].mxu1 }
 0x1c5   : > { %v2287_v62 = vadd.f32 %v2286_v61, %v2285_v59  ;;  %v1252_v63 = vadd.f32 %v2252_v60, %v1182_v56 }
 0x1c7   : > { %v1322_v0 = vadd.f32 %v2287_v62, %v1252_v63 }
 0x1e1   : > { %v2320_v1 = vpop.f32.mrb[8].mxu0 }
 0x1e2   : > { %v2321_v2 = vpop.f32.mrb[9].mxu0 }
 0x1e3   : > { %v2355_v3 = vpop.f32.mrb[8].mxu1  ;;  %v2322_v4 = vadd.f32 %v2321_v2, %v2320_v1 }
 0x1e4   : > { %v2356_v5 = vpop.f32.mrb[9].mxu1 }
 0x1e5   : > { %v2357_v6 = vadd.f32 %v2356_v5, %v2355_v3  ;;  %v1392_v7 = vadd.f32 %v2322_v4, %v1322_v0 }
 0x1e7   : > { %v1462_v8 = vadd.f32 %v2357_v6, %v1392_v7 }
 0x201   : > { %v2390_v9 = vpop.f32.mrb[10].mxu0 }
 0x202   : > { %v2391_v10 = vpop.f32.mrb[11].mxu0 }
 0x203   : > { %v2425_v11 = vpop.f32.mrb[10].mxu1  ;;  %v2392_v12 = vadd.f32 %v2391_v10, %v2390_v9 }
 0x204   : > { %v2426_v13 = vpop.f32.mrb[11].mxu1 }
 0x205   : > { %v2427_v14 = vadd.f32 %v2426_v13, %v2425_v11  ;;  %v1532_v15 = vadd.f32 %v2392_v12, %v1462_v8 }
 0x207   : > { %v1602_v16 = vadd.f32 %v2427_v14, %v1532_v15 }
 0x221   : > { %v2460_v17 = vpop.f32.mrb[12].mxu0 }
 0x222   : > { %v2461_v18 = vpop.f32.mrb[13].mxu0 }
 0x223   : > { %v2495_v19 = vpop.f32.mrb[12].mxu1  ;;  %v2462_v20 = vadd.f32 %v2461_v18, %v2460_v17 }
 0x224   : > { %v2496_v21 = vpop.f32.mrb[13].mxu1 }
 0x225   : > { %v2497_v22 = vadd.f32 %v2496_v21, %v2495_v19  ;;  %v1672_v23 = vadd.f32 %v2462_v20, %v1602_v16 }
 0x227   : > { %v1742_v24 = vadd.f32 %v2497_v22, %v1672_v23 }
 0x241   : > { %v2530_v25 = vpop.f32.mrb[14].mxu0 }
 0x242   : > { %v2531_v26 = vpop.f32.mrb[15].mxu0 }
 0x243   : > { %v2565_v27 = vpop.f32.mrb[14].mxu1  ;;  %v2532_v28 = vadd.f32 %v2531_v26, %v2530_v25 }
 0x244   : > { %v2566_v29 = vpop.f32.mrb[15].mxu1 }
 0x245   : > { %v2567_v30 = vadd.f32 %v2566_v29, %v2565_v27  ;;  %v1812_v31 = vadd.f32 %v2532_v28, %v1742_v24 }
 0x247   : > { %v1882_v32 = vadd.f32 %v2567_v30, %v1812_v31 }
 0x249   : > { %1885 = vst [vmem:[%s213_s21] sm:$0xff] %v1882_v32 }
 0x24a   : > { %3248 = shalt.err (!%p3245_p7)
}
 0x24b   : > { %s3249_s10 = scalar_lea.hbm %s3546_s30, 128  ;;  %s3253_s17 = scalar_lea.hbm %s3592_s3, 512 }
 0x24c   : > { %p3250_p9 = scmp.ne.s32.totalorder %s3546_s30, %s3249_s10  ;;  %p3254_p0 = scmp.lt.u32.totalorder %s3546_s30, %s3592_s3 }
 0x24d   : > { %p3255_p10 = scmp.lt.u32.totalorder %s3253_s17, %s3249_s10  ;;  %p3257_p1 = scmp.lt.u32.totalorder %s3249_s10, %s3546_s30 }
 0x24e   : > { %p3251_p12 = pnand %p3250_p9, %p3446_p4 }
 0x24f   : > { %p3256_p11 = por %p3255_p10, %p3254_p0 }
 0x250   : > { %p3252_p5 = pneg %p3251_p12 }
 0x251   : > { %p3258_p2 = por %p3257_p1, %p3256_p11 }
 0x253   : > { %p3259_p6 = pnand %p3258_p2, %p3252_p5 }
 0x255   : > { %3262 = shalt.err (!%p3259_p6)
}
 0x256   : > { %3090 = dma.vmem_to_hbm [thread:$0]  (%p3446_p4), %s3548_s26, 128, %s3546_s30, %s1887_s4  }
 0x257 PF: > { %p3112_p8 = scmp.ge.s32.totalorder %s3305_s15, 2  ;;  %s1912_s29 = sand.u32 1, %s3293_s12  }
 0x258   : > { %p3607_p13 = scmp.ne.s32.totalorder %s3597_s19, 0  ;;  %s1913_s18 = scalar_lea.sflag [#allocation4], %s1912_s29 }
 0x25a   : > { %p3104_p3 = pnand %p3112_p8, %p3607_p13 }
 0x25c   : > { %3288 = dma.done.wait (!%p3104_p3), %s1913_s18, 128  }
 0x25d   : > { %3290 = vsyncadd (!%p3104_p3), %s1913_s18, 4294967168  ;;  %p17_p7 = scmp.ge.s32.totalorder %s3436_s5, 6   ;;  %s3608_s12 = smov %s3297_s13 }
 0x25e   : > { %s3609_s13 = smov %s3301_s14  ;;  %s3610_s14 = smov %s3452_s8 }
 0x25f   : > { %s3611_s15 = smov %s3436_s5  ;;  %19 = sbr.rel (!%p17_p7) target bundleno = 6 (0x6), region = 85 }
 0x266   :  { %1918 = vsyncpa [#allocation3], 1 }
 0x267   :  { %1920 = vsyncpa [#allocation3 + $0x1], 1 }
 0x268   :  { %1921 = vsyncpa [#allocation6], 1 }
 0x269   :  { %1922 = vsyncpa [#allocation4], 1 }
 0x26a   :  { %1924 = vsyncpa [#allocation4 + $0x1], 1 }

</bundles_post_ra>
